<compile_context>
chip_gen: v5e
topology: v5e:2x2
jax: 0.10.0
libtpu: 0.0.40
codegen_flags: <defaults>
</compile_context>

<pallas_src>
import jax
import jax.numpy as jnp
from jax.experimental import pallas as pl
from jax.experimental.pallas import tpu as pltpu

PART = 6

# Small, TPU-friendly stand-ins for the real PCB dims (real: C=2048, LINEAR=256).
N = 4          # batch
C_FEAT = 512   # backbone feature channels
H, W = 24, 8   # backbone feature spatial size (real PCB: 24x8 from 384x128 input)
LINEAR = 128   # bottleneck dim of ClassBlock
NUM_CLASSES = 32
EPS = 1e-5
BIN = (H // PART) * W  # elements averaged per part (height bin x full width)


# ---------------------------------------------------------------------------
# Fused kernel: avgpool(parts) + 6x (Linear+BN folded) + block-diag classifier
# ---------------------------------------------------------------------------
def _pcb_fused_kernel(x_ref, w1_ref, b1_ref, w2bd_ref, b2_ref, y_ref, h_ref):
    # x_ref:    (N, PART, BIN, C)      feature map, channels on lanes
    # w1_ref:   (PART, C, L)           BN + 1/BIN folded in
    # b1_ref:   (PART, 1, L)
    # w2bd_ref: (PART*L, PART*K)       block-diagonal classifier weight
    # b2_ref:   (1, PART*K)
    # y_ref:    (N, PART*K)            lane-dense output slab
    # h_ref:    (N, PART*L)            VMEM scratch for concatenated hiddens
    part = w1_ref.shape[0]
    l = w1_ref.shape[2]
    # Statically unrolled over the 6 parts so the scheduler overlaps the tiny
    # M=N-row matmuls with the sublane-reduction pools and weight reads.
    for p in range(part):
        # AdaptiveAvgPool2d((PART,1)) as a sum (1/BIN is folded into w1); f32 accum.
        pooled = jnp.sum(x_ref[:, p, :, :], axis=1)                       # (N, C)
        # Linear(C->L) with BatchNorm1d(eval) folded in; Dropout(eval) = identity.
        h = jnp.dot(pooled, w1_ref[p], preferred_element_type=jnp.float32)
        h = h + b1_ref[p]
        # Lane-aligned (multiple-of-128) store into the concatenated hidden scratch.
        h_ref[:, p * l:(p + 1) * l] = h
    # Single classifier matmul (block-diagonal weights) -> one lane-dense store.
    y = jnp.dot(h_ref[...], w2bd_ref[...], preferred_element_type=jnp.float32)
    y = y + b2_ref[...]
    y_ref[...] = y.astype(y_ref.dtype)


def pcb_forward(feat_nchw, folded_params):
    """feat_nchw: (N, C, H, W) backbone features. Returns list of PART (N, K) logits."""
    w1f, b1f, w2bd, b2cat = folded_params
    n, c, h, w = feat_nchw.shape
    assert h % PART == 0, "adaptive pool reduces to uniform bins only when H % PART == 0"
    binsz = (h // PART) * w
    l = w1f.shape[-1]
    k = b2cat.shape[-1] // PART

    # NCHW -> NHWC -> (N, PART, BIN, C): channels on the lane axis.
    # TODO(synk): if the backbone emitted NHWC this transpose (one HBM pass over the
    # largest tensor) would disappear entirely.
    x = jnp.transpose(feat_nchw, (0, 2, 3, 1)).reshape(n, PART, binsz, c)

    y = pl.pallas_call(
        _pcb_fused_kernel,
        out_shape=jax.ShapeDtypeStruct((n, PART * k), jnp.float32),
        grid=(1,),  # everything resident in VMEM: one step, zero per-part overhead
        in_specs=[
            pl.BlockSpec((n, PART, binsz, c), lambda i: (0, 0, 0, 0)),
            pl.BlockSpec((PART, c, l), lambda i: (0, 0, 0)),
            pl.BlockSpec((PART, 1, l), lambda i: (0, 0, 0)),
            pl.BlockSpec((PART * l, PART * k), lambda i: (0, 0)),
            pl.BlockSpec((1, PART * k), lambda i: (0, 0)),
        ],
        out_specs=pl.BlockSpec((n, PART * k), lambda i: (0, 0)),
        scratch_shapes=[pltpu.VMEM((n, PART * l), jnp.float32)],
        compiler_params=pltpu.CompilerParams(
            dimension_semantics=("arbitrary",)),
    )(x, w1f, b1f, w2bd, b2cat)

    # PCB.forward returns a python list y[0..PART-1], each (N, class_num).
    return [y[:, i * k:(i + 1) * k] for i in range(PART)]


pcb_forward_jit = jax.jit(pcb_forward)


# ---------------------------------------------------------------------------
# Parameter init (deterministic, mirrors weights_init_kaiming / _classifier)
# and BN / pool folding.
# ---------------------------------------------------------------------------
def init_params(key):
    k1, k2, k3 = jax.random.split(key, 3)
    # add_block Linear: kaiming_normal_(mode='fan_out', a=0) -> std = sqrt(2/out_features)
    w1 = (jnp.sqrt(2.0 / LINEAR)
          * jax.random.normal(k1, (PART, C_FEAT, LINEAR), dtype=jnp.float32))
    b1 = jnp.zeros((PART, LINEAR), dtype=jnp.float32)
    # BatchNorm1d: gamma ~ N(1, 0.02), beta = 0, running stats mean=0 var=1 (fresh)
    gamma = 1.0 + 0.02 * jax.random.normal(k2, (PART, LINEAR), dtype=jnp.float32)
    beta = jnp.zeros((PART, LINEAR), dtype=jnp.float32)
    # classifier Linear: weight ~ N(0, 0.001), bias = 0
    w2 = 0.001 * jax.random.normal(k3, (PART, LINEAR, NUM_CLASSES), dtype=jnp.float32)
    b2 = jnp.zeros((PART, NUM_CLASSES), dtype=jnp.float32)
    return dict(w1=w1, b1=b1, gamma=gamma, beta=beta, w2=w2, b2=b2)


def fold_params(raw, binsz):
    """Fold BN(eval) and the 1/binsz pool factor into the first linear, and build the
    block-diagonal classifier weight so the classifier is one lane-dense matmul."""
    scale = raw["gamma"] / jnp.sqrt(1.0 + EPS)        # (x - 0)/sqrt(1+eps)*gamma + beta
    shift = raw["beta"]
    w1f = raw["w1"] * scale[:, None, :] * (1.0 / binsz)          # (PART, C, L)
    b1f = (raw["b1"] * scale + shift)[:, None, :]                # (PART, 1, L)
    k = raw["w2"].shape[-1]
    w2bd = jnp.zeros((PART * LINEAR, PART * k), dtype=jnp.float32)
    for p in range(PART):
        w2bd = w2bd.at[p * LINEAR:(p + 1) * LINEAR, p * k:(p + 1) * k].set(raw["w2"][p])
    b2cat = raw["b2"].reshape(1, PART * k)
    return w1f, b1f, w2bd, b2cat


# ---------------------------------------------------------------------------
# Pure-jnp reference using the ORIGINAL (unfolded) parameters and math path,
# so the folding itself is also checked.
# ---------------------------------------------------------------------------
def pcb_forward_ref(feat_nchw, raw):
    n, c, h, w = feat_nchw.shape
    pooled = feat_nchw.reshape(n, c, PART, (h // PART) * w).mean(axis=3)  # (N, C, PART)
    scale = raw["gamma"] / jnp.sqrt(1.0 + EPS)
    outs = []
    for i in range(PART):
        p = pooled[:, :, i]                          # (N, C)  == x[:, :, i]
        hd = p @ raw["w1"][i] + raw["b1"][i]         # Linear C->L
        hd = hd * scale[i] + raw["beta"][i]          # BatchNorm1d (eval)
        outs.append(hd @ raw["w2"][i] + raw["b2"][i])  # classifier L->K
    return outs


if __name__ == "__main__":
    key = jax.random.PRNGKey(0)
    kf, kp = jax.random.split(key)
    feat = jax.random.normal(kf, (N, C_FEAT, H, W), dtype=jnp.float32)

    raw = init_params(kp)
    folded = fold_params(raw, BIN)

    ys = pcb_forward_jit(feat, folded)
    ys = [jax.block_until_ready(y) for y in ys]

    ys_ref = pcb_forward_ref(feat, raw)
    assert len(ys) == PART
    for y, yr in zip(ys, ys_ref):
        assert y.shape == (N, NUM_CLASSES)
        assert jnp.allclose(y, yr, rtol=1e-3, atol=1e-3)

    print("KERNEL_OK")
</pallas_src>

<mosaic_0001>
module attributes {stable_mosaic.version = 11 : i64} {
  func.func @_pcb_fused_kernel(%arg0: i32, %arg1: memref<4x6x32x512xf32, #tpu.memory_space<vmem>>, %arg2: memref<6x512x128xf32, #tpu.memory_space<vmem>>, %arg3: memref<6x1x128xf32, #tpu.memory_space<vmem>>, %arg4: memref<768x192xf32, #tpu.memory_space<vmem>>, %arg5: memref<1x192xf32, #tpu.memory_space<vmem>>, %arg6: memref<4x192xf32, #tpu.memory_space<vmem>>, %arg7: memref<4x768xf32, #tpu.memory_space<vmem>>) attributes {dimension_semantics = [#tpu.dimension_semantics<arbitrary>], iteration_bounds = array<i64: 1>, scalar_prefetch = 0 : i64, scratch_operands = 1 : i64, tpu.core_type = #tpu.core_type<tc>, window_params = [{pipeline_mode = #tpu.pipeline_mode<synchronous>, transform_indices = @transform_0, window_bounds = array<i64: 4, 6, 32, 512>}, {pipeline_mode = #tpu.pipeline_mode<synchronous>, transform_indices = @transform_1, window_bounds = array<i64: 6, 512, 128>}, {pipeline_mode = #tpu.pipeline_mode<synchronous>, transform_indices = @transform_2, window_bounds = array<i64: 6, 1, 128>}, {pipeline_mode = #tpu.pipeline_mode<synchronous>, transform_indices = @transform_3, window_bounds = array<i64: 768, 192>}, {pipeline_mode = #tpu.pipeline_mode<synchronous>, transform_indices = @transform_4, window_bounds = array<i64: 1, 192>}, {pipeline_mode = #tpu.pipeline_mode<synchronous>, transform_indices = @transform_5, window_bounds = array<i64: 4, 192>}]} {
    %c0 = arith.constant 0 : index
    %c0_0 = arith.constant 0 : index
    %c0_1 = arith.constant 0 : index
    %c0_2 = arith.constant 0 : index
    %0 = vector.load %arg1[%c0, %c0_0, %c0_1, %c0_2] : memref<4x6x32x512xf32, #tpu.memory_space<vmem>>, vector<4x1x32x512xf32>
    %1 = vector.shape_cast %0 : vector<4x1x32x512xf32> to vector<4x32x512xf32>
    %cst = arith.constant dense<0.000000e+00> : vector<4x512xf32>
    %2 = vector.multi_reduction <add>, %1, %cst [1] : vector<4x32x512xf32> to vector<4x512xf32>
    %c0_3 = arith.constant 0 : index
    %c0_4 = arith.constant 0 : index
    %c0_5 = arith.constant 0 : index
    %3 = vector.load %arg2[%c0_3, %c0_4, %c0_5] : memref<6x512x128xf32, #tpu.memory_space<vmem>>, vector<1x512x128xf32>
    %4 = vector.shape_cast %3 : vector<1x512x128xf32> to vector<512x128xf32>
    %cst_6 = arith.constant dense<0.000000e+00> : vector<4x128xf32>
    %5 = tpu.matmul %2, %4, %cst_6 {dimension_numbers = #tpu.dot_dimension_numbers<[1], [0], [0], [1], [0, 0, 1, 1], [], []>} : vector<4x512xf32>, vector<512x128xf32>, vector<4x128xf32> -> vector<4x128xf32>
    %c0_7 = arith.constant 0 : index
    %c0_8 = arith.constant 0 : index
    %c0_9 = arith.constant 0 : index
    %6 = vector.load %arg3[%c0_7, %c0_8, %c0_9] : memref<6x1x128xf32, #tpu.memory_space<vmem>>, vector<1x1x128xf32>
    %7 = vector.shape_cast %6 : vector<1x1x128xf32> to vector<1x128xf32>
    %8 = vector.broadcast %7 : vector<1x128xf32> to vector<4x128xf32>
    %9 = arith.addf %5, %8 : vector<4x128xf32>
    %c0_10 = arith.constant 0 : index
    %c0_11 = arith.constant 0 : index
    %10 = vector.load %arg7[%c0_10, %c0_11] : memref<4x768xf32, #tpu.memory_space<vmem>>, vector<4x128xf32>
    tpu.vector_store %arg7[%c0_10, %c0_11], %9 {strides = array<i32>} : memref<4x768xf32, #tpu.memory_space<vmem>>, vector<4x128xf32>,
    %c0_12 = arith.constant 0 : index
    %c1 = arith.constant 1 : index
    %c0_13 = arith.constant 0 : index
    %c0_14 = arith.constant 0 : index
    %11 = vector.load %arg1[%c0_12, %c1, %c0_13, %c0_14] : memref<4x6x32x512xf32, #tpu.memory_space<vmem>>, vector<4x1x32x512xf32>
    %12 = vector.shape_cast %11 : vector<4x1x32x512xf32> to vector<4x32x512xf32>
    %cst_15 = arith.constant dense<0.000000e+00> : vector<4x512xf32>
    %13 = vector.multi_reduction <add>, %12, %cst_15 [1] : vector<4x32x512xf32> to vector<4x512xf32>
    %c1_16 = arith.constant 1 : index
    %c0_17 = arith.constant 0 : index
    %c0_18 = arith.constant 0 : index
    %14 = vector.load %arg2[%c1_16, %c0_17, %c0_18] : memref<6x512x128xf32, #tpu.memory_space<vmem>>, vector<1x512x128xf32>
    %15 = vector.shape_cast %14 : vector<1x512x128xf32> to vector<512x128xf32>
    %cst_19 = arith.constant dense<0.000000e+00> : vector<4x128xf32>
    %16 = tpu.matmul %13, %15, %cst_19 {dimension_numbers = #tpu.dot_dimension_numbers<[1], [0], [0], [1], [0, 0, 1, 1], [], []>} : vector<4x512xf32>, vector<512x128xf32>, vector<4x128xf32> -> vector<4x128xf32>
    %c1_20 = arith.constant 1 : index
    %c0_21 = arith.constant 0 : index
    %c0_22 = arith.constant 0 : index
    %17 = vector.load %arg3[%c1_20, %c0_21, %c0_22] : memref<6x1x128xf32, #tpu.memory_space<vmem>>, vector<1x1x128xf32>
    %18 = vector.shape_cast %17 : vector<1x1x128xf32> to vector<1x128xf32>
    %19 = vector.broadcast %18 : vector<1x128xf32> to vector<4x128xf32>
    %20 = arith.addf %16, %19 : vector<4x128xf32>
    %c0_23 = arith.constant 0 : index
    %c128 = arith.constant 128 : index
    %21 = vector.load %arg7[%c0_23, %c128] : memref<4x768xf32, #tpu.memory_space<vmem>>, vector<4x128xf32>
    tpu.vector_store %arg7[%c0_23, %c128], %20 {strides = array<i32>} : memref<4x768xf32, #tpu.memory_space<vmem>>, vector<4x128xf32>,
    %c0_24 = arith.constant 0 : index
    %c2 = arith.constant 2 : index
    %c0_25 = arith.constant 0 : index
    %c0_26 = arith.constant 0 : index
    %22 = vector.load %arg1[%c0_24, %c2, %c0_25, %c0_26] : memref<4x6x32x512xf32, #tpu.memory_space<vmem>>, vector<4x1x32x512xf32>
    %23 = vector.shape_cast %22 : vector<4x1x32x512xf32> to vector<4x32x512xf32>
    %cst_27 = arith.constant dense<0.000000e+00> : vector<4x512xf32>
    %24 = vector.multi_reduction <add>, %23, %cst_27 [1] : vector<4x32x512xf32> to vector<4x512xf32>
    %c2_28 = arith.constant 2 : index
    %c0_29 = arith.constant 0 : index
    %c0_30 = arith.constant 0 : index
    %25 = vector.load %arg2[%c2_28, %c0_29, %c0_30] : memref<6x512x128xf32, #tpu.memory_space<vmem>>, vector<1x512x128xf32>
    %26 = vector.shape_cast %25 : vector<1x512x128xf32> to vector<512x128xf32>
    %cst_31 = arith.constant dense<0.000000e+00> : vector<4x128xf32>
    %27 = tpu.matmul %24, %26, %cst_31 {dimension_numbers = #tpu.dot_dimension_numbers<[1], [0], [0], [1], [0, 0, 1, 1], [], []>} : vector<4x512xf32>, vector<512x128xf32>, vector<4x128xf32> -> vector<4x128xf32>
    %c2_32 = arith.constant 2 : index
    %c0_33 = arith.constant 0 : index
    %c0_34 = arith.constant 0 : index
    %28 = vector.load %arg3[%c2_32, %c0_33, %c0_34] : memref<6x1x128xf32, #tpu.memory_space<vmem>>, vector<1x1x128xf32>
    %29 = vector.shape_cast %28 : vector<1x1x128xf32> to vector<1x128xf32>
    %30 = vector.broadcast %29 : vector<1x128xf32> to vector<4x128xf32>
    %31 = arith.addf %27, %30 : vector<4x128xf32>
    %c0_35 = arith.constant 0 : index
    %c256 = arith.constant 256 : index
    %32 = vector.load %arg7[%c0_35, %c256] : memref<4x768xf32, #tpu.memory_space<vmem>>, vector<4x128xf32>
    tpu.vector_store %arg7[%c0_35, %c256], %31 {strides = array<i32>} : memref<4x768xf32, #tpu.memory_space<vmem>>, vector<4x128xf32>,
    %c0_36 = arith.constant 0 : index
    %c3 = arith.constant 3 : index
    %c0_37 = arith.constant 0 : index
    %c0_38 = arith.constant 0 : index
    %33 = vector.load %arg1[%c0_36, %c3, %c0_37, %c0_38] : memref<4x6x32x512xf32, #tpu.memory_space<vmem>>, vector<4x1x32x512xf32>
    %34 = vector.shape_cast %33 : vector<4x1x32x512xf32> to vector<4x32x512xf32>
    %cst_39 = arith.constant dense<0.000000e+00> : vector<4x512xf32>
    %35 = vector.multi_reduction <add>, %34, %cst_39 [1] : vector<4x32x512xf32> to vector<4x512xf32>
    %c3_40 = arith.constant 3 : index
    %c0_41 = arith.constant 0 : index
    %c0_42 = arith.constant 0 : index
    %36 = vector.load %arg2[%c3_40, %c0_41, %c0_42] : memref<6x512x128xf32, #tpu.memory_space<vmem>>, vector<1x512x128xf32>
    %37 = vector.shape_cast %36 : vector<1x512x128xf32> to vector<512x128xf32>
    %cst_43 = arith.constant dense<0.000000e+00> : vector<4x128xf32>
    %38 = tpu.matmul %35, %37, %cst_43 {dimension_numbers = #tpu.dot_dimension_numbers<[1], [0], [0], [1], [0, 0, 1, 1], [], []>} : vector<4x512xf32>, vector<512x128xf32>, vector<4x128xf32> -> vector<4x128xf32>
    %c3_44 = arith.constant 3 : index
    %c0_45 = arith.constant 0 : index
    %c0_46 = arith.constant 0 : index
    %39 = vector.load %arg3[%c3_44, %c0_45, %c0_46] : memref<6x1x128xf32, #tpu.memory_space<vmem>>, vector<1x1x128xf32>
    %40 = vector.shape_cast %39 : vector<1x1x128xf32> to vector<1x128xf32>
    %41 = vector.broadcast %40 : vector<1x128xf32> to vector<4x128xf32>
    %42 = arith.addf %38, %41 : vector<4x128xf32>
    %c0_47 = arith.constant 0 : index
    %c384 = arith.constant 384 : index
    %43 = vector.load %arg7[%c0_47, %c384] : memref<4x768xf32, #tpu.memory_space<vmem>>, vector<4x128xf32>
    tpu.vector_store %arg7[%c0_47, %c384], %42 {strides = array<i32>} : memref<4x768xf32, #tpu.memory_space<vmem>>, vector<4x128xf32>,
    %c0_48 = arith.constant 0 : index
    %c4 = arith.constant 4 : index
    %c0_49 = arith.constant 0 : index
    %c0_50 = arith.constant 0 : index
    %44 = vector.load %arg1[%c0_48, %c4, %c0_49, %c0_50] : memref<4x6x32x512xf32, #tpu.memory_space<vmem>>, vector<4x1x32x512xf32>
    %45 = vector.shape_cast %44 : vector<4x1x32x512xf32> to vector<4x32x512xf32>
    %cst_51 = arith.constant dense<0.000000e+00> : vector<4x512xf32>
    %46 = vector.multi_reduction <add>, %45, %cst_51 [1] : vector<4x32x512xf32> to vector<4x512xf32>
    %c4_52 = arith.constant 4 : index
    %c0_53 = arith.constant 0 : index
    %c0_54 = arith.constant 0 : index
    %47 = vector.load %arg2[%c4_52, %c0_53, %c0_54] : memref<6x512x128xf32, #tpu.memory_space<vmem>>, vector<1x512x128xf32>
    %48 = vector.shape_cast %47 : vector<1x512x128xf32> to vector<512x128xf32>
    %cst_55 = arith.constant dense<0.000000e+00> : vector<4x128xf32>
    %49 = tpu.matmul %46, %48, %cst_55 {dimension_numbers = #tpu.dot_dimension_numbers<[1], [0], [0], [1], [0, 0, 1, 1], [], []>} : vector<4x512xf32>, vector<512x128xf32>, vector<4x128xf32> -> vector<4x128xf32>
    %c4_56 = arith.constant 4 : index
    %c0_57 = arith.constant 0 : index
    %c0_58 = arith.constant 0 : index
    %50 = vector.load %arg3[%c4_56, %c0_57, %c0_58] : memref<6x1x128xf32, #tpu.memory_space<vmem>>, vector<1x1x128xf32>
    %51 = vector.shape_cast %50 : vector<1x1x128xf32> to vector<1x128xf32>
    %52 = vector.broadcast %51 : vector<1x128xf32> to vector<4x128xf32>
    %53 = arith.addf %49, %52 : vector<4x128xf32>
    %c0_59 = arith.constant 0 : index
    %c512 = arith.constant 512 : index
    %54 = vector.load %arg7[%c0_59, %c512] : memref<4x768xf32, #tpu.memory_space<vmem>>, vector<4x128xf32>
    tpu.vector_store %arg7[%c0_59, %c512], %53 {strides = array<i32>} : memref<4x768xf32, #tpu.memory_space<vmem>>, vector<4x128xf32>,
    %c0_60 = arith.constant 0 : index
    %c5 = arith.constant 5 : index
    %c0_61 = arith.constant 0 : index
    %c0_62 = arith.constant 0 : index
    %55 = vector.load %arg1[%c0_60, %c5, %c0_61, %c0_62] : memref<4x6x32x512xf32, #tpu.memory_space<vmem>>, vector<4x1x32x512xf32>
    %56 = vector.shape_cast %55 : vector<4x1x32x512xf32> to vector<4x32x512xf32>
    %cst_63 = arith.constant dense<0.000000e+00> : vector<4x512xf32>
    %57 = vector.multi_reduction <add>, %56, %cst_63 [1] : vector<4x32x512xf32> to vector<4x512xf32>
    %c5_64 = arith.constant 5 : index
    %c0_65 = arith.constant 0 : index
    %c0_66 = arith.constant 0 : index
    %58 = vector.load %arg2[%c5_64, %c0_65, %c0_66] : memref<6x512x128xf32, #tpu.memory_space<vmem>>, vector<1x512x128xf32>
    %59 = vector.shape_cast %58 : vector<1x512x128xf32> to vector<512x128xf32>
    %cst_67 = arith.constant dense<0.000000e+00> : vector<4x128xf32>
    %60 = tpu.matmul %57, %59, %cst_67 {dimension_numbers = #tpu.dot_dimension_numbers<[1], [0], [0], [1], [0, 0, 1, 1], [], []>} : vector<4x512xf32>, vector<512x128xf32>, vector<4x128xf32> -> vector<4x128xf32>
    %c5_68 = arith.constant 5 : index
    %c0_69 = arith.constant 0 : index
    %c0_70 = arith.constant 0 : index
    %61 = vector.load %arg3[%c5_68, %c0_69, %c0_70] : memref<6x1x128xf32, #tpu.memory_space<vmem>>, vector<1x1x128xf32>
    %62 = vector.shape_cast %61 : vector<1x1x128xf32> to vector<1x128xf32>
    %63 = vector.broadcast %62 : vector<1x128xf32> to vector<4x128xf32>
    %64 = arith.addf %60, %63 : vector<4x128xf32>
    %c0_71 = arith.constant 0 : index
    %c640 = arith.constant 640 : index
    %65 = vector.load %arg7[%c0_71, %c640] : memref<4x768xf32, #tpu.memory_space<vmem>>, vector<4x128xf32>
    tpu.vector_store %arg7[%c0_71, %c640], %64 {strides = array<i32>} : memref<4x768xf32, #tpu.memory_space<vmem>>, vector<4x128xf32>,
    %c0_72 = arith.constant 0 : index
    %c0_73 = arith.constant 0 : index
    %66 = vector.load %arg7[%c0_72, %c0_73] : memref<4x768xf32, #tpu.memory_space<vmem>>, vector<4x768xf32>
    %c0_74 = arith.constant 0 : index
    %c0_75 = arith.constant 0 : index
    %67 = vector.load %arg4[%c0_74, %c0_75] : memref<768x192xf32, #tpu.memory_space<vmem>>, vector<768x192xf32>
    %cst_76 = arith.constant dense<0.000000e+00> : vector<4x192xf32>
    %68 = tpu.matmul %66, %67, %cst_76 {dimension_numbers = #tpu.dot_dimension_numbers<[1], [0], [0], [1], [0, 0, 1, 1], [], []>} : vector<4x768xf32>, vector<768x192xf32>, vector<4x192xf32> -> vector<4x192xf32>
    %c0_77 = arith.constant 0 : index
    %c0_78 = arith.constant 0 : index
    %69 = vector.load %arg5[%c0_77, %c0_78] : memref<1x192xf32, #tpu.memory_space<vmem>>, vector<1x192xf32>
    %70 = vector.broadcast %69 : vector<1x192xf32> to vector<4x192xf32>
    %71 = arith.addf %68, %70 : vector<4x192xf32>
    %c0_79 = arith.constant 0 : index
    %c0_80 = arith.constant 0 : index
    %72 = vector.load %arg6[%c0_79, %c0_80] : memref<4x192xf32, #tpu.memory_space<vmem>>, vector<4x192xf32>
    tpu.vector_store %arg6[%c0_79, %c0_80], %71 {strides = array<i32>} : memref<4x192xf32, #tpu.memory_space<vmem>>, vector<4x192xf32>,
    return
  }
  func.func @transform_0(%arg0: i32) -> (i32, i32, i32, i32) {
    %c0_i32 = arith.constant 0 : i32
    %c0_i32_0 = arith.constant 0 : i32
    %c0_i32_1 = arith.constant 0 : i32
    %c0_i32_2 = arith.constant 0 : i32
    %c0_i32_3 = arith.constant 0 : i32
    return %c0_i32, %c0_i32_0, %c0_i32_1, %c0_i32_2 : i32, i32, i32, i32
  }
  func.func @transform_1(%arg0: i32) -> (i32, i32, i32) {
    %c0_i32 = arith.constant 0 : i32
    %c0_i32_0 = arith.constant 0 : i32
    %c0_i32_1 = arith.constant 0 : i32
    %c0_i32_2 = arith.constant 0 : i32
    return %c0_i32, %c0_i32_0, %c0_i32_1 : i32, i32, i32
  }
  func.func @transform_2(%arg0: i32) -> (i32, i32, i32) {
    %c0_i32 = arith.constant 0 : i32
    %c0_i32_0 = arith.constant 0 : i32
    %c0_i32_1 = arith.constant 0 : i32
    %c0_i32_2 = arith.constant 0 : i32
    return %c0_i32, %c0_i32_0, %c0_i32_1 : i32, i32, i32
  }
  func.func @transform_3(%arg0: i32) -> (i32, i32) {
    %c0_i32 = arith.constant 0 : i32
    %c0_i32_0 = arith.constant 0 : i32
    %c0_i32_1 = arith.constant 0 : i32
    return %c0_i32, %c0_i32_0 : i32, i32
  }
  func.func @transform_4(%arg0: i32) -> (i32, i32) {
    %c0_i32 = arith.constant 0 : i32
    %c0_i32_0 = arith.constant 0 : i32
    %c0_i32_1 = arith.constant 0 : i32
    return %c0_i32, %c0_i32_0 : i32, i32
  }
  func.func @transform_5(%arg0: i32) -> (i32, i32) {
    %c0_i32 = arith.constant 0 : i32
    %c0_i32_0 = arith.constant 0 : i32
    %c0_i32_1 = arith.constant 0 : i32
    return %c0_i32, %c0_i32_0 : i32, i32
  }
}

</mosaic_0001>

<bundles_post_ra>
// kernel: pcb_forward.1
= control target key start
LH: loop header
LB: loop body
LE: loop exit
PB: predicated region body
PF: predicated region fallthrough
CT: control target
= control target key end

     0   :  { %10 = vsyncpa [#allocation4], 0  ;;  %s3756_s0 = inlined_call_operand.hbm [shape: f32[4,6,32,512], index: 0, kind: input, shape index: {}]   ;;  %s3757_s1 = inlined_call_operand.hbm [shape: f32[6,512,128], index: 1, kind: input, shape index: {}]   ;;  %s3758_s2 = inlined_call_operand.hbm [shape: f32[6,1,128], index: 2, kind: input, shape index: {}]   ;;  %s3759_s3 = inlined_call_operand.vmem [shape: f32[768,192], index: 3, kind: input, shape index: {}]   ;;  %s3760_s4 = inlined_call_operand.hbm [shape: f32[1,192], index: 4, kind: input, shape index: {}]   ;;  %s3761_s5 = inlined_call_operand.vmem [shape: f32[4,192], index: 5, kind: output, shape index: {}]  }
   0x1   :  { %11 = vsyncpa [#allocation6], 0  ;;  %s30_s20 = sshll.u32 %s3757_s1, 4  ;;  %s31_s20 = int_to_ptr.hbm [resolvable:$true] %s30_s20 }
   0x2   :  { %12 = vsyncpa [#allocation9], 0  ;;  %s3028_s21 = smov [#allocation5]   ;;  %s17_s25 = sshll.u32 %s3756_s0, 4  ;;  %s18_s25 = int_to_ptr.hbm [resolvable:$true] %s17_s25 }
   0x3   :  { %s32_s22 = sshll.u32 %s3028_s21, 4  ;;  %s3029_s26 = smov 128   ;;  %s33_s22 = int_to_ptr.vmem [resolvable:$true] %s32_s22 }
   0x4   :  { %s3030_s27 = smov 8   ;;  %s3031_s28 = smov [#allocation3]  }
   0x5   :  { %38 = dma.hbm_to_vmem [thread:$0]  %s31_s20, 49152, %s33_s22, [#allocation6], %s3029_s26, %s3029_s26, %s3030_s27  }
   0x6   :  { %s19_s29 = sshll.u32 %s3031_s28, 4  ;;  %s3032_s30 = smov 512   ;;  %s20_s29 = int_to_ptr.vmem [resolvable:$true] %s19_s29 }
   0x7   :  { %s3033_s6 = smov 32   ;;  %s43_s8 = sshll.u32 %s3758_s2, 4  ;;  %s44_s8 = int_to_ptr.hbm [resolvable:$true] %s43_s8 }
   0x8   :  { %25 = dma.hbm_to_vmem [thread:$0]  %s18_s25, 49152, %s20_s29, [#allocation4], %s3032_s30, %s3032_s30, %s3033_s6  }
   0x9   :  { %s3034_s9 = smov [#allocation7]   ;;  %s59_s12 = sshll.u32 %s3760_s4, 4  ;;  %s60_s12 = int_to_ptr.hbm [resolvable:$true] %s59_s12 }
   0xa   :  { %s45_s10 = sshll.u32 %s3034_s9, 4  ;;  %s3035_s13 = smov 16   ;;  %s46_s10 = int_to_ptr.vmem [resolvable:$true] %s45_s10 }
   0xb   :  { %s3036_s14 = smov 1   ;;  %s3037_s15 = smov [#allocation8]  }
   0xc   :  { %51 = dma.hbm_to_vmem [thread:$0]  %s44_s8, 96, %s46_s10, [#allocation6], %s3035_s13, %s3035_s13, %s3036_s14  }
   0xd   :  { %s61_s16 = sshll.u32 %s3037_s15, 4  ;;  %s62_s16 = int_to_ptr.vmem [resolvable:$true] %s61_s16 }
   0xe   :  { %64 = dma.hbm_to_vmem [thread:$0]  %s60_s12, 32, %s62_s16, [#allocation9]  }
   0xf   :  { %3022 = dma.done.wait [#allocation4], 49152  }
  0x10   :  { %3023 = vsyncadd [#allocation4], 4294918144 }
  0x11   :  { %3024 = dma.done.wait [#allocation6], 49248  }
  0x12   :  { %3025 = vsyncadd [#allocation6], 4294918048 }
  0x13   :  { %3026 = dma.done.wait [#allocation9], 32  }
  0x14   :  { %3027 = vsyncadd [#allocation9], 4294967264  ;;  %v304_v0 = vld [vmem:[#allocation5 + $0x78] sm:$0xff]  ;;  %v303_v3 = vld [vmem:[#allocation5 + $0x70] sm:$0xff]  ;;  %vm373_vm0 = vcmask 1041409   ;;  %vm375_vm1 = vcmask 1042434  }
  0x15   :  { %v320_v1 = vld [vmem:[#allocation5 + $0xf8] sm:$0xff]  ;;  %392 = vmatpush.msra.mxu0 %v304_v0  ;;  %v319_v4 = vld [vmem:[#allocation5 + $0xf0] sm:$0xff]  ;;  %v302_v7 = vld [vmem:[#allocation5 + $0x68] sm:$0xff]  ;;  %vm377_vm2 = vcmask 1043459   ;;  %vm2897_vm3 = vcmask 1043456   ;;  %vm2900_vm4 = vcmask 523268  }
  0x16   :  { %v336_v2 = vld [vmem:[#allocation5 + $0x178] sm:$0xff]  ;;  %412 = vmatpush.msra.mxu1 %v320_v1  ;;  %v335_v5 = vld [vmem:[#allocation5 + $0x170] sm:$0xff]  ;;  %v318_v8 = vld [vmem:[#allocation5 + $0xe8] sm:$0xff] }
  0x17   :  { %432 = vmatpush.msra.mxu2 %v336_v2  ;;  %v352_v6 = vld [vmem:[#allocation5 + $0x1f8] sm:$0xff]  ;;  %393 = vmatpush.msra.mxu0 %v303_v3  ;;  %v334_v9 = vld [vmem:[#allocation5 + $0x168] sm:$0xff]  ;;  %v351_v10 = vld [vmem:[#allocation5 + $0x1f0] sm:$0xff] }
  0x18   :  { %413 = vmatpush.msra.mxu1 %v319_v4  ;;  %452 = vmatpush.msra.mxu3 %v352_v6  ;;  %v301_v11 = vld [vmem:[#allocation5 + $0x60] sm:$0xff]  ;;  %v350_v14 = vld [vmem:[#allocation5 + $0x1e8] sm:$0xff]  ;;  %v300_v15 = vld [vmem:[#allocation5 + $0x58] sm:$0xff] }
  0x19   :  { %433 = vmatpush.msra.mxu2 %v335_v5  ;;  %v317_v12 = vld [vmem:[#allocation5 + $0xe0] sm:$0xff]  ;;  %394 = vmatpush.msra.mxu0 %v302_v7  ;;  %v316_v16 = vld [vmem:[#allocation5 + $0xd8] sm:$0xff]  ;;  %v299_v19 = vld [vmem:[#allocation5 + $0x50] sm:$0xff] }
  0x1a   :  { %414 = vmatpush.msra.mxu1 %v318_v8  ;;  %v333_v13 = vld [vmem:[#allocation5 + $0x160] sm:$0xff]  ;;  %453 = vmatpush.msra.mxu3 %v351_v10  ;;  %v332_v17 = vld [vmem:[#allocation5 + $0x158] sm:$0xff]  ;;  %v315_v20 = vld [vmem:[#allocation5 + $0xd0] sm:$0xff] }
  0x1b   :  { %434 = vmatpush.msra.mxu2 %v334_v9  ;;  %395 = vmatpush.msra.mxu0 %v301_v11  ;;  %v349_v18 = vld [vmem:[#allocation5 + $0x1e0] sm:$0xff]  ;;  %v331_v21 = vld [vmem:[#allocation5 + $0x150] sm:$0xff]  ;;  %v348_v22 = vld [vmem:[#allocation5 + $0x1d8] sm:$0xff] }
  0x1c   :  { %415 = vmatpush.msra.mxu1 %v317_v12  ;;  %454 = vmatpush.msra.mxu3 %v350_v14  ;;  %v298_v23 = vld [vmem:[#allocation5 + $0x48] sm:$0xff]  ;;  %v347_v26 = vld [vmem:[#allocation5 + $0x1d0] sm:$0xff]  ;;  %v297_v27 = vld [vmem:[#allocation5 + $0x40] sm:$0xff] }
  0x1d   :  { %435 = vmatpush.msra.mxu2 %v333_v13  ;;  %396 = vmatpush.msra.mxu0 %v300_v15  ;;  %v314_v24 = vld [vmem:[#allocation5 + $0xc8] sm:$0xff]  ;;  %v313_v28 = vld [vmem:[#allocation5 + $0xc0] sm:$0xff]  ;;  %v296_v31 = vld [vmem:[#allocation5 + $0x38] sm:$0xff] }
  0x1e   :  { %416 = vmatpush.msra.mxu1 %v316_v16  ;;  %455 = vmatpush.msra.mxu3 %v349_v18  ;;  %v330_v25 = vld [vmem:[#allocation5 + $0x148] sm:$0xff]  ;;  %v329_v29 = vld [vmem:[#allocation5 + $0x140] sm:$0xff]  ;;  %v312_v32 = vld [vmem:[#allocation5 + $0xb8] sm:$0xff] }
  0x1f   :  { %436 = vmatpush.msra.mxu2 %v332_v17  ;;  %397 = vmatpush.msra.mxu0 %v299_v19  ;;  %v346_v30 = vld [vmem:[#allocation5 + $0x1c8] sm:$0xff]  ;;  %v328_v33 = vld [vmem:[#allocation5 + $0x138] sm:$0xff]  ;;  %v345_v34 = vld [vmem:[#allocation5 + $0x1c0] sm:$0xff] }
  0x20   :  { %417 = vmatpush.msra.mxu1 %v315_v20  ;;  %456 = vmatpush.msra.mxu3 %v348_v22  ;;  %v295_v35 = vld [vmem:[#allocation5 + $0x30] sm:$0xff]  ;;  %v344_v38 = vld [vmem:[#allocation5 + $0x1b8] sm:$0xff]  ;;  %v294_v39 = vld [vmem:[#allocation5 + $0x28] sm:$0xff] }
  0x21   :  { %437 = vmatpush.msra.mxu2 %v331_v21  ;;  %398 = vmatpush.msra.mxu0 %v298_v23  ;;  %v311_v36 = vld [vmem:[#allocation5 + $0xb0] sm:$0xff]  ;;  %v310_v40 = vld [vmem:[#allocation5 + $0xa8] sm:$0xff]  ;;  %v293_v43 = vld [vmem:[#allocation5 + $0x20] sm:$0xff] }
  0x22   :  { %418 = vmatpush.msra.mxu1 %v314_v24  ;;  %457 = vmatpush.msra.mxu3 %v347_v26  ;;  %v327_v37 = vld [vmem:[#allocation5 + $0x130] sm:$0xff]  ;;  %v326_v41 = vld [vmem:[#allocation5 + $0x128] sm:$0xff]  ;;  %v309_v44 = vld [vmem:[#allocation5 + $0xa0] sm:$0xff] }
  0x23   :  { %438 = vmatpush.msra.mxu2 %v330_v25  ;;  %399 = vmatpush.msra.mxu0 %v297_v27  ;;  %v343_v42 = vld [vmem:[#allocation5 + $0x1b0] sm:$0xff]  ;;  %v325_v45 = vld [vmem:[#allocation5 + $0x120] sm:$0xff]  ;;  %v342_v46 = vld [vmem:[#allocation5 + $0x1a8] sm:$0xff] }
  0x24   :  { %419 = vmatpush.msra.mxu1 %v313_v28  ;;  %458 = vmatpush.msra.mxu3 %v346_v30  ;;  %v292_v47 = vld [vmem:[#allocation5 + $0x18] sm:$0xff]  ;;  %v341_v50 = vld [vmem:[#allocation5 + $0x1a0] sm:$0xff]  ;;  %v291_v51 = vld [vmem:[#allocation5 + $0x10] sm:$0xff] }
  0x25   :  { %439 = vmatpush.msra.mxu2 %v329_v29  ;;  %400 = vmatpush.msra.mxu0 %v296_v31  ;;  %v308_v48 = vld [vmem:[#allocation5 + $0x98] sm:$0xff]  ;;  %v307_v52 = vld [vmem:[#allocation5 + $0x90] sm:$0xff]  ;;  %v290_v55 = vld [vmem:[#allocation5 + $0x8] sm:$0xff] }
  0x26   :  { %420 = vmatpush.msra.mxu1 %v312_v32  ;;  %459 = vmatpush.msra.mxu3 %v345_v34  ;;  %v324_v49 = vld [vmem:[#allocation5 + $0x118] sm:$0xff]  ;;  %v323_v53 = vld [vmem:[#allocation5 + $0x110] sm:$0xff]  ;;  %v306_v56 = vld [vmem:[#allocation5 + $0x88] sm:$0xff] }
  0x27   :  { %440 = vmatpush.msra.mxu2 %v328_v33  ;;  %401 = vmatpush.msra.mxu0 %v295_v35  ;;  %v340_v54 = vld [vmem:[#allocation5 + $0x198] sm:$0xff]  ;;  %v322_v57 = vld [vmem:[#allocation5 + $0x108] sm:$0xff]  ;;  %v339_v58 = vld [vmem:[#allocation5 + $0x190] sm:$0xff] }
  0x28   :  { %421 = vmatpush.msra.mxu1 %v311_v36  ;;  %460 = vmatpush.msra.mxu3 %v344_v38  ;;  %v289_v59 = vld [vmem:[#allocation5] sm:$0xff]  ;;  %v338_v62 = vld [vmem:[#allocation5 + $0x188] sm:$0xff]  ;;  %v698_v63 = vld [vmem:[#allocation5 + $0x278] sm:$0xff] }
  0x29   :  { %441 = vmatpush.msra.mxu2 %v327_v37  ;;  %402 = vmatpush.msra.mxu0 %v294_v39  ;;  %v305_v60 = vld [vmem:[#allocation5 + $0x80] sm:$0xff]  ;;  %v714_v0 = vld [vmem:[#allocation5 + $0x2f8] sm:$0xff]  ;;  %v697_v3 = vld [vmem:[#allocation5 + $0x270] sm:$0xff] }
  0x2a   :  { %422 = vmatpush.msra.mxu1 %v310_v40  ;;  %461 = vmatpush.msra.mxu3 %v343_v42  ;;  %v321_v61 = vld [vmem:[#allocation5 + $0x100] sm:$0xff]  ;;  %v730_v1 = vld [vmem:[#allocation5 + $0x378] sm:$0xff]  ;;  %v713_v4 = vld [vmem:[#allocation5 + $0x2f0] sm:$0xff] }
  0x2b   :  { %442 = vmatpush.msra.mxu2 %v326_v41  ;;  %403 = vmatpush.msra.mxu0 %v293_v43  ;;  %v337_v2 = vld [vmem:[#allocation5 + $0x180] sm:$0xff]  ;;  %v729_v5 = vld [vmem:[#allocation5 + $0x370] sm:$0xff]  ;;  %v746_v6 = vld [vmem:[#allocation5 + $0x3f8] sm:$0xff] }
  0x2c   :  { %423 = vmatpush.msra.mxu1 %v309_v44  ;;  %462 = vmatpush.msra.mxu3 %v342_v46  ;;  %v696_v7 = vld [vmem:[#allocation5 + $0x268] sm:$0xff]  ;;  %v745_v10 = vld [vmem:[#allocation5 + $0x3f0] sm:$0xff]  ;;  %v695_v11 = vld [vmem:[#allocation5 + $0x260] sm:$0xff] }
  0x2d   :  { %443 = vmatpush.msra.mxu2 %v325_v45  ;;  %404 = vmatpush.msra.mxu0 %v292_v47  ;;  %v712_v8 = vld [vmem:[#allocation5 + $0x2e8] sm:$0xff]  ;;  %v711_v12 = vld [vmem:[#allocation5 + $0x2e0] sm:$0xff]  ;;  %v694_v15 = vld [vmem:[#allocation5 + $0x258] sm:$0xff] }
  0x2e   :  { %424 = vmatpush.msra.mxu1 %v308_v48  ;;  %463 = vmatpush.msra.mxu3 %v341_v50  ;;  %v728_v9 = vld [vmem:[#allocation5 + $0x368] sm:$0xff]  ;;  %v727_v13 = vld [vmem:[#allocation5 + $0x360] sm:$0xff]  ;;  %v710_v16 = vld [vmem:[#allocation5 + $0x2d8] sm:$0xff] }
  0x2f   :  { %444 = vmatpush.msra.mxu2 %v324_v49  ;;  %405 = vmatpush.msra.mxu0 %v291_v51  ;;  %v744_v14 = vld [vmem:[#allocation5 + $0x3e8] sm:$0xff]  ;;  %v726_v17 = vld [vmem:[#allocation5 + $0x358] sm:$0xff]  ;;  %v743_v18 = vld [vmem:[#allocation5 + $0x3e0] sm:$0xff] }
  0x30   :  { %425 = vmatpush.msra.mxu1 %v307_v52  ;;  %464 = vmatpush.msra.mxu3 %v340_v54  ;;  %v83_v19 = vld [vmem:[#allocation3 + $0x10] sm:$0xff]  ;;  %v742_v28 = vld [vmem:[#allocation5 + $0x3d8] sm:$0xff]  ;;  %v692_v33 = vld [vmem:[#allocation5 + $0x248] sm:$0xff] }
  0x31   :  { %445 = vmatpush.msra.mxu2 %v323_v53  ;;  %406 = vmatpush.msra.mxu0 %v290_v55  ;;  %v87_v20 = vld [vmem:[#allocation3 + $0x30] sm:$0xff]  ;;  %v708_v34 = vld [vmem:[#allocation5 + $0x2c8] sm:$0xff]  ;;  %v691_v46 = vld [vmem:[#allocation5 + $0x240] sm:$0xff] }
  0x32   :  { %426 = vmatpush.msra.mxu1 %v306_v56  ;;  %465 = vmatpush.msra.mxu3 %v339_v58  ;;  %v91_v21 = vld [vmem:[#allocation3 + $0x50] sm:$0xff]  ;;  %v163_v26 = vadd.f32 %v87_v20, %v83_v19  ;;  %v724_v39 = vld [vmem:[#allocation5 + $0x348] sm:$0xff]  ;;  %v707_v47 = vld [vmem:[#allocation5 + $0x2c0] sm:$0xff] }
  0x33   :  { %446 = vmatpush.msra.mxu2 %v322_v57  ;;  %407 = vmatpush.msra.mxu0 %v289_v59  ;;  %v693_v22 = vld [vmem:[#allocation5 + $0x250] sm:$0xff]  ;;  %v723_v51 = vld [vmem:[#allocation5 + $0x340] sm:$0xff]  ;;  %v740_v52 = vld [vmem:[#allocation5 + $0x3c8] sm:$0xff] }
  0x34   :  { %427 = vmatpush.msra.mxu1 %v305_v60  ;;  %466 = vmatpush.msra.mxu3 %v338_v62  ;;  %v709_v23 = vld [vmem:[#allocation5 + $0x2d0] sm:$0xff]  ;;  %v164_v38 = vadd.f32 %v163_v26, %v91_v21  ;;  %v81_v56 = vld [vmem:[#allocation3] sm:$0xff]  ;;  %v690_v57 = vld [vmem:[#allocation5 + $0x238] sm:$0xff] }
  0x35   :  { %447 = vmatpush.msra.mxu2 %v321_v61  ;;  %784 = vmatpush.msrb.mxu0 %v698_v63  ;;  %v99_v24 = vld [vmem:[#allocation3 + $0x310] sm:$0xff]  ;;  %v706_v58 = vld [vmem:[#allocation5 + $0x2b8] sm:$0xff]  ;;  %v85_v61 = vld [vmem:[#allocation3 + $0x20] sm:$0xff] }
  0x36   :  { %804 = vmatpush.msrb.mxu1 %v714_v0  ;;  %467 = vmatpush.msra.mxu3 %v337_v2  ;;  %v103_v25 = vld [vmem:[#allocation3 + $0x330] sm:$0xff]  ;;  %v89_v62 = vld [vmem:[#allocation3 + $0x40] sm:$0xff]  ;;  %v722_v63 = vld [vmem:[#allocation5 + $0x338] sm:$0xff] }
  0x37   :  { %824 = vmatpush.msrb.mxu2 %v730_v1  ;;  %785 = vmatpush.msrb.mxu0 %v697_v3  ;;  %v725_v27 = vld [vmem:[#allocation5 + $0x350] sm:$0xff]  ;;  %v199_v32 = vadd.f32 %v103_v25, %v99_v24  ;;  %v739_v0 = vld [vmem:[#allocation5 + $0x3c0] sm:$0xff]  ;;  %v738_v26 = vld [vmem:[#allocation5 + $0x3b8] sm:$0xff] }
  0x38   :  { %805 = vmatpush.msrb.mxu1 %v713_v4  ;;  %844 = vmatpush.msrb.mxu3 %v746_v6  ;;  %v95_v29 = vld [vmem:[#allocation3 + $0x70] sm:$0xff]  ;;  %v97_v3 = vld [vmem:[#allocation3 + $0x300] sm:$0xff]  ;;  %v145_v6 = vadd.f32 %v85_v61, %v81_v56  ;;  %vm2901_vm5 = vmor %vm2900_vm4, %vm2897_vm3 }
  0x39   :  { %825 = vmatpush.msrb.mxu2 %v729_v5  ;;  %786 = vmatpush.msrb.mxu0 %v696_v7  ;;  %v107_v30 = vld [vmem:[#allocation3 + $0x350] sm:$0xff]  ;;  %v165_v49 = vadd.f32 %v164_v38, %v95_v29  ;;  %v101_v4 = vld [vmem:[#allocation3 + $0x320] sm:$0xff] }
  0x3a   :  { %806 = vmatpush.msrb.mxu1 %v712_v8  ;;  %845 = vmatpush.msrb.mxu3 %v745_v10  ;;  %v115_v31 = vld [vmem:[#allocation3 + $0x610] sm:$0xff]  ;;  %v200_v44 = vadd.f32 %v199_v32, %v107_v30  ;;  %v105_v5 = vld [vmem:[#allocation3 + $0x340] sm:$0xff] }
  0x3b   :  { %826 = vmatpush.msrb.mxu2 %v728_v9  ;;  %787 = vmatpush.msrb.mxu0 %v695_v11  ;;  %v111_v35 = vld [vmem:[#allocation3 + $0x370] sm:$0xff]  ;;  %v166_v59 = vrot.slane %v165_v49, 4  ;;  %v93_v9 = vld [vmem:[#allocation3 + $0x60] sm:$0xff] }
  0x3c   :  { %807 = vmatpush.msrb.mxu1 %v711_v12  ;;  %846 = vmatpush.msrb.mxu3 %v744_v14  ;;  %v119_v36 = vld [vmem:[#allocation3 + $0x630] sm:$0xff]  ;;  %v201_v54 = vadd.f32 %v200_v44, %v111_v35  ;;  %v113_v10 = vld [vmem:[#allocation3 + $0x600] sm:$0xff]  ;;  %v181_v12 = vadd.f32 %v101_v4, %v97_v3  ;;  %v720_v35 = vld [vmem:[#allocation5 + $0x328] sm:$0xff] }
  0x3d   :  { %827 = vmatpush.msrb.mxu2 %v727_v13  ;;  %v123_v37 = vld [vmem:[#allocation3 + $0x650] sm:$0xff]  ;;  %788 = vmatpush.msrb.mxu0 %v694_v15  ;;  %v235_v45 = vadd.f32 %v119_v36, %v115_v31  ;;  %v167_v7 = vadd.f32 %v166_v59, %v165_v49  ;;  %v117_v11 = vld [vmem:[#allocation3 + $0x620] sm:$0xff]  ;;  %v88_v59 = vld [vmem:[#allocation3 + $0x38] sm:$0xff] }
  0x3e   :  { %808 = vmatpush.msrb.mxu1 %v710_v16  ;;  %v741_v40 = vld [vmem:[#allocation5 + $0x3d0] sm:$0xff]  ;;  %847 = vmatpush.msrb.mxu3 %v743_v18  ;;  %v202_v1 = vrot.slane %v201_v54, 4  ;;  %v109_v16 = vld [vmem:[#allocation3 + $0x360] sm:$0xff]  ;;  %v146_v18 = vadd.f32 %v145_v6, %v89_v62  ;;  %v217_v19 = vadd.f32 %v117_v11, %v113_v10  ;;  %v182_v25 = vadd.f32 %v181_v12, %v105_v5  ;;  %v702_v62 = vld [vmem:[#allocation5 + $0x298] sm:$0xff] }
  0x3f   :  { %v131_v41 = vld [vmem:[#allocation3 + $0x910] sm:$0xff]  ;;  %828 = vmatpush.msrb.mxu2 %v726_v17  ;;  %789 = vmatpush.msrb.mxu0 %v693_v22  ;;  %v236_v55 = vadd.f32 %v235_v45, %v123_v37  ;;  %v121_v17 = vld [vmem:[#allocation3 + $0x640] sm:$0xff]  ;;  %v168_v22 = vrot.slane %v167_v7, 2  ;;  %v96_v12 = vld [vmem:[#allocation3 + $0x78] sm:$0xff] }
  0x40   :  { %v135_v42 = vld [vmem:[#allocation3 + $0x930] sm:$0xff]  ;;  %809 = vmatpush.msrb.mxu1 %v709_v23  ;;  %848 = vmatpush.msrb.mxu3 %v742_v28  ;;  %v203_v14 = vadd.f32 %v202_v1, %v201_v54  ;;  %v125_v24 = vld [vmem:[#allocation3 + $0x660] sm:$0xff]  ;;  %v147_v31 = vadd.f32 %v146_v18, %v93_v9  ;;  %v218_v32 = vadd.f32 %v217_v19, %v121_v17 }
  0x41   :  { %v139_v43 = vld [vmem:[#allocation3 + $0x950] sm:$0xff]  ;;  %v271_v50 = vadd.f32 %v135_v42, %v131_v41  ;;  %829 = vmatpush.msrb.mxu2 %v725_v27  ;;  %790 = vmatpush.msrb.mxu0 %v692_v33  ;;  %v129_v29 = vld [vmem:[#allocation3 + $0x900] sm:$0xff]  ;;  %v688_v33 = vld [vmem:[#allocation5 + $0x228] sm:$0xff]  ;;  %v169_v36 = vadd.f32 %v168_v22, %v167_v7  ;;  %v183_v38 = vadd.f32 %v182_v25, %v109_v16 }
  0x42   :  { %v127_v48 = vld [vmem:[#allocation3 + $0x670] sm:$0xff]  ;;  %810 = vmatpush.msrb.mxu1 %v708_v34  ;;  %849 = vmatpush.msrb.mxu3 %v741_v40  ;;  %v204_v27 = vrot.slane %v203_v14, 2  ;;  %v133_v30 = vld [vmem:[#allocation3 + $0x920] sm:$0xff]  ;;  %v704_v34 = vld [vmem:[#allocation5 + $0x2a8] sm:$0xff]  ;;  %v148_v44 = vrot.slane %v147_v31, 4  ;;  %v219_v45 = vadd.f32 %v218_v32, %v125_v24 }
  0x43   :  { %v143_v53 = vld [vmem:[#allocation3 + $0x970] sm:$0xff]  ;;  %v272_v60 = vadd.f32 %v271_v50, %v139_v43  ;;  %v237_v2 = vadd.f32 %v236_v55, %v127_v48  ;;  %830 = vmatpush.msrb.mxu2 %v724_v39  ;;  %791 = vmatpush.msrb.mxu0 %v691_v46  ;;  %v687_v40 = vld [vmem:[#allocation5 + $0x220] sm:$0xff]  ;;  %v170_v48 = vrot.slane %v169_v36, 1  ;;  %v686_v50 = vld [vmem:[#allocation5 + $0x218] sm:$0xff] }
  0x44   :  { %811 = vmatpush.msrb.mxu1 %v707_v47  ;;  %v689_v13 = vld [vmem:[#allocation5 + $0x230] sm:$0xff]  ;;  %850 = vmatpush.msrb.mxu3 %v740_v52  ;;  %v703_v41 = vld [vmem:[#allocation5 + $0x2a0] sm:$0xff]  ;;  %v205_v42 = vadd.f32 %v204_v27, %v203_v14  ;;  %v736_v47 = vld [vmem:[#allocation5 + $0x3a8] sm:$0xff]  ;;  %v253_v52 = vadd.f32 %v133_v30, %v129_v29  ;;  %v149_v56 = vadd.f32 %v148_v44, %v147_v31 }
  0x45   :  { %v273_v8 = vadd.f32 %v272_v60, %v143_v53  ;;  %v238_v15 = vrot.slane %v237_v2, 4  ;;  %831 = vmatpush.msrb.mxu2 %v723_v51  ;;  %v705_v20 = vld [vmem:[#allocation5 + $0x2b0] sm:$0xff]  ;;  %792 = vmatpush.msrb.mxu0 %v690_v57  ;;  %v719_v46 = vld [vmem:[#allocation5 + $0x320] sm:$0xff]  ;;  %v184_v51 = vrot.slane %v183_v38, 4  ;;  %v220_v57 = vrot.slane %v219_v45, 4  ;;  %v92_v7 = vld [vmem:[#allocation3 + $0x58] sm:$0xff] }
  0x46   :  { %v721_v21 = vld [vmem:[#allocation5 + $0x330] sm:$0xff]  ;;  %812 = vmatpush.msrb.mxu1 %v706_v58  ;;  %851 = vmatpush.msrb.mxu3 %v739_v0  ;;  %v206_v53 = vrot.slane %v205_v42, 1  ;;  %v137_v55 = vld [vmem:[#allocation3 + $0x940] sm:$0xff]  ;;  %v84_v58 = vld [vmem:[#allocation3 + $0x18] sm:$0xff]  ;;  %v171_v60 = vadd.f32 %v170_v48, %v169_v36  ;;  %v150_v5 = vrot.slane %v149_v56, 2 }
  0x47   :  { %v274_v23 = vrot.slane %v273_v8, 4  ;;  %v239_v28 = vadd.f32 %v238_v15, %v237_v2  ;;  %832 = vmatpush.msrb.mxu2 %v722_v63  ;;  %793 = vmatpush.msrb.mxu0 %v689_v13  ;;  %v737_v39 = vld [vmem:[#allocation5 + $0x3b0] sm:$0xff]  ;;  %v718_v63 = vld [vmem:[#allocation5 + $0x318] sm:$0xff]  ;;  %v735_v0 = vld [vmem:[#allocation5 + $0x3a0] sm:$0xff]  ;;  %v185_v1 = vadd.f32 %v184_v51, %v183_v38  ;;  %v221_v6 = vadd.f32 %v220_v57, %v219_v45 }
  0x48   :  { %813 = vmatpush.msrb.mxu1 %v705_v20  ;;  %852 = vmatpush.msrb.mxu3 %v738_v26  ;;  %v207_v2 = vadd.f32 %v206_v53, %v205_v42  ;;  %v141_v4 = vld [vmem:[#allocation3 + $0x960] sm:$0xff]  ;;  %v254_v11 = vadd.f32 %v253_v52, %v137_v55  ;;  %v104_v13 = vld [vmem:[#allocation3 + $0x338] sm:$0xff]  ;;  %v172_v14 = vadd.f32 %v88_v59, %v84_v58  ;;  %v685_v15 = vld [vmem:[#allocation5 + $0x210] sm:$0xff] }
  0x49   :  { %v275_v37 = vadd.f32 %v274_v23, %v273_v8  ;;  %v240_v43 = vrot.slane %v239_v28, 2  ;;  %833 = vmatpush.msrb.mxu2 %v721_v21  ;;  %794 = vmatpush.msrb.mxu0 %v688_v33  ;;  %v100_v8 = vld [vmem:[#allocation3 + $0x318] sm:$0xff]  ;;  %v186_v10 = vrot.slane %v185_v1, 2  ;;  %v701_v16 = vld [vmem:[#allocation5 + $0x290] sm:$0xff]  ;;  %v151_v19 = vadd.f32 %v150_v5, %v149_v56  ;;  %v86_v44 = vld [vmem:[#allocation3 + $0x28] sm:$0xff] }
  0x4a   :  { %814 = vmatpush.msrb.mxu1 %v704_v34  ;;  %853 = vmatpush.msrb.mxu3 %v737_v39  ;;  %v382_v18 = vsel %vm373_vm0, %v207_v2, %v171_v60  ;;  %v222_v20 = vrot.slane %v221_v6, 2  ;;  %v108_v21 = vld [vmem:[#allocation3 + $0x358] sm:$0xff]  ;;  %v717_v22 = vld [vmem:[#allocation5 + $0x310] sm:$0xff]  ;;  %v255_v26 = vadd.f32 %v254_v11, %v141_v4  ;;  %v208_v42 = vadd.f32 %v104_v13, %v100_v8  ;;  %v90_v45 = vld [vmem:[#allocation3 + $0x48] sm:$0xff] }
  0x4b   :  { %v276_v49 = vrot.slane %v275_v37, 2  ;;  %v241_v54 = vadd.f32 %v240_v43, %v239_v28  ;;  %834 = vmatpush.msrb.mxu2 %v720_v35  ;;  %795 = vmatpush.msrb.mxu0 %v687_v40  ;;  %v734_v23 = vld [vmem:[#allocation5 + $0x398] sm:$0xff]  ;;  %v187_v25 = vadd.f32 %v186_v10, %v185_v1  ;;  %v152_v31 = vrot.slane %v151_v19, 1  ;;  %v82_v43 = vld [vmem:[#allocation3 + $0x8] sm:$0xff]  ;;  %v733_v59 = vld [vmem:[#allocation5 + $0x390] sm:$0xff] }
  0x4c   :  { %815 = vmatpush.msrb.mxu1 %v703_v41  ;;  %854 = vmatpush.msrb.mxu3 %v736_v47  ;;  %v116_v27 = vld [vmem:[#allocation3 + $0x618] sm:$0xff]  ;;  %v223_v32 = vadd.f32 %v222_v20, %v221_v6  ;;  %v256_v40 = vrot.slane %v255_v26, 4  ;;  %v98_v51 = vld [vmem:[#allocation3 + $0x308] sm:$0xff]  ;;  %v209_v57 = vadd.f32 %v208_v42, %v108_v21  ;;  %v683_v60 = vld [vmem:[#allocation5 + $0x200] sm:$0xff]  ;;  %v154_v2 = vadd.f32 %v86_v44, %v82_v43 }
  0x4d   :  { %v277_v61 = vadd.f32 %v276_v49, %v275_v37  ;;  %v242_v3 = vrot.slane %v241_v54, 1  ;;  %835 = vmatpush.msrb.mxu2 %v719_v46  ;;  %796 = vmatpush.msrb.mxu0 %v686_v50  ;;  %v120_v28 = vld [vmem:[#allocation3 + $0x638] sm:$0xff]  ;;  %v173_v37 = vadd.f32 %v172_v14, %v92_v7  ;;  %v188_v39 = vrot.slane %v187_v25, 1  ;;  %v684_v52 = vld [vmem:[#allocation5 + $0x208] sm:$0xff] }
  0x4e   :  { %816 = vmatpush.msrb.mxu1 %v702_v62  ;;  %855 = vmatpush.msrb.mxu3 %v735_v0  ;;  %v124_v29 = vld [vmem:[#allocation3 + $0x658] sm:$0xff]  ;;  %v153_v46 = vadd.f32 %v152_v31, %v151_v19  ;;  %v224_v47 = vrot.slane %v223_v32, 1  ;;  %v244_v50 = vadd.f32 %v120_v28, %v116_v27  ;;  %v700_v53 = vld [vmem:[#allocation5 + $0x288] sm:$0xff]  ;;  %v257_v56 = vadd.f32 %v256_v40, %v255_v26 }
  0x4f   :  { %v278_v9 = vrot.slane %v277_v61, 1  ;;  %v243_v17 = vadd.f32 %v242_v3, %v241_v54  ;;  %836 = vmatpush.msrb.mxu2 %v718_v63  ;;  %v112_v33 = vld [vmem:[#allocation3 + $0x378] sm:$0xff]  ;;  %797 = vmatpush.msrb.mxu0 %v685_v15  ;;  %v174_v49 = vadd.f32 %v173_v37, %v96_v12  ;;  %v716_v54 = vld [vmem:[#allocation5 + $0x308] sm:$0xff]  ;;  %v189_v55 = vadd.f32 %v188_v39, %v187_v25  ;;  %v715_v3 = vld [vmem:[#allocation5 + $0x300] sm:$0xff] }
  0x50   :  { %v132_v34 = vld [vmem:[#allocation3 + $0x918] sm:$0xff]  ;;  %817 = vmatpush.msrb.mxu1 %v701_v16  ;;  %856 = vmatpush.msrb.mxu3 %v734_v23  ;;  %v225_v62 = vadd.f32 %v224_v47, %v223_v32  ;;  %v245_v0 = vadd.f32 %v244_v50, %v124_v29  ;;  %v102_v1 = vld [vmem:[#allocation3 + $0x328] sm:$0xff]  ;;  %v258_v5 = vrot.slane %v257_v56, 2  ;;  %v210_v7 = vadd.f32 %v209_v57, %v112_v33 }
  0x51   :  { %v279_v24 = vadd.f32 %v278_v9, %v277_v61  ;;  %v383_v30 = vsel %vm375_vm1, %v243_v17, %v382_v18  ;;  %v136_v35 = vld [vmem:[#allocation3 + $0x938] sm:$0xff]  ;;  %837 = vmatpush.msrb.mxu2 %v717_v22  ;;  %798 = vmatpush.msrb.mxu0 %v684_v52  ;;  %v699_v61 = vld [vmem:[#allocation5 + $0x280] sm:$0xff]  ;;  %v175_v63 = vrot.slane %v174_v49, 4  ;;  %v732_v4 = vld [vmem:[#allocation5 + $0x388] sm:$0xff]  ;;  %v374_v6 = vsel %vm373_vm0, %v189_v55, %v153_v46 }
  0x52   :  { %v140_v36 = vld [vmem:[#allocation3 + $0x958] sm:$0xff]  ;;  %v280_v58 = vadd.f32 %v136_v35, %v132_v34  ;;  %818 = vmatpush.msrb.mxu1 %v700_v53  ;;  %v94_v9 = vld [vmem:[#allocation3 + $0x68] sm:$0xff]  ;;  %857 = vmatpush.msrb.mxu3 %v733_v59  ;;  %v376_v12 = vsel %vm375_vm1, %v225_v62, %v374_v6  ;;  %v155_v16 = vadd.f32 %v154_v2, %v90_v45  ;;  %v211_v18 = vrot.slane %v210_v7, 4  ;;  %v476_v53 = vld [vmem:[#allocation3 + $0x90] sm:$0xff] }
  0x53   :  { %v384_v38 = vsel %vm377_vm2, %v279_v24, %v383_v30  ;;  %v128_v41 = vld [vmem:[#allocation3 + $0x678] sm:$0xff]  ;;  %838 = vmatpush.msrb.mxu2 %v716_v54  ;;  %v114_v10 = vld [vmem:[#allocation3 + $0x608] sm:$0xff]  ;;  %799 = vmatpush.msrb.mxu0 %v683_v60  ;;  %v176_v13 = vadd.f32 %v175_v63, %v174_v49  ;;  %v259_v17 = vadd.f32 %v258_v5, %v257_v56  ;;  %v480_v54 = vld [vmem:[#allocation3 + $0xb0] sm:$0xff] }
  0x54   :  { %448 = vmatmul.f32.vlgmr.msra.gmra.mxu2 %v384_v38  ;;  %v144_v48 = vld [vmem:[#allocation3 + $0x978] sm:$0xff]  ;;  %v281_v8 = vadd.f32 %v280_v58, %v140_v36  ;;  %v118_v11 = vld [vmem:[#allocation3 + $0x628] sm:$0xff]  ;;  %v246_v14 = vadd.f32 %v245_v0, %v128_v41  ;;  %819 = vmatpush.msrb.mxu1 %v699_v61  ;;  %v190_v21 = vadd.f32 %v102_v1, %v98_v51  ;;  %v731_v41 = vld [vmem:[#allocation5 + $0x380] sm:$0xff] }
  0x55   :  { %v106_v15 = vld [vmem:[#allocation3 + $0x348] sm:$0xff]  ;;  %839 = vmatpush.msrb.mxu2 %v715_v3  ;;  %858 = vmatpush.msrb.mxu3 %v732_v4  ;;  %v177_v22 = vrot.slane %v176_v13, 2  ;;  %v156_v25 = vadd.f32 %v155_v16, %v94_v9  ;;  %v226_v26 = vadd.f32 %v118_v11, %v114_v10  ;;  %v260_v27 = vrot.slane %v259_v17, 1  ;;  %v1122_v36 = vld [vmem:[#allocation5 + $0x578] sm:$0xff]  ;;  %v484_v0 = vld [vmem:[#allocation3 + $0xd0] sm:$0xff] }
  0x56   :  { %v282_v19 = vadd.f32 %v281_v8, %v144_v48  ;;  %v122_v20 = vld [vmem:[#allocation3 + $0x648] sm:$0xff]  ;;  %v247_v23 = vrot.slane %v246_v14, 4  ;;  %v212_v28 = vadd.f32 %v211_v18, %v210_v7  ;;  %v191_v31 = vadd.f32 %v190_v21, %v106_v15  ;;  %v1090_v48 = vld [vmem:[#allocation5 + $0x478] sm:$0xff]  ;;  %v488_v10 = vld [vmem:[#allocation3 + $0xf0] sm:$0xff] }
  0x57   :  { %v110_v24 = vld [vmem:[#allocation3 + $0x368] sm:$0xff]  ;;  %v178_v32 = vadd.f32 %v177_v22, %v176_v13  ;;  %v157_v34 = vrot.slane %v156_v25, 4  ;;  %v227_v35 = vadd.f32 %v226_v26, %v122_v20  ;;  %v261_v37 = vadd.f32 %v260_v27, %v259_v17  ;;  %1216 = vmatpush.msra.mxu2 %v1122_v36  ;;  %859 = vmatpush.msrb.mxu3 %v731_v41  ;;  %v496_v15 = vld [vmem:[#allocation3 + $0x3b0] sm:$0xff] }
  0x58   :  { %v283_v29 = vrot.slane %v282_v19, 4  ;;  %v126_v30 = vld [vmem:[#allocation3 + $0x668] sm:$0xff]  ;;  %v248_v33 = vadd.f32 %v247_v23, %v246_v14  ;;  %v213_v38 = vrot.slane %v212_v28, 2  ;;  %v192_v40 = vadd.f32 %v191_v31, %v110_v24  ;;  %v492_v14 = vld [vmem:[#allocation3 + $0x390] sm:$0xff]  ;;  %v478_v31 = vld [vmem:[#allocation3 + $0xa0] sm:$0xff] }
  0x59   :  { %v179_v42 = vrot.slane %v178_v32, 1  ;;  %v130_v44 = vld [vmem:[#allocation3 + $0x908] sm:$0xff]  ;;  %v158_v46 = vadd.f32 %v157_v34, %v156_v25  ;;  %v228_v47 = vadd.f32 %v227_v35, %v126_v30  ;;  %v378_v49 = vsel %vm377_vm2, %v261_v37, %v376_v12  ;;  %v508_v16 = vld [vmem:[#allocation3 + $0x690] sm:$0xff]  ;;  %v474_v30 = vld [vmem:[#allocation3 + $0x80] sm:$0xff] }
  0x5a   :  { %v284_v39 = vadd.f32 %v283_v29, %v282_v19  ;;  %v249_v43 = vrot.slane %v248_v33, 2  ;;  %v134_v45 = vld [vmem:[#allocation3 + $0x928] sm:$0xff]  ;;  %v214_v50 = vadd.f32 %v213_v38, %v212_v28  ;;  %v193_v52 = vrot.slane %v192_v40, 4  ;;  %408 = vmatmul.f32.vlgmr.msra.gmra.mxu0 %v378_v49  ;;  %v512_v22 = vld [vmem:[#allocation3 + $0x6b0] sm:$0xff] }
  0x5b   :  { %v180_v55 = vadd.f32 %v179_v42, %v178_v32  ;;  %v138_v57 = vld [vmem:[#allocation3 + $0x948] sm:$0xff]  ;;  %v159_v58 = vrot.slane %v158_v46, 2  ;;  %v229_v59 = vrot.slane %v228_v47, 4  ;;  %v262_v63 = vadd.f32 %v134_v45, %v130_v44  ;;  %1176 = vmatpush.msra.mxu0 %v1090_v48  ;;  %v524_v23 = vld [vmem:[#allocation3 + $0x990] sm:$0xff] }
  0x5c   :  { %v285_v51 = vrot.slane %v284_v39, 2  ;;  %v250_v56 = vadd.f32 %v249_v43, %v248_v33  ;;  %v215_v60 = vrot.slane %v214_v50, 1  ;;  %v194_v62 = vadd.f32 %v193_v52, %v192_v40  ;;  %v142_v2 = vld [vmem:[#allocation3 + $0x968] sm:$0xff]  ;;  %v528_v24 = vld [vmem:[#allocation3 + $0x9b0] sm:$0xff]  ;;  %v482_v43 = vld [vmem:[#allocation3 + $0xc0] sm:$0xff] }
  0x5d   :  { %v160_v3 = vadd.f32 %v159_v58, %v158_v46  ;;  %v230_v4 = vadd.f32 %v229_v59, %v228_v47  ;;  %v556_v5 = vadd.f32 %v480_v54, %v476_v53  ;;  %v263_v9 = vadd.f32 %v262_v63, %v138_v57  ;;  %v500_v28 = vld [vmem:[#allocation3 + $0x3d0] sm:$0xff]  ;;  %v486_v54 = vld [vmem:[#allocation3 + $0xe0] sm:$0xff] }
  0x5e   :  { %v286_v61 = vadd.f32 %v285_v51, %v284_v39  ;;  %v251_v1 = vrot.slane %v250_v56, 1  ;;  %v216_v6 = vadd.f32 %v215_v60, %v214_v50  ;;  %v195_v8 = vrot.slane %v194_v62, 2  ;;  %v516_v35 = vld [vmem:[#allocation3 + $0x6d0] sm:$0xff]  ;;  %v506_v60 = vld [vmem:[#allocation3 + $0x680] sm:$0xff] }
  0x5f   :  { %v161_v12 = vrot.slane %v160_v3, 1  ;;  %v231_v13 = vrot.slane %v230_v4, 2  ;;  %v557_v17 = vadd.f32 %v556_v5, %v484_v0  ;;  %v264_v21 = vadd.f32 %v263_v9, %v142_v2  ;;  %v532_v36 = vld [vmem:[#allocation3 + $0x9d0] sm:$0xff] }
  0x60   :  { %v287_v7 = vrot.slane %v286_v61, 1  ;;  %v252_v11 = vadd.f32 %v251_v1, %v250_v56  ;;  %v385_v19 = vsel %vm373_vm0, %v216_v6, %v180_v55  ;;  %v196_v20 = vadd.f32 %v195_v8, %v194_v62  ;;  %v504_v39 = vld [vmem:[#allocation3 + $0x3f0] sm:$0xff]  ;;  %v490_v55 = vld [vmem:[#allocation3 + $0x380] sm:$0xff] }
  0x61   :  { %v162_v26 = vadd.f32 %v161_v12, %v160_v3  ;;  %v232_v27 = vadd.f32 %v231_v13, %v230_v4  ;;  %v558_v29 = vadd.f32 %v557_v17, %v488_v10  ;;  %v265_v34 = vrot.slane %v264_v21, 4  ;;  %v520_v46 = vld [vmem:[#allocation3 + $0x6f0] sm:$0xff]  ;;  %v494_v56 = vld [vmem:[#allocation3 + $0x3a0] sm:$0xff] }
  0x62   :  { %v288_v18 = vadd.f32 %v287_v7, %v286_v61  ;;  %v386_v25 = vsel %vm375_vm1, %v252_v11, %v385_v19  ;;  %v197_v33 = vrot.slane %v196_v20, 1  ;;  %v592_v37 = vadd.f32 %v496_v15, %v492_v14  ;;  %v536_v47 = vld [vmem:[#allocation3 + $0x9f0] sm:$0xff]  ;;  %v510_v61 = vld [vmem:[#allocation3 + $0x6a0] sm:$0xff] }
  0x63   :  { %v233_v38 = vrot.slane %v232_v27, 1  ;;  %v559_v40 = vrot.slane %v558_v29, 4  ;;  %v628_v41 = vadd.f32 %v512_v22, %v508_v16  ;;  %v664_v42 = vadd.f32 %v528_v24, %v524_v23  ;;  %v498_v3 = vld [vmem:[#allocation3 + $0x3c0] sm:$0xff]  ;;  %v1089_v14 = vld [vmem:[#allocation5 + $0x470] sm:$0xff] }
  0x64   :  { %v387_v32 = vsel %vm377_vm2, %v288_v18, %v386_v25  ;;  %v198_v44 = vadd.f32 %v197_v33, %v196_v20  ;;  %v266_v45 = vadd.f32 %v265_v34, %v264_v21  ;;  %v593_v48 = vadd.f32 %v592_v37, %v500_v28  ;;  %v514_v6 = vld [vmem:[#allocation3 + $0x6c0] sm:$0xff]  ;;  %v1121_v15 = vld [vmem:[#allocation5 + $0x570] sm:$0xff]  ;;  %1177 = vmatpush.msra.mxu0 %v1089_v14  ;;  %v1138_v21 = vld [vmem:[#allocation5 + $0x5f8] sm:$0xff] }
  0x65   :  { %468 = vmatmul.f32.vlgmr.msra.gmra.mxu3 %v387_v32  ;;  %v538_v49 = vadd.f32 %v478_v31, %v474_v30  ;;  %v234_v50 = vadd.f32 %v233_v38, %v232_v27  ;;  %v560_v51 = vadd.f32 %v559_v40, %v558_v29  ;;  %v629_v52 = vadd.f32 %v628_v41, %v516_v35  ;;  %v502_v12 = vld [vmem:[#allocation3 + $0x3e0] sm:$0xff]  ;;  %v1106_v35 = vld [vmem:[#allocation5 + $0x4f8] sm:$0xff] }
  0x66   :  { %v665_v53 = vadd.f32 %v664_v42, %v532_v36  ;;  %v267_v57 = vrot.slane %v266_v45, 2  ;;  %v379_v58 = vsel %vm373_vm0, %v198_v44, %v162_v26  ;;  %v594_v59 = vadd.f32 %v593_v48, %v504_v39  ;;  %v518_v18 = vld [vmem:[#allocation3 + $0x6e0] sm:$0xff]  ;;  %1217 = vmatpush.msra.mxu2 %v1121_v15  ;;  %1236 = vmatpush.msra.mxu3 %v1138_v21  ;;  %v477_v37 = vld [vmem:[#allocation3 + $0x98] sm:$0xff]  ;;  %v1104_v21 = vld [vmem:[#allocation5 + $0x4e8] sm:$0xff] }
  0x67   :  { %v539_v62 = vadd.f32 %v538_v49, %v482_v43  ;;  %v380_v63 = vsel %vm375_vm1, %v234_v50, %v379_v58  ;;  %v561_v0 = vrot.slane %v560_v51, 2  ;;  %v630_v1 = vadd.f32 %v629_v52, %v520_v46  ;;  %v522_v28 = vld [vmem:[#allocation3 + $0x980] sm:$0xff]  ;;  %v481_v38 = vld [vmem:[#allocation3 + $0xb8] sm:$0xff]  ;;  %v1105_v49 = vld [vmem:[#allocation5 + $0x4f0] sm:$0xff] }
  0x68   :  { %v666_v2 = vadd.f32 %v665_v53, %v536_v47  ;;  %v268_v4 = vadd.f32 %v267_v57, %v266_v45  ;;  %v595_v5 = vrot.slane %v594_v59, 4  ;;  %v574_v8 = vadd.f32 %v494_v56, %v490_v55  ;;  %v526_v29 = vld [vmem:[#allocation3 + $0x9a0] sm:$0xff]  ;;  %v485_v48 = vld [vmem:[#allocation3 + $0xd8] sm:$0xff] }
  0x69   :  { %v540_v7 = vadd.f32 %v539_v62, %v486_v54  ;;  %v562_v9 = vadd.f32 %v561_v0, %v560_v51  ;;  %v631_v10 = vrot.slane %v630_v1, 4  ;;  %v610_v13 = vadd.f32 %v510_v61, %v506_v60  ;;  %v530_v41 = vld [vmem:[#allocation3 + $0x9c0] sm:$0xff]  ;;  %v493_v60 = vld [vmem:[#allocation3 + $0x398] sm:$0xff] }
  0x6a   :  { %v667_v11 = vrot.slane %v666_v2, 4  ;;  %v269_v16 = vrot.slane %v268_v4, 1  ;;  %v596_v17 = vadd.f32 %v595_v5, %v594_v59  ;;  %v575_v20 = vadd.f32 %v574_v8, %v498_v3  ;;  %v534_v51 = vld [vmem:[#allocation3 + $0x9e0] sm:$0xff]  ;;  %v489_v59 = vld [vmem:[#allocation3 + $0xf8] sm:$0xff] }
  0x6b   :  { %v541_v19 = vrot.slane %v540_v7, 4  ;;  %v563_v22 = vrot.slane %v562_v9, 1  ;;  %v632_v23 = vadd.f32 %v631_v10, %v630_v1  ;;  %v611_v25 = vadd.f32 %v610_v13, %v514_v6  ;;  %v497_v61 = vld [vmem:[#allocation3 + $0x3b8] sm:$0xff]  ;;  %v479_v13 = vld [vmem:[#allocation3 + $0xa8] sm:$0xff] }
  0x6c   :  { %v668_v24 = vadd.f32 %v667_v11, %v666_v2  ;;  %v270_v26 = vadd.f32 %v269_v16, %v268_v4  ;;  %v597_v27 = vrot.slane %v596_v17, 2  ;;  %v576_v31 = vadd.f32 %v575_v20, %v502_v12  ;;  %v501_v1 = vld [vmem:[#allocation3 + $0x3d8] sm:$0xff]  ;;  %v475_v12 = vld [vmem:[#allocation3 + $0x88] sm:$0xff] }
  0x6d   :  { %v542_v30 = vadd.f32 %v541_v19, %v540_v7  ;;  %v564_v32 = vadd.f32 %v563_v22, %v562_v9  ;;  %v633_v33 = vrot.slane %v632_v23, 2  ;;  %v612_v36 = vadd.f32 %v611_v25, %v518_v18  ;;  %v509_v2 = vld [vmem:[#allocation3 + $0x698] sm:$0xff]  ;;  %v1088_v20 = vld [vmem:[#allocation5 + $0x468] sm:$0xff] }
  0x6e   :  { %v669_v34 = vrot.slane %v668_v24, 2  ;;  %v381_v39 = vsel %vm377_vm2, %v270_v26, %v380_v63  ;;  %v598_v40 = vadd.f32 %v597_v27, %v596_v17  ;;  %v577_v43 = vrot.slane %v576_v31, 4  ;;  %v513_v3 = vld [vmem:[#allocation3 + $0x6b8] sm:$0xff]  ;;  %v1120_v22 = vld [vmem:[#allocation5 + $0x568] sm:$0xff]  ;;  %1178 = vmatpush.msra.mxu0 %v1088_v20 }
  0x6f   :  { %v543_v42 = vrot.slane %v542_v30, 2  ;;  %428 = vmatmul.f32.vlgmr.msra.gmra.mxu1 %v381_v39  ;;  %v634_v44 = vadd.f32 %v633_v33, %v632_v23  ;;  %v613_v46 = vrot.slane %v612_v36, 4  ;;  %v646_v47 = vadd.f32 %v526_v29, %v522_v28  ;;  %v525_v4 = vld [vmem:[#allocation3 + $0x998] sm:$0xff]  ;;  %v1137_v28 = vld [vmem:[#allocation5 + $0x5f0] sm:$0xff]  ;;  %v1087_v29 = vld [vmem:[#allocation5 + $0x460] sm:$0xff]  ;;  %1218 = vmatpush.msra.mxu2 %v1120_v22 }
  0x70   :  { %v670_v45 = vadd.f32 %v669_v34, %v668_v24  ;;  %v599_v50 = vrot.slane %v598_v40, 1  ;;  %1196 = vmatpush.msra.mxu1 %v1106_v35  ;;  %v578_v53 = vadd.f32 %v577_v43, %v576_v31  ;;  %v565_v54 = vadd.f32 %v481_v38, %v477_v37  ;;  %v517_v10 = vld [vmem:[#allocation3 + $0x6d8] sm:$0xff]  ;;  %1237 = vmatpush.msra.mxu3 %v1137_v28  ;;  %v1119_v37 = vld [vmem:[#allocation5 + $0x560] sm:$0xff]  ;;  %v1136_v38 = vld [vmem:[#allocation5 + $0x5e8] sm:$0xff] }
  0x71   :  { %v544_v52 = vadd.f32 %v543_v42, %v542_v30  ;;  %v635_v55 = vrot.slane %v634_v44, 1  ;;  %v614_v57 = vadd.f32 %v613_v46, %v612_v36  ;;  %v647_v58 = vadd.f32 %v646_v47, %v530_v41  ;;  %v529_v11 = vld [vmem:[#allocation3 + $0x9b8] sm:$0xff]  ;;  %v1103_v30 = vld [vmem:[#allocation5 + $0x4e0] sm:$0xff]  ;;  %v483_v36 = vld [vmem:[#allocation3 + $0xc8] sm:$0xff]  ;;  %1179 = vmatpush.msra.mxu0 %v1087_v29  ;;  %1219 = vmatpush.msra.mxu2 %v1119_v37 }
  0x72   :  { %v671_v56 = vrot.slane %v670_v45, 1  ;;  %v600_v62 = vadd.f32 %v599_v50, %v598_v40  ;;  %v579_v0 = vrot.slane %v578_v53, 2  ;;  %v566_v5 = vadd.f32 %v565_v54, %v485_v48  ;;  %1197 = vmatpush.msra.mxu1 %v1105_v49  ;;  %v505_v17 = vld [vmem:[#allocation3 + $0x3f8] sm:$0xff]  ;;  %v487_v43 = vld [vmem:[#allocation3 + $0xe8] sm:$0xff]  ;;  %1238 = vmatpush.msra.mxu3 %v1136_v38 }
  0x73   :  { %v545_v63 = vrot.slane %v544_v52, 1  ;;  %v636_v6 = vadd.f32 %v635_v55, %v634_v44  ;;  %v615_v8 = vrot.slane %v614_v57, 2  ;;  %v648_v9 = vadd.f32 %v647_v58, %v534_v51  ;;  %v533_v18 = vld [vmem:[#allocation3 + $0x9d8] sm:$0xff]  ;;  %v491_v44 = vld [vmem:[#allocation3 + $0x388] sm:$0xff] }
  0x74   :  { %v672_v7 = vadd.f32 %v671_v56, %v670_v45  ;;  %v774_v14 = vsel %vm373_vm0, %v600_v62, %v564_v32  ;;  %v580_v16 = vadd.f32 %v579_v0, %v578_v53  ;;  %v567_v19 = vadd.f32 %v566_v5, %v489_v59  ;;  %v521_v26 = vld [vmem:[#allocation3 + $0x6f8] sm:$0xff]  ;;  %1198 = vmatpush.msra.mxu1 %v1104_v21  ;;  %v495_v50 = vld [vmem:[#allocation3 + $0x3a8] sm:$0xff]  ;;  %v1135_v53 = vld [vmem:[#allocation5 + $0x5e0] sm:$0xff] }
  0x75   :  { %v546_v15 = vadd.f32 %v545_v63, %v544_v52  ;;  %v775_v23 = vsel %vm375_vm1, %v636_v6, %v774_v14  ;;  %v616_v24 = vadd.f32 %v615_v8, %v614_v57  ;;  %v649_v25 = vrot.slane %v648_v9, 4  ;;  %v537_v33 = vld [vmem:[#allocation3 + $0x9f8] sm:$0xff]  ;;  %v507_v58 = vld [vmem:[#allocation3 + $0x688] sm:$0xff]  ;;  %v1085_v59 = vld [vmem:[#allocation5 + $0x450] sm:$0xff]  ;;  %1239 = vmatpush.msra.mxu3 %v1135_v53 }
  0x76   :  { %v601_v27 = vadd.f32 %v497_v61, %v493_v60  ;;  %v776_v31 = vsel %vm377_vm2, %v672_v7, %v775_v23  ;;  %v581_v32 = vrot.slane %v580_v16, 1  ;;  %v568_v34 = vrot.slane %v567_v19, 4  ;;  %v1086_v45 = vld [vmem:[#allocation5 + $0x458] sm:$0xff]  ;;  %1199 = vmatpush.msra.mxu1 %v1103_v30  ;;  %v1101_v60 = vld [vmem:[#allocation5 + $0x4d0] sm:$0xff]  ;;  %v511_v0 = vld [vmem:[#allocation3 + $0x6a8] sm:$0xff] }
  0x77   :  { %v637_v35 = vadd.f32 %v513_v3, %v509_v2  ;;  %840 = vmatmul.f32.vlgmr.msrb.gmra.mxu2 %v776_v31  ;;  %v617_v39 = vrot.slane %v616_v24, 1  ;;  %v650_v40 = vadd.f32 %v649_v25, %v648_v9  ;;  %v673_v42 = vadd.f32 %v529_v11, %v525_v4  ;;  %v1102_v46 = vld [vmem:[#allocation5 + $0x4d8] sm:$0xff]  ;;  %1180 = vmatpush.msra.mxu0 %v1086_v45  ;;  %v1117_v2 = vld [vmem:[#allocation5 + $0x550] sm:$0xff]  ;;  %v499_v8 = vld [vmem:[#allocation3 + $0x3c8] sm:$0xff] }
  0x78   :  { %v602_v41 = vadd.f32 %v601_v27, %v501_v1  ;;  %v582_v47 = vadd.f32 %v581_v32, %v580_v16  ;;  %v569_v48 = vadd.f32 %v568_v34, %v567_v19  ;;  %v547_v51 = vadd.f32 %v479_v13, %v475_v12  ;;  %v1118_v52 = vld [vmem:[#allocation5 + $0x558] sm:$0xff]  ;;  %1200 = vmatpush.msra.mxu1 %v1102_v46  ;;  %v1084_v9 = vld [vmem:[#allocation5 + $0x448] sm:$0xff]  ;;  %v1083_v23 = vld [vmem:[#allocation5 + $0x440] sm:$0xff] }
  0x79   :  { %v638_v49 = vadd.f32 %v637_v35, %v517_v10  ;;  %v618_v54 = vadd.f32 %v617_v39, %v616_v24  ;;  %v651_v55 = vrot.slane %v650_v40, 2  ;;  %v674_v57 = vadd.f32 %v673_v42, %v533_v18  ;;  %v1134_v3 = vld [vmem:[#allocation5 + $0x5d8] sm:$0xff]  ;;  %1220 = vmatpush.msra.mxu2 %v1118_v52  ;;  %v1100_v10 = vld [vmem:[#allocation5 + $0x4c8] sm:$0xff]  ;;  %1181 = vmatpush.msra.mxu0 %v1085_v59  ;;  %v1099_v24 = vld [vmem:[#allocation5 + $0x4c0] sm:$0xff] }
  0x7a   :  { %v603_v56 = vadd.f32 %v602_v41, %v505_v17  ;;  %v768_v61 = vsel %vm373_vm0, %v582_v47, %v546_v15  ;;  %v570_v62 = vrot.slane %v569_v48, 2  ;;  %v548_v1 = vadd.f32 %v547_v51, %v483_v36  ;;  %v515_v13 = vld [vmem:[#allocation3 + $0x6c8] sm:$0xff]  ;;  %1201 = vmatpush.msra.mxu1 %v1101_v60  ;;  %v1133_v17 = vld [vmem:[#allocation5 + $0x5d0] sm:$0xff]  ;;  %1240 = vmatpush.msra.mxu3 %v1134_v3  ;;  %v1115_v30 = vld [vmem:[#allocation5 + $0x540] sm:$0xff] }
  0x7b   :  { %v639_v63 = vadd.f32 %v638_v49, %v521_v26  ;;  %v652_v4 = vadd.f32 %v651_v55, %v650_v40  ;;  %v769_v5 = vsel %vm375_vm1, %v618_v54, %v768_v61  ;;  %v675_v7 = vadd.f32 %v674_v57, %v537_v33  ;;  %v1116_v16 = vld [vmem:[#allocation5 + $0x548] sm:$0xff]  ;;  %1221 = vmatpush.msra.mxu2 %v1117_v2  ;;  %v1098_v38 = vld [vmem:[#allocation5 + $0x4b8] sm:$0xff]  ;;  %v1131_v49 = vld [vmem:[#allocation5 + $0x5c0] sm:$0xff] }
  0x7c   :  { %v604_v6 = vrot.slane %v603_v56, 4  ;;  %v571_v11 = vadd.f32 %v570_v62, %v569_v48  ;;  %v549_v14 = vadd.f32 %v548_v1, %v487_v43  ;;  %v583_v15 = vadd.f32 %v495_v50, %v491_v44  ;;  %v503_v21 = vld [vmem:[#allocation3 + $0x3e8] sm:$0xff]  ;;  %1182 = vmatpush.msra.mxu0 %v1084_v9  ;;  %1202 = vmatpush.msra.mxu1 %v1100_v10  ;;  %v1082_v42 = vld [vmem:[#allocation5 + $0x438] sm:$0xff]  ;;  %v1097_v50 = vld [vmem:[#allocation5 + $0x4b0] sm:$0xff] }
  0x7d   :  { %v640_v12 = vrot.slane %v639_v63, 4  ;;  %v653_v18 = vrot.slane %v652_v4, 1  ;;  %v676_v20 = vrot.slane %v675_v7, 4  ;;  %v619_v22 = vadd.f32 %v511_v0, %v507_v58  ;;  %v519_v27 = vld [vmem:[#allocation3 + $0x6e8] sm:$0xff]  ;;  %1222 = vmatpush.msra.mxu2 %v1116_v16  ;;  %1241 = vmatpush.msra.mxu3 %v1133_v17  ;;  %v1114_v43 = vld [vmem:[#allocation5 + $0x538] sm:$0xff]  ;;  %v1081_v55 = vld [vmem:[#allocation5 + $0x430] sm:$0xff] }
  0x7e   :  { %v605_v19 = vadd.f32 %v604_v6, %v603_v56  ;;  %v572_v25 = vrot.slane %v571_v11, 1  ;;  %v550_v28 = vrot.slane %v549_v14, 4  ;;  %v584_v29 = vadd.f32 %v583_v15, %v499_v8  ;;  %v1132_v31 = vld [vmem:[#allocation5 + $0x5c8] sm:$0xff]  ;;  %1183 = vmatpush.msra.mxu0 %v1083_v23  ;;  %1203 = vmatpush.msra.mxu1 %v1099_v24  ;;  %v1113_v56 = vld [vmem:[#allocation5 + $0x530] sm:$0xff]  ;;  %v1130_v62 = vld [vmem:[#allocation5 + $0x5b8] sm:$0xff] }
  0x7f   :  { %v641_v26 = vadd.f32 %v640_v12, %v639_v63  ;;  %v654_v32 = vadd.f32 %v653_v18, %v652_v4  ;;  %v677_v34 = vadd.f32 %v676_v20, %v675_v7  ;;  %v523_v35 = vld [vmem:[#allocation3 + $0x988] sm:$0xff]  ;;  %v620_v37 = vadd.f32 %v619_v22, %v515_v13  ;;  %1223 = vmatpush.msra.mxu2 %v1115_v30  ;;  %v1129_v9 = vld [vmem:[#allocation5 + $0x5b0] sm:$0xff]  ;;  %v1095_v10 = vld [vmem:[#allocation5 + $0x4a0] sm:$0xff] }
  0x80   :  { %v606_v33 = vrot.slane %v605_v19, 2  ;;  %v527_v36 = vld [vmem:[#allocation3 + $0x9a8] sm:$0xff]  ;;  %v551_v40 = vadd.f32 %v550_v28, %v549_v14  ;;  %v585_v41 = vadd.f32 %v584_v29, %v503_v21  ;;  %1242 = vmatpush.msra.mxu3 %v1132_v31  ;;  %1204 = vmatpush.msra.mxu1 %v1098_v38  ;;  %v573_v57 = vadd.f32 %v572_v25, %v571_v11  ;;  %v1079_v15 = vld [vmem:[#allocation5 + $0x420] sm:$0xff]  ;;  %v1094_v20 = vld [vmem:[#allocation5 + $0x498] sm:$0xff] }
  0x81   :  { %v642_v39 = vrot.slane %v641_v26, 2  ;;  %v770_v44 = vsel %vm377_vm2, %v654_v32, %v769_v5  ;;  %v678_v46 = vrot.slane %v677_v34, 2  ;;  %v531_v47 = vld [vmem:[#allocation3 + $0x9c8] sm:$0xff]  ;;  %v621_v48 = vadd.f32 %v620_v37, %v519_v27  ;;  %1184 = vmatpush.msra.mxu0 %v1082_v42  ;;  %1224 = vmatpush.msra.mxu2 %v1114_v43  ;;  %v1111_v16 = vld [vmem:[#allocation5 + $0x520] sm:$0xff]  ;;  %v1078_v25 = vld [vmem:[#allocation5 + $0x418] sm:$0xff] }
  0x82   :  { %v607_v45 = vadd.f32 %v606_v33, %v605_v19  ;;  %800 = vmatmul.f32.vlgmr.msrb.gmra.mxu0 %v770_v44  ;;  %v552_v52 = vrot.slane %v551_v40, 2  ;;  %v586_v53 = vrot.slane %v585_v41, 4  ;;  %v655_v54 = vadd.f32 %v527_v36, %v523_v35  ;;  %v535_v60 = vld [vmem:[#allocation3 + $0x9e8] sm:$0xff]  ;;  %1243 = vmatpush.msra.mxu3 %v1131_v49  ;;  %v1110_v28 = vld [vmem:[#allocation5 + $0x518] sm:$0xff]  ;;  %v1093_v29 = vld [vmem:[#allocation5 + $0x490] sm:$0xff] }
  0x83   :  { %v643_v51 = vadd.f32 %v642_v39, %v641_v26  ;;  %v679_v59 = vadd.f32 %v678_v46, %v677_v34  ;;  %v622_v61 = vrot.slane %v621_v48, 4  ;;  %v1096_v63 = vld [vmem:[#allocation5 + $0x4a8] sm:$0xff]  ;;  %1205 = vmatpush.msra.mxu1 %v1097_v50  ;;  %1185 = vmatpush.msra.mxu0 %v1081_v55  ;;  %v1127_v33 = vld [vmem:[#allocation5 + $0x5a0] sm:$0xff]  ;;  %v1077_v34 = vld [vmem:[#allocation5 + $0x410] sm:$0xff] }
  0x84   :  { %v608_v58 = vrot.slane %v607_v45, 1  ;;  %v553_v1 = vadd.f32 %v552_v52, %v551_v40  ;;  %v587_v2 = vadd.f32 %v586_v53, %v585_v41  ;;  %v656_v3 = vadd.f32 %v655_v54, %v531_v47  ;;  %v1080_v4 = vld [vmem:[#allocation5 + $0x428] sm:$0xff]  ;;  %1225 = vmatpush.msra.mxu2 %v1113_v56  ;;  %1244 = vmatpush.msra.mxu3 %v1130_v62  ;;  %v1109_v36 = vld [vmem:[#allocation5 + $0x510] sm:$0xff]  ;;  %v1126_v40 = vld [vmem:[#allocation5 + $0x598] sm:$0xff] }
  0x85   :  { %v644_v0 = vrot.slane %v643_v51, 1  ;;  %v1112_v5 = vld [vmem:[#allocation5 + $0x528] sm:$0xff]  ;;  %v680_v7 = vrot.slane %v679_v59, 1  ;;  %v623_v8 = vadd.f32 %v622_v61, %v621_v48  ;;  %1206 = vmatpush.msra.mxu1 %v1096_v63  ;;  %1186 = vmatpush.msra.mxu0 %v1080_v4  ;;  %v1091_v44 = vld [vmem:[#allocation5 + $0x480] sm:$0xff]  ;;  %v1125_v47 = vld [vmem:[#allocation5 + $0x590] sm:$0xff] }
  0x86   :  { %v609_v6 = vadd.f32 %v608_v58, %v607_v45  ;;  %v554_v12 = vrot.slane %v553_v1, 1  ;;  %v588_v13 = vrot.slane %v587_v2, 2  ;;  %v657_v14 = vadd.f32 %v656_v3, %v535_v60  ;;  %1226 = vmatpush.msra.mxu2 %v1112_v5  ;;  %1245 = vmatpush.msra.mxu3 %v1129_v9  ;;  %v1128_v24 = vld [vmem:[#allocation5 + $0x5a8] sm:$0xff]  ;;  %v1075_v48 = vld [vmem:[#allocation5 + $0x400] sm:$0xff]  ;;  %v1482_v50 = vld [vmem:[#allocation5 + $0x678] sm:$0xff] }
  0x87   :  { %v645_v11 = vadd.f32 %v644_v0, %v643_v51  ;;  %v681_v17 = vadd.f32 %v680_v7, %v679_v59  ;;  %v624_v19 = vrot.slane %v623_v8, 2  ;;  %1207 = vmatpush.msra.mxu1 %v1095_v10  ;;  %1187 = vmatpush.msra.mxu0 %v1079_v15  ;;  %v1092_v37 = vld [vmem:[#allocation5 + $0x488] sm:$0xff]  ;;  %v1107_v49 = vld [vmem:[#allocation5 + $0x500] sm:$0xff]  ;;  %v1514_v53 = vld [vmem:[#allocation5 + $0x778] sm:$0xff] }
  0x88   :  { %v777_v18 = vsel %vm373_vm0, %v609_v6, %v573_v57  ;;  %v589_v22 = vadd.f32 %v588_v13, %v587_v2  ;;  %v658_v23 = vrot.slane %v657_v14, 4  ;;  %1227 = vmatpush.msra.mxu2 %v1111_v16  ;;  %v555_v30 = vadd.f32 %v554_v12, %v553_v1  ;;  %1246 = vmatpush.msra.mxu3 %v1128_v24  ;;  %v1076_v41 = vld [vmem:[#allocation5 + $0x408] sm:$0xff]  ;;  %v1481_v55 = vld [vmem:[#allocation5 + $0x670] sm:$0xff]  ;;  %v1123_v57 = vld [vmem:[#allocation5 + $0x580] sm:$0xff] }
  0x89   :  { %v778_v21 = vsel %vm375_vm1, %v645_v11, %v777_v18  ;;  %v625_v27 = vadd.f32 %v624_v19, %v623_v8  ;;  %1208 = vmatpush.msra.mxu1 %v1094_v20  ;;  %1188 = vmatpush.msra.mxu0 %v1078_v25  ;;  %v1108_v43 = vld [vmem:[#allocation5 + $0x508] sm:$0xff]  ;;  %v1498_v58 = vld [vmem:[#allocation5 + $0x6f8] sm:$0xff]  ;;  %v1497_v59 = vld [vmem:[#allocation5 + $0x6f0] sm:$0xff] }
  0x8a   :  { %v779_v26 = vsel %vm377_vm2, %v681_v17, %v778_v21  ;;  %v590_v31 = vrot.slane %v589_v22, 1  ;;  %v659_v32 = vadd.f32 %v658_v23, %v657_v14  ;;  %1228 = vmatpush.msra.mxu2 %v1110_v28  ;;  %1247 = vmatpush.msra.mxu3 %v1127_v33  ;;  %v1124_v52 = vld [vmem:[#allocation5 + $0x588] sm:$0xff]  ;;  %v1513_v60 = vld [vmem:[#allocation5 + $0x770] sm:$0xff]  ;;  %v1530_v62 = vld [vmem:[#allocation5 + $0x7f8] sm:$0xff] }
  0x8b   :  { %860 = vmatmul.f32.vlgmr.msrb.gmra.mxu3 %v779_v26  ;;  %v626_v35 = vrot.slane %v625_v27, 1  ;;  %1209 = vmatpush.msra.mxu1 %v1093_v29  ;;  %v1480_v63 = vld [vmem:[#allocation5 + $0x668] sm:$0xff]  ;;  %v1529_v2 = vld [vmem:[#allocation5 + $0x7f0] sm:$0xff]  ;;  %v1479_v3 = vld [vmem:[#allocation5 + $0x660] sm:$0xff] }
  0x8c   :  { %v591_v38 = vadd.f32 %v590_v31, %v589_v22  ;;  %v660_v39 = vrot.slane %v659_v32, 2  ;;  %1189 = vmatpush.msra.mxu0 %v1077_v34  ;;  %1229 = vmatpush.msra.mxu2 %v1109_v36  ;;  %v1512_v0 = vld [vmem:[#allocation5 + $0x768] sm:$0xff]  ;;  %v1511_v4 = vld [vmem:[#allocation5 + $0x760] sm:$0xff]  ;;  %v1478_v6 = vld [vmem:[#allocation5 + $0x658] sm:$0xff] }
  0x8d   :  { %v627_v42 = vadd.f32 %v626_v35, %v625_v27  ;;  %1210 = vmatpush.msra.mxu1 %v1092_v37  ;;  %1248 = vmatpush.msra.mxu3 %v1126_v40  ;;  %v1496_v1 = vld [vmem:[#allocation5 + $0x6e8] sm:$0xff]  ;;  %v868_v7 = vld [vmem:[#allocation3 + $0x110] sm:$0xff]  ;;  %v1495_v8 = vld [vmem:[#allocation5 + $0x6e0] sm:$0xff] }
  0x8e   :  { %v661_v45 = vadd.f32 %v660_v39, %v659_v32  ;;  %v771_v46 = vsel %vm373_vm0, %v591_v38, %v555_v30  ;;  %1190 = vmatpush.msra.mxu0 %v1076_v41  ;;  %1230 = vmatpush.msra.mxu2 %v1108_v43  ;;  %v1528_v5 = vld [vmem:[#allocation5 + $0x7e8] sm:$0xff]  ;;  %v1510_v9 = vld [vmem:[#allocation5 + $0x758] sm:$0xff]  ;;  %v872_v10 = vld [vmem:[#allocation3 + $0x130] sm:$0xff] }
  0x8f   :  { %1211 = vmatpush.msra.mxu1 %v1091_v44  ;;  %v772_v54 = vsel %vm375_vm1, %v627_v42, %v771_v46  ;;  %1249 = vmatpush.msra.mxu3 %v1125_v47  ;;  %v876_v11 = vld [vmem:[#allocation3 + $0x150] sm:$0xff]  ;;  %v1527_v12 = vld [vmem:[#allocation5 + $0x7e0] sm:$0xff]  ;;  %v948_v17 = vadd.f32 %v872_v10, %v868_v7  ;;  %v1494_v18 = vld [vmem:[#allocation5 + $0x6d8] sm:$0xff] }
  0x90   :  { %v662_v51 = vrot.slane %v661_v45, 1  ;;  %1191 = vmatpush.msra.mxu0 %v1075_v48  ;;  %1231 = vmatpush.msra.mxu2 %v1107_v49  ;;  %v1477_v13 = vld [vmem:[#allocation5 + $0x650] sm:$0xff]  ;;  %v1526_v24 = vld [vmem:[#allocation5 + $0x7d8] sm:$0xff]  ;;  %v1476_v25 = vld [vmem:[#allocation5 + $0x648] sm:$0xff] }
  0x91   :  { %1250 = vmatpush.msra.mxu3 %v1124_v52  ;;  %v884_v14 = vld [vmem:[#allocation3 + $0x410] sm:$0xff]  ;;  %v949_v29 = vadd.f32 %v948_v17, %v876_v11  ;;  %v1508_v36 = vld [vmem:[#allocation5 + $0x748] sm:$0xff]  ;;  %v1475_v38 = vld [vmem:[#allocation5 + $0x640] sm:$0xff] }
  0x92   :  { %v663_v56 = vadd.f32 %v662_v51, %v661_v45  ;;  %1568 = vmatpush.msrb.mxu0 %v1482_v50  ;;  %1608 = vmatpush.msrb.mxu2 %v1514_v53  ;;  %v888_v15 = vld [vmem:[#allocation3 + $0x430] sm:$0xff]  ;;  %v1492_v42 = vld [vmem:[#allocation5 + $0x6c8] sm:$0xff]  ;;  %v1507_v43 = vld [vmem:[#allocation5 + $0x740] sm:$0xff] }
  0x93   :  { %1251 = vmatpush.msra.mxu3 %v1123_v57  ;;  %v892_v16 = vld [vmem:[#allocation3 + $0x450] sm:$0xff]  ;;  %v984_v23 = vadd.f32 %v888_v15, %v884_v14  ;;  %v866_v46 = vld [vmem:[#allocation3 + $0x100] sm:$0xff]  ;;  %v1524_v48 = vld [vmem:[#allocation5 + $0x7c8] sm:$0xff] }
  0x94   :  { %v773_v61 = vsel %vm377_vm2, %v663_v56, %v772_v54  ;;  %1569 = vmatpush.msrb.mxu0 %v1481_v55  ;;  %1609 = vmatpush.msrb.mxu2 %v1513_v60  ;;  %v1509_v19 = vld [vmem:[#allocation5 + $0x750] sm:$0xff]  ;;  %v870_v47 = vld [vmem:[#allocation3 + $0x120] sm:$0xff]  ;;  %v1474_v49 = vld [vmem:[#allocation5 + $0x638] sm:$0xff] }
  0x95   :  { %820 = vmatmul.f32.vlgmr.msrb.gmra.mxu1 %v773_v61  ;;  %1628 = vmatpush.msrb.mxu3 %v1530_v62  ;;  %v880_v20 = vld [vmem:[#allocation3 + $0x170] sm:$0xff]  ;;  %v985_v35 = vadd.f32 %v984_v23, %v892_v16  ;;  %v874_v53 = vld [vmem:[#allocation3 + $0x140] sm:$0xff]  ;;  %v930_v55 = vadd.f32 %v870_v47, %v866_v46  ;;  %v1506_v57 = vld [vmem:[#allocation5 + $0x738] sm:$0xff] }
  0x96   :  { %1588 = vmatpush.msrb.mxu1 %v1498_v58  ;;  %1570 = vmatpush.msrb.mxu0 %v1480_v63  ;;  %v900_v21 = vld [vmem:[#allocation3 + $0x710] sm:$0xff]  ;;  %v950_v39 = vadd.f32 %v949_v29, %v880_v20  ;;  %v882_v54 = vld [vmem:[#allocation3 + $0x400] sm:$0xff]  ;;  %v1470_v47 = vld [vmem:[#allocation5 + $0x618] sm:$0xff] }
  0x97   :  { %1610 = vmatpush.msrb.mxu2 %v1512_v0  ;;  %1629 = vmatpush.msrb.mxu3 %v1529_v2  ;;  %v904_v22 = vld [vmem:[#allocation3 + $0x730] sm:$0xff]  ;;  %v1491_v56 = vld [vmem:[#allocation5 + $0x6c0] sm:$0xff] }
  0x98   :  { %1589 = vmatpush.msrb.mxu1 %v1497_v59  ;;  %1571 = vmatpush.msrb.mxu0 %v1479_v3  ;;  %v896_v26 = vld [vmem:[#allocation3 + $0x470] sm:$0xff]  ;;  %v1020_v30 = vadd.f32 %v904_v22, %v900_v21  ;;  %v951_v50 = vrot.slane %v950_v39, 4  ;;  %v878_v59 = vld [vmem:[#allocation3 + $0x160] sm:$0xff] }
  0x99   :  { %1611 = vmatpush.msrb.mxu2 %v1511_v4  ;;  %v908_v27 = vld [vmem:[#allocation3 + $0x750] sm:$0xff]  ;;  %1630 = vmatpush.msrb.mxu3 %v1528_v5  ;;  %v986_v45 = vadd.f32 %v985_v35, %v896_v26  ;;  %v886_v60 = vld [vmem:[#allocation3 + $0x420] sm:$0xff]  ;;  %v931_v4 = vadd.f32 %v930_v55, %v874_v53  ;;  %v1502_v55 = vld [vmem:[#allocation5 + $0x718] sm:$0xff] }
  0x9a   :  { %1590 = vmatpush.msrb.mxu1 %v1496_v1  ;;  %v916_v28 = vld [vmem:[#allocation3 + $0xa10] sm:$0xff]  ;;  %1572 = vmatpush.msrb.mxu0 %v1478_v6  ;;  %v1021_v40 = vadd.f32 %v1020_v30, %v908_v27  ;;  %v890_v61 = vld [vmem:[#allocation3 + $0x440] sm:$0xff]  ;;  %v952_v62 = vadd.f32 %v951_v50, %v950_v39 }
  0x9b   :  { %v1493_v31 = vld [vmem:[#allocation5 + $0x6d0] sm:$0xff]  ;;  %1612 = vmatpush.msrb.mxu2 %v1510_v9  ;;  %1631 = vmatpush.msrb.mxu3 %v1527_v12  ;;  %v987_v58 = vrot.slane %v986_v45, 4  ;;  %v898_v1 = vld [vmem:[#allocation3 + $0x700] sm:$0xff]  ;;  %v966_v9 = vadd.f32 %v886_v60, %v882_v54  ;;  %v932_v17 = vadd.f32 %v931_v4, %v878_v59  ;;  %v1486_v60 = vld [vmem:[#allocation5 + $0x698] sm:$0xff] }
  0x9c   :  { %v912_v32 = vld [vmem:[#allocation3 + $0x770] sm:$0xff]  ;;  %1591 = vmatpush.msrb.mxu1 %v1495_v8  ;;  %1573 = vmatpush.msrb.mxu0 %v1477_v13  ;;  %v902_v2 = vld [vmem:[#allocation3 + $0x720] sm:$0xff]  ;;  %v953_v12 = vrot.slane %v952_v62, 2 }
  0x9d   :  { %v920_v33 = vld [vmem:[#allocation3 + $0xa30] sm:$0xff]  ;;  %1613 = vmatpush.msrb.mxu2 %v1509_v19  ;;  %v1022_v51 = vadd.f32 %v1021_v40, %v912_v32  ;;  %1632 = vmatpush.msrb.mxu3 %v1526_v24  ;;  %v906_v3 = vld [vmem:[#allocation3 + $0x740] sm:$0xff]  ;;  %v988_v6 = vadd.f32 %v987_v58, %v986_v45  ;;  %v1002_v10 = vadd.f32 %v902_v2, %v898_v1  ;;  %v1522_v24 = vld [vmem:[#allocation5 + $0x7b8] sm:$0xff]  ;;  %v933_v30 = vrot.slane %v932_v17, 4 }
  0x9e   :  { %v924_v34 = vld [vmem:[#allocation3 + $0xa50] sm:$0xff]  ;;  %v1056_v41 = vadd.f32 %v920_v33, %v916_v28  ;;  %1592 = vmatpush.msrb.mxu1 %v1494_v18  ;;  %1574 = vmatpush.msrb.mxu0 %v1476_v25  ;;  %v1523_v5 = vld [vmem:[#allocation5 + $0x7c0] sm:$0xff]  ;;  %v1490_v18 = vld [vmem:[#allocation5 + $0x6b8] sm:$0xff]  ;;  %v967_v21 = vadd.f32 %v966_v9, %v890_v61  ;;  %v954_v26 = vadd.f32 %v953_v12, %v952_v62 }
  0x9f   :  { %v1525_v37 = vld [vmem:[#allocation5 + $0x7d0] sm:$0xff]  ;;  %1614 = vmatpush.msrb.mxu2 %v1508_v36  ;;  %v1023_v63 = vrot.slane %v1022_v51, 4  ;;  %v914_v7 = vld [vmem:[#allocation3 + $0xa00] sm:$0xff]  ;;  %v989_v20 = vrot.slane %v988_v6, 2  ;;  %v1003_v22 = vadd.f32 %v1002_v10, %v906_v3  ;;  %v1472_v25 = vld [vmem:[#allocation5 + $0x628] sm:$0xff] }
  0xa0   :  { %v928_v44 = vld [vmem:[#allocation3 + $0xa70] sm:$0xff]  ;;  %v1057_v52 = vadd.f32 %v1056_v41, %v924_v34  ;;  %1593 = vmatpush.msrb.mxu1 %v1493_v31  ;;  %1633 = vmatpush.msrb.mxu3 %v1525_v37  ;;  %v918_v8 = vld [vmem:[#allocation3 + $0xa20] sm:$0xff]  ;;  %v1488_v32 = vld [vmem:[#allocation5 + $0x6a8] sm:$0xff]  ;;  %v955_v40 = vrot.slane %v954_v26, 1 }
  0xa1   :  { %1575 = vmatpush.msrb.mxu0 %v1475_v38  ;;  %1615 = vmatpush.msrb.mxu2 %v1507_v43  ;;  %v1473_v11 = vld [vmem:[#allocation5 + $0x630] sm:$0xff]  ;;  %v1024_v13 = vadd.f32 %v1023_v63, %v1022_v51  ;;  %v894_v15 = vld [vmem:[#allocation3 + $0x460] sm:$0xff]  ;;  %v1038_v23 = vadd.f32 %v918_v8, %v914_v7  ;;  %v1504_v33 = vld [vmem:[#allocation5 + $0x728] sm:$0xff]  ;;  %v990_v34 = vadd.f32 %v989_v20, %v988_v6 }
  0xa2   :  { %v1058_v0 = vadd.f32 %v1057_v52, %v928_v44  ;;  %1594 = vmatpush.msrb.mxu1 %v1492_v42  ;;  %v910_v16 = vld [vmem:[#allocation3 + $0x760] sm:$0xff]  ;;  %1634 = vmatpush.msrb.mxu3 %v1524_v48  ;;  %v1505_v19 = vld [vmem:[#allocation5 + $0x730] sm:$0xff]  ;;  %v968_v35 = vadd.f32 %v967_v21, %v894_v15  ;;  %v934_v43 = vadd.f32 %v933_v30, %v932_v17  ;;  %v1520_v45 = vld [vmem:[#allocation5 + $0x7a8] sm:$0xff] }
  0xa3   :  { %1576 = vmatpush.msrb.mxu0 %v1474_v49  ;;  %1616 = vmatpush.msrb.mxu2 %v1506_v57  ;;  %v1025_v27 = vrot.slane %v1024_v13, 2  ;;  %v922_v29 = vld [vmem:[#allocation3 + $0xa40] sm:$0xff]  ;;  %v1489_v31 = vld [vmem:[#allocation5 + $0x6b0] sm:$0xff]  ;;  %v1004_v36 = vadd.f32 %v1003_v22, %v910_v16  ;;  %v991_v46 = vrot.slane %v990_v34, 1  ;;  %v956_v52 = vadd.f32 %v955_v40, %v954_v26  ;;  %v869_v57 = vld [vmem:[#allocation3 + $0x118] sm:$0xff] }
  0xa4   :  { %v1059_v14 = vrot.slane %v1058_v0, 4  ;;  %1595 = vmatpush.msrb.mxu1 %v1491_v56  ;;  %1635 = vmatpush.msrb.mxu3 %v1523_v5  ;;  %v1521_v37 = vld [vmem:[#allocation5 + $0x7b0] sm:$0xff]  ;;  %v1471_v38 = vld [vmem:[#allocation5 + $0x620] sm:$0xff]  ;;  %v969_v49 = vrot.slane %v968_v35, 4  ;;  %v1039_v51 = vadd.f32 %v1038_v23, %v922_v29  ;;  %v935_v56 = vrot.slane %v934_v43, 2  ;;  %v873_v58 = vld [vmem:[#allocation3 + $0x138] sm:$0xff] }
  0xa5   :  { %1577 = vmatpush.msrb.mxu0 %v1473_v11  ;;  %1617 = vmatpush.msrb.mxu2 %v1505_v19  ;;  %v1503_v39 = vld [vmem:[#allocation5 + $0x720] sm:$0xff]  ;;  %v1026_v41 = vadd.f32 %v1025_v27, %v1024_v13  ;;  %v1005_v50 = vrot.slane %v1004_v36, 4  ;;  %v992_v59 = vadd.f32 %v991_v46, %v990_v34  ;;  %v885_v1 = vld [vmem:[#allocation3 + $0x418] sm:$0xff]  ;;  %v957_v16 = vadd.f32 %v873_v58, %v869_v57  ;;  %v1469_v23 = vld [vmem:[#allocation5 + $0x610] sm:$0xff] }
  0xa6   :  { %v1060_v28 = vadd.f32 %v1059_v14, %v1058_v0  ;;  %1596 = vmatpush.msrb.mxu1 %v1490_v18  ;;  %1636 = vmatpush.msrb.mxu3 %v1522_v24  ;;  %v1487_v44 = vld [vmem:[#allocation5 + $0x6a0] sm:$0xff]  ;;  %v970_v62 = vadd.f32 %v969_v49, %v968_v35  ;;  %v877_v0 = vld [vmem:[#allocation3 + $0x158] sm:$0xff]  ;;  %v936_v4 = vadd.f32 %v935_v56, %v934_v43  ;;  %v1485_v24 = vld [vmem:[#allocation5 + $0x690] sm:$0xff] }
  0xa7   :  { %1578 = vmatpush.msrb.mxu0 %v1472_v25  ;;  %v926_v48 = vld [vmem:[#allocation3 + $0xa60] sm:$0xff]  ;;  %1618 = vmatpush.msrb.mxu2 %v1504_v33  ;;  %v1027_v53 = vrot.slane %v1026_v41, 1  ;;  %v1006_v63 = vadd.f32 %v1005_v50, %v1004_v36  ;;  %v881_v6 = vld [vmem:[#allocation3 + $0x178] sm:$0xff]  ;;  %v1166_v10 = vsel %vm373_vm0, %v992_v59, %v956_v52  ;;  %v1501_v30 = vld [vmem:[#allocation5 + $0x710] sm:$0xff] }
  0xa8   :  { %v1061_v42 = vrot.slane %v1060_v28, 2  ;;  %1597 = vmatpush.msrb.mxu1 %v1489_v31  ;;  %1637 = vmatpush.msrb.mxu3 %v1521_v37  ;;  %v1519_v61 = vld [vmem:[#allocation5 + $0x7a0] sm:$0xff]  ;;  %v1040_v5 = vadd.f32 %v1039_v51, %v926_v48  ;;  %v889_v7 = vld [vmem:[#allocation3 + $0x438] sm:$0xff]  ;;  %v971_v11 = vrot.slane %v970_v62, 2  ;;  %v937_v19 = vrot.slane %v936_v4, 1  ;;  %v867_v31 = vld [vmem:[#allocation3 + $0x108] sm:$0xff] }
  0xa9   :  { %1579 = vmatpush.msrb.mxu0 %v1471_v38  ;;  %1619 = vmatpush.msrb.mxu2 %v1503_v39  ;;  %v1028_v2 = vadd.f32 %v1027_v53, %v1026_v41  ;;  %v893_v8 = vld [vmem:[#allocation3 + $0x458] sm:$0xff]  ;;  %v1007_v12 = vrot.slane %v1006_v63, 2  ;;  %v993_v29 = vadd.f32 %v889_v7, %v885_v1  ;;  %v1468_v39 = vld [vmem:[#allocation5 + $0x608] sm:$0xff] }
  0xaa   :  { %v1062_v54 = vadd.f32 %v1061_v42, %v1060_v28  ;;  %1598 = vmatpush.msrb.mxu1 %v1488_v32  ;;  %v901_v9 = vld [vmem:[#allocation3 + $0x718] sm:$0xff]  ;;  %1638 = vmatpush.msrb.mxu3 %v1520_v45  ;;  %v1041_v20 = vrot.slane %v1040_v5, 4  ;;  %v972_v25 = vadd.f32 %v971_v11, %v970_v62  ;;  %v958_v28 = vadd.f32 %v957_v16, %v877_v0  ;;  %v871_v32 = vld [vmem:[#allocation3 + $0x128] sm:$0xff] }
  0xab   :  { %1580 = vmatpush.msrb.mxu0 %v1470_v47  ;;  %v905_v13 = vld [vmem:[#allocation3 + $0x738] sm:$0xff]  ;;  %v1167_v18 = vsel %vm375_vm1, %v1028_v2, %v1166_v10  ;;  %1620 = vmatpush.msrb.mxu2 %v1502_v55  ;;  %v1008_v26 = vadd.f32 %v1007_v12, %v1006_v63  ;;  %v938_v34 = vadd.f32 %v937_v19, %v936_v4  ;;  %v875_v45 = vld [vmem:[#allocation3 + $0x148] sm:$0xff] }
  0xac   :  { %v1063_v3 = vrot.slane %v1062_v54, 1  ;;  %v909_v14 = vld [vmem:[#allocation3 + $0x758] sm:$0xff]  ;;  %1599 = vmatpush.msrb.mxu1 %v1487_v44  ;;  %1639 = vmatpush.msrb.mxu3 %v1519_v61  ;;  %v1042_v35 = vadd.f32 %v1041_v20, %v1040_v5  ;;  %v1029_v37 = vadd.f32 %v905_v13, %v901_v9  ;;  %v973_v40 = vrot.slane %v972_v25, 1  ;;  %v883_v46 = vld [vmem:[#allocation3 + $0x408] sm:$0xff]  ;;  %v1483_v61 = vld [vmem:[#allocation5 + $0x680] sm:$0xff] }
  0xad   :  { %v917_v15 = vld [vmem:[#allocation3 + $0xa18] sm:$0xff]  ;;  %v1009_v41 = vrot.slane %v1008_v26, 1  ;;  %v959_v43 = vadd.f32 %v958_v28, %v881_v6  ;;  %v994_v44 = vadd.f32 %v993_v29, %v893_v8  ;;  %1581 = vmatpush.msrb.mxu0 %v1469_v23  ;;  %v1484_v47 = vld [vmem:[#allocation5 + $0x688] sm:$0xff]  ;;  %1621 = vmatpush.msrb.mxu2 %v1501_v30  ;;  %v939_v52 = vadd.f32 %v871_v32, %v867_v31 }
  0xae   :  { %v1064_v17 = vadd.f32 %v1063_v3, %v1062_v54  ;;  %v897_v21 = vld [vmem:[#allocation3 + $0x478] sm:$0xff]  ;;  %1600 = vmatpush.msrb.mxu1 %v1486_v60  ;;  %v1043_v48 = vrot.slane %v1042_v35, 2  ;;  %v1030_v49 = vadd.f32 %v1029_v37, %v909_v14  ;;  %v887_v51 = vld [vmem:[#allocation3 + $0x428] sm:$0xff]  ;;  %v1517_v54 = vld [vmem:[#allocation5 + $0x790] sm:$0xff]  ;;  %v974_v55 = vadd.f32 %v973_v40, %v972_v25 }
  0xaf   :  { %v921_v22 = vld [vmem:[#allocation3 + $0xa38] sm:$0xff]  ;;  %v1500_v53 = vld [vmem:[#allocation5 + $0x708] sm:$0xff]  ;;  %v1010_v56 = vadd.f32 %v1009_v41, %v1008_v26  ;;  %v960_v57 = vrot.slane %v959_v43, 4  ;;  %v995_v58 = vadd.f32 %v994_v44, %v897_v21  ;;  %1582 = vmatpush.msrb.mxu0 %v1468_v39  ;;  %v1467_v60 = vld [vmem:[#allocation5 + $0x600] sm:$0xff]  ;;  %v940_v2 = vadd.f32 %v939_v52, %v875_v45 }
  0xb0   :  { %v913_v27 = vld [vmem:[#allocation3 + $0x778] sm:$0xff]  ;;  %v1168_v33 = vsel %vm377_vm2, %v1064_v17, %v1167_v18  ;;  %v1065_v50 = vadd.f32 %v921_v22, %v917_v15  ;;  %1601 = vmatpush.msrb.mxu1 %v1485_v24  ;;  %v879_v59 = vld [vmem:[#allocation3 + $0x168] sm:$0xff]  ;;  %v1044_v62 = vadd.f32 %v1043_v48, %v1042_v35  ;;  %v1499_v3 = vld [vmem:[#allocation5 + $0x700] sm:$0xff]  ;;  %v1160_v5 = vsel %vm373_vm0, %v974_v55, %v938_v34 }
  0xb1   :  { %v925_v36 = vld [vmem:[#allocation3 + $0xa58] sm:$0xff]  ;;  %1232 = vmatmul.f32.vlgmr.msra.gmra.mxu2 %v1168_v33  ;;  %v1031_v63 = vadd.f32 %v1030_v49, %v913_v27  ;;  %v891_v1 = vld [vmem:[#allocation3 + $0x448] sm:$0xff]  ;;  %v961_v6 = vadd.f32 %v960_v57, %v959_v43  ;;  %v996_v7 = vrot.slane %v995_v58, 4  ;;  %v975_v10 = vadd.f32 %v887_v51, %v883_v46  ;;  %1583 = vmatpush.msrb.mxu0 %v1467_v60  ;;  %v1515_v34 = vld [vmem:[#allocation5 + $0x780] sm:$0xff] }
  0xb2   :  { %v1518_v38 = vld [vmem:[#allocation5 + $0x798] sm:$0xff]  ;;  %v1066_v0 = vadd.f32 %v1065_v50, %v925_v36  ;;  %1602 = vmatpush.msrb.mxu1 %v1484_v47  ;;  %v1516_v4 = vld [vmem:[#allocation5 + $0x788] sm:$0xff]  ;;  %1622 = vmatpush.msrb.mxu2 %v1500_v53  ;;  %v1045_v11 = vrot.slane %v1044_v62, 1  ;;  %v1161_v12 = vsel %vm375_vm1, %v1010_v56, %v1160_v5  ;;  %v941_v19 = vadd.f32 %v940_v2, %v879_v59  ;;  %v1260_v48 = vld [vmem:[#allocation3 + $0x190] sm:$0xff] }
  0xb3   :  { %v929_v42 = vld [vmem:[#allocation3 + $0xa78] sm:$0xff]  ;;  %1640 = vmatpush.msrb.mxu3 %v1518_v38  ;;  %v899_v8 = vld [vmem:[#allocation3 + $0x708] sm:$0xff]  ;;  %v1032_v13 = vrot.slane %v1031_v63, 4  ;;  %v962_v16 = vrot.slane %v961_v6, 2  ;;  %v997_v17 = vadd.f32 %v996_v7, %v995_v58  ;;  %v976_v20 = vadd.f32 %v975_v10, %v891_v1  ;;  %v1264_v49 = vld [vmem:[#allocation3 + $0x1b0] sm:$0xff] }
  0xb4   :  { %v903_v9 = vld [vmem:[#allocation3 + $0x728] sm:$0xff]  ;;  %v1067_v14 = vadd.f32 %v1066_v0, %v929_v42  ;;  %1603 = vmatpush.msrb.mxu1 %v1483_v61  ;;  %1623 = vmatpush.msrb.mxu2 %v1499_v3  ;;  %v1046_v21 = vadd.f32 %v1045_v11, %v1044_v62  ;;  %v942_v30 = vrot.slane %v941_v19, 4  ;;  %v1874_v32 = vld [vmem:[#allocation5 + $0x878] sm:$0xff]  ;;  %v1268_v59 = vld [vmem:[#allocation3 + $0x1d0] sm:$0xff] }
  0xb5   :  { %1641 = vmatpush.msrb.mxu3 %v1517_v54  ;;  %v895_v15 = vld [vmem:[#allocation3 + $0x468] sm:$0xff]  ;;  %v1033_v22 = vadd.f32 %v1032_v13, %v1031_v63  ;;  %v1011_v27 = vadd.f32 %v903_v9, %v899_v8  ;;  %v963_v28 = vadd.f32 %v962_v16, %v961_v6  ;;  %v998_v29 = vrot.slane %v997_v17, 2  ;;  %v1906_v33 = vld [vmem:[#allocation5 + $0x978] sm:$0xff]  ;;  %v1276_v5 = vld [vmem:[#allocation3 + $0x490] sm:$0xff] }
  0xb6   :  { %v907_v18 = vld [vmem:[#allocation3 + $0x748] sm:$0xff]  ;;  %v1068_v23 = vrot.slane %v1067_v14, 4  ;;  %v977_v31 = vadd.f32 %v976_v20, %v895_v15  ;;  %v1162_v35 = vsel %vm377_vm2, %v1046_v21, %v1161_v12  ;;  %2000 = vmatpush.msra.mxu2 %v1906_v33  ;;  %v943_v42 = vadd.f32 %v942_v30, %v941_v19  ;;  %v1280_v6 = vld [vmem:[#allocation3 + $0x4b0] sm:$0xff] }
  0xb7   :  { %1642 = vmatpush.msrb.mxu3 %v1516_v4  ;;  %v911_v24 = vld [vmem:[#allocation3 + $0x768] sm:$0xff]  ;;  %v1034_v36 = vrot.slane %v1033_v22, 2  ;;  %v1012_v38 = vadd.f32 %v1011_v27, %v907_v18  ;;  %1192 = vmatmul.f32.vlgmr.msra.gmra.mxu0 %v1162_v35  ;;  %v964_v39 = vrot.slane %v963_v28, 1  ;;  %v999_v40 = vadd.f32 %v998_v29, %v997_v17  ;;  %v1272_v4 = vld [vmem:[#allocation3 + $0x1f0] sm:$0xff] }
  0xb8   :  { %v915_v25 = vld [vmem:[#allocation3 + $0xa08] sm:$0xff]  ;;  %v1069_v37 = vadd.f32 %v1068_v23, %v1067_v14  ;;  %v978_v43 = vrot.slane %v977_v31, 4  ;;  %1960 = vmatpush.msra.mxu0 %v1874_v32  ;;  %v944_v53 = vrot.slane %v943_v42, 2  ;;  %v1340_v63 = vadd.f32 %v1264_v49, %v1260_v48  ;;  %v1292_v10 = vld [vmem:[#allocation3 + $0x790] sm:$0xff] }
  0xb9   :  { %v919_v26 = vld [vmem:[#allocation3 + $0xa28] sm:$0xff]  ;;  %1643 = vmatpush.msrb.mxu3 %v1515_v34  ;;  %v1035_v44 = vadd.f32 %v1034_v36, %v1033_v22  ;;  %v1013_v46 = vadd.f32 %v1012_v38, %v911_v24  ;;  %v965_v50 = vadd.f32 %v964_v39, %v963_v28  ;;  %v1000_v51 = vrot.slane %v999_v40, 1  ;;  %v1296_v11 = vld [vmem:[#allocation3 + $0x7b0] sm:$0xff]  ;;  %v1266_v38 = vld [vmem:[#allocation3 + $0x1c0] sm:$0xff] }
  0xba   :  { %v923_v41 = vld [vmem:[#allocation3 + $0xa48] sm:$0xff]  ;;  %v1070_v45 = vrot.slane %v1069_v37, 2  ;;  %v1047_v47 = vadd.f32 %v919_v26, %v915_v25  ;;  %v979_v54 = vadd.f32 %v978_v43, %v977_v31  ;;  %v945_v61 = vadd.f32 %v944_v53, %v943_v42  ;;  %v1284_v17 = vld [vmem:[#allocation3 + $0x4d0] sm:$0xff]  ;;  %v1258_v25 = vld [vmem:[#allocation3 + $0x180] sm:$0xff] }
  0xbb   :  { %v927_v52 = vld [vmem:[#allocation3 + $0xa68] sm:$0xff]  ;;  %v1036_v55 = vrot.slane %v1035_v44, 1  ;;  %v1014_v57 = vrot.slane %v1013_v46, 4  ;;  %v1001_v60 = vadd.f32 %v1000_v51, %v999_v40  ;;  %v1341_v12 = vadd.f32 %v1340_v63, %v1268_v59  ;;  %v1308_v18 = vld [vmem:[#allocation3 + $0xa90] sm:$0xff]  ;;  %v1262_v26 = vld [vmem:[#allocation3 + $0x1a0] sm:$0xff] }
  0xbc   :  { %v1071_v56 = vadd.f32 %v1070_v45, %v1069_v37  ;;  %v1048_v58 = vadd.f32 %v1047_v47, %v923_v41  ;;  %v980_v62 = vrot.slane %v979_v54, 2  ;;  %v946_v8 = vrot.slane %v945_v61, 1  ;;  %v1312_v19 = vld [vmem:[#allocation3 + $0xab0] sm:$0xff]  ;;  %v1274_v43 = vld [vmem:[#allocation3 + $0x480] sm:$0xff] }
  0xbd   :  { %v1037_v0 = vadd.f32 %v1036_v55, %v1035_v44  ;;  %v1015_v2 = vadd.f32 %v1014_v57, %v1013_v46  ;;  %v1169_v7 = vsel %vm373_vm0, %v1001_v60, %v965_v50  ;;  %v1300_v22 = vld [vmem:[#allocation3 + $0x7d0] sm:$0xff]  ;;  %v1342_v23 = vadd.f32 %v1341_v12, %v1272_v4  ;;  %v1278_v44 = vld [vmem:[#allocation3 + $0x4a0] sm:$0xff]  ;;  %v1890_v12 = vld [vmem:[#allocation5 + $0x8f8] sm:$0xff] }
  0xbe   :  { %v1072_v1 = vrot.slane %v1071_v56, 1  ;;  %v1049_v3 = vadd.f32 %v1048_v58, %v927_v52  ;;  %v981_v9 = vadd.f32 %v980_v62, %v979_v54  ;;  %v947_v20 = vadd.f32 %v946_v8, %v945_v61  ;;  %v1288_v30 = vld [vmem:[#allocation3 + $0x4f0] sm:$0xff]  ;;  %v1270_v50 = vld [vmem:[#allocation3 + $0x1e0] sm:$0xff] }
  0xbf   :  { %v1170_v14 = vsel %vm375_vm1, %v1037_v0, %v1169_v7  ;;  %v1016_v15 = vrot.slane %v1015_v2, 2  ;;  %v1376_v24 = vadd.f32 %v1280_v6, %v1276_v5  ;;  %v1316_v31 = vld [vmem:[#allocation3 + $0xad0] sm:$0xff]  ;;  %v1412_v32 = vadd.f32 %v1296_v11, %v1292_v10  ;;  %v1282_v54 = vld [vmem:[#allocation3 + $0x4c0] sm:$0xff] }
  0xc0   :  { %v1073_v13 = vadd.f32 %v1072_v1, %v1071_v56  ;;  %v1050_v16 = vrot.slane %v1049_v3, 4  ;;  %v982_v21 = vrot.slane %v981_v9, 1  ;;  %v1304_v34 = vld [vmem:[#allocation3 + $0x7f0] sm:$0xff]  ;;  %v1343_v35 = vrot.slane %v1342_v23, 4  ;;  %v1290_v59 = vld [vmem:[#allocation3 + $0x780] sm:$0xff] }
  0xc1   :  { %v1017_v28 = vadd.f32 %v1016_v15, %v1015_v2  ;;  %v1377_v36 = vadd.f32 %v1376_v24, %v1284_v17  ;;  %v1448_v37 = vadd.f32 %v1312_v19, %v1308_v18  ;;  %v1320_v41 = vld [vmem:[#allocation3 + $0xaf0] sm:$0xff]  ;;  %v1413_v42 = vadd.f32 %v1412_v32, %v1300_v22  ;;  %v1294_v60 = vld [vmem:[#allocation3 + $0x7a0] sm:$0xff]  ;;  %v1922_v15 = vld [vmem:[#allocation5 + $0x9f8] sm:$0xff] }
  0xc2   :  { %v1171_v27 = vsel %vm377_vm2, %v1073_v13, %v1170_v14  ;;  %v1051_v29 = vadd.f32 %v1050_v16, %v1049_v3  ;;  %v983_v33 = vadd.f32 %v982_v21, %v981_v9  ;;  %v1322_v45 = vadd.f32 %v1262_v26, %v1258_v25  ;;  %v1286_v1 = vld [vmem:[#allocation3 + $0x4e0] sm:$0xff]  ;;  %v1873_v8 = vld [vmem:[#allocation5 + $0x870] sm:$0xff] }
  0xc3   :  { %1252 = vmatmul.f32.vlgmr.msra.gmra.mxu3 %v1171_v27  ;;  %v1018_v39 = vrot.slane %v1017_v28, 1  ;;  %v1344_v47 = vadd.f32 %v1343_v35, %v1342_v23  ;;  %v1378_v48 = vadd.f32 %v1377_v36, %v1288_v30  ;;  %v1449_v49 = vadd.f32 %v1448_v37, %v1316_v31  ;;  %v1298_v6 = vld [vmem:[#allocation3 + $0x7c0] sm:$0xff]  ;;  %v1905_v9 = vld [vmem:[#allocation5 + $0x970] sm:$0xff]  ;;  %1961 = vmatpush.msra.mxu0 %v1873_v8  ;;  %v1261_v27 = vld [vmem:[#allocation3 + $0x198] sm:$0xff] }
  0xc4   :  { %v1052_v40 = vrot.slane %v1051_v29, 2  ;;  %v1163_v46 = vsel %vm373_vm0, %v983_v33, %v947_v20  ;;  %v1414_v53 = vadd.f32 %v1413_v42, %v1304_v34  ;;  %v1323_v55 = vadd.f32 %v1322_v45, %v1266_v38  ;;  %2001 = vmatpush.msra.mxu2 %v1905_v9  ;;  %v1302_v19 = vld [vmem:[#allocation3 + $0x7e0] sm:$0xff]  ;;  %2020 = vmatpush.msra.mxu3 %v1922_v15  ;;  %v1889_v34 = vld [vmem:[#allocation5 + $0x8f0] sm:$0xff]  ;;  %v1872_v8 = vld [vmem:[#allocation5 + $0x868] sm:$0xff] }
  0xc5   :  { %v1019_v51 = vadd.f32 %v1018_v39, %v1017_v28  ;;  %v1345_v56 = vrot.slane %v1344_v47, 2  ;;  %v1379_v57 = vrot.slane %v1378_v48, 4  ;;  %v1450_v58 = vadd.f32 %v1449_v49, %v1320_v41  ;;  %v1306_v20 = vld [vmem:[#allocation3 + $0xa80] sm:$0xff]  ;;  %v1265_v28 = vld [vmem:[#allocation3 + $0x1b8] sm:$0xff]  ;;  %v1888_v9 = vld [vmem:[#allocation5 + $0x8e8] sm:$0xff]  ;;  %1962 = vmatpush.msra.mxu0 %v1872_v8 }
  0xc6   :  { %v1053_v52 = vadd.f32 %v1052_v40, %v1051_v29  ;;  %v1358_v61 = vadd.f32 %v1278_v44, %v1274_v43  ;;  %v1415_v0 = vrot.slane %v1414_v53, 4  ;;  %v1324_v2 = vadd.f32 %v1323_v55, %v1270_v50  ;;  %v1310_v21 = vld [vmem:[#allocation3 + $0xaa0] sm:$0xff]  ;;  %v1269_v39 = vld [vmem:[#allocation3 + $0x1d8] sm:$0xff]  ;;  %v1287_v8 = vld [vmem:[#allocation3 + $0x4e8] sm:$0xff] }
  0xc7   :  { %v1164_v63 = vsel %vm375_vm1, %v1019_v51, %v1163_v46  ;;  %v1346_v3 = vadd.f32 %v1345_v56, %v1344_v47  ;;  %v1380_v4 = vadd.f32 %v1379_v57, %v1378_v48  ;;  %v1451_v5 = vrot.slane %v1450_v58, 4  ;;  %v1314_v32 = vld [vmem:[#allocation3 + $0xac0] sm:$0xff]  ;;  %v1273_v49 = vld [vmem:[#allocation3 + $0x1f8] sm:$0xff] }
  0xc8   :  { %v1054_v62 = vrot.slane %v1053_v52, 1  ;;  %v1359_v7 = vadd.f32 %v1358_v61, %v1282_v54  ;;  %v1416_v11 = vadd.f32 %v1415_v0, %v1414_v53  ;;  %v1325_v13 = vrot.slane %v1324_v2, 4  ;;  %v1318_v42 = vld [vmem:[#allocation3 + $0xae0] sm:$0xff]  ;;  %v1277_v50 = vld [vmem:[#allocation3 + $0x498] sm:$0xff] }
  0xc9   :  { %v1394_v14 = vadd.f32 %v1294_v60, %v1290_v59  ;;  %v1347_v16 = vrot.slane %v1346_v3, 1  ;;  %v1381_v17 = vrot.slane %v1380_v4, 2  ;;  %v1452_v18 = vadd.f32 %v1451_v5, %v1450_v58  ;;  %v1281_v54 = vld [vmem:[#allocation3 + $0x4b8] sm:$0xff] }
  0xca   :  { %v1055_v10 = vadd.f32 %v1054_v62, %v1053_v52  ;;  %v1360_v22 = vadd.f32 %v1359_v7, %v1286_v1  ;;  %v1417_v24 = vrot.slane %v1416_v11, 2  ;;  %v1326_v25 = vadd.f32 %v1325_v13, %v1324_v2  ;;  %v1293_v55 = vld [vmem:[#allocation3 + $0x798] sm:$0xff]  ;;  %v1259_v1 = vld [vmem:[#allocation3 + $0x188] sm:$0xff] }
  0xcb   :  { %v1395_v26 = vadd.f32 %v1394_v14, %v1298_v6  ;;  %v1348_v29 = vadd.f32 %v1347_v16, %v1346_v3  ;;  %v1382_v30 = vadd.f32 %v1381_v17, %v1380_v4  ;;  %v1453_v31 = vrot.slane %v1452_v18, 2  ;;  %v1297_v56 = vld [vmem:[#allocation3 + $0x7b8] sm:$0xff]  ;;  %v1263_v16 = vld [vmem:[#allocation3 + $0x1a8] sm:$0xff]  ;;  %v1921_v17 = vld [vmem:[#allocation5 + $0x9f0] sm:$0xff] }
  0xcc   :  { %v1165_v23 = vsel %vm377_vm2, %v1055_v10, %v1164_v63  ;;  %v1361_v33 = vrot.slane %v1360_v22, 4  ;;  %v1418_v35 = vadd.f32 %v1417_v24, %v1416_v11  ;;  %v1327_v36 = vrot.slane %v1326_v25, 2  ;;  %v1285_v62 = vld [vmem:[#allocation3 + $0x4d8] sm:$0xff]  ;;  %v1904_v10 = vld [vmem:[#allocation5 + $0x968] sm:$0xff]  ;;  %2021 = vmatpush.msra.mxu3 %v1921_v17  ;;  %v1867_v17 = vld [vmem:[#allocation5 + $0x840] sm:$0xff] }
  0xcd   :  { %1212 = vmatmul.f32.vlgmr.msra.gmra.mxu1 %v1165_v23  ;;  %v1396_v37 = vadd.f32 %v1395_v26, %v1302_v19  ;;  %v1430_v38 = vadd.f32 %v1310_v21, %v1306_v20  ;;  %v1383_v40 = vrot.slane %v1382_v30, 1  ;;  %v1454_v41 = vadd.f32 %v1453_v31, %v1452_v18  ;;  %v1309_v63 = vld [vmem:[#allocation3 + $0xa98] sm:$0xff]  ;;  %v1871_v18 = vld [vmem:[#allocation5 + $0x860] sm:$0xff]  ;;  %2002 = vmatpush.msra.mxu2 %v1904_v10  ;;  %v1267_v31 = vld [vmem:[#allocation3 + $0x1c8] sm:$0xff] }
  0xce   :  { %1980 = vmatpush.msra.mxu1 %v1890_v12  ;;  %v1362_v43 = vadd.f32 %v1361_v33, %v1360_v22  ;;  %v1349_v44 = vadd.f32 %v1265_v28, %v1261_v27  ;;  %v1419_v45 = vrot.slane %v1418_v35, 1  ;;  %v1328_v46 = vadd.f32 %v1327_v36, %v1326_v25  ;;  %v1313_v0 = vld [vmem:[#allocation3 + $0xab8] sm:$0xff]  ;;  %v1887_v25 = vld [vmem:[#allocation5 + $0x8e0] sm:$0xff]  ;;  %1963 = vmatpush.msra.mxu0 %v1871_v18  ;;  %v1900_v10 = vld [vmem:[#allocation5 + $0x948] sm:$0xff] }
  0xcf   :  { %v1397_v47 = vrot.slane %v1396_v37, 4  ;;  %v1431_v48 = vadd.f32 %v1430_v38, %v1314_v32  ;;  %v1384_v51 = vadd.f32 %v1383_v40, %v1382_v30  ;;  %v1455_v52 = vrot.slane %v1454_v41, 1  ;;  %v1301_v5 = vld [vmem:[#allocation3 + $0x7d8] sm:$0xff]  ;;  %v1903_v26 = vld [vmem:[#allocation5 + $0x960] sm:$0xff]  ;;  %v1920_v32 = vld [vmem:[#allocation5 + $0x9e8] sm:$0xff] }
  0xd0   :  { %1981 = vmatpush.msra.mxu1 %v1889_v34  ;;  %v1363_v53 = vrot.slane %v1362_v43, 2  ;;  %v1350_v57 = vadd.f32 %v1349_v44, %v1269_v39  ;;  %v1420_v58 = vadd.f32 %v1419_v45, %v1418_v35  ;;  %v1329_v59 = vrot.slane %v1328_v46, 1  ;;  %v1317_v6 = vld [vmem:[#allocation3 + $0xad8] sm:$0xff]  ;;  %v1275_v38 = vld [vmem:[#allocation3 + $0x488] sm:$0xff]  ;;  %2003 = vmatpush.msra.mxu2 %v1903_v26 }
  0xd1   :  { %v1398_v60 = vadd.f32 %v1397_v47, %v1396_v37  ;;  %v1432_v61 = vadd.f32 %v1431_v48, %v1318_v42  ;;  %v1456_v2 = vadd.f32 %v1455_v52, %v1454_v41  ;;  %v1558_v3 = vsel %vm373_vm0, %v1384_v51, %v1348_v29  ;;  %v1289_v15 = vld [vmem:[#allocation3 + $0x4f8] sm:$0xff]  ;;  %v1271_v37 = vld [vmem:[#allocation3 + $0x1e8] sm:$0xff]  ;;  %v1919_v47 = vld [vmem:[#allocation5 + $0x9e0] sm:$0xff]  ;;  %2022 = vmatpush.msra.mxu3 %v1920_v32 }
  0xd2   :  { %v1364_v4 = vadd.f32 %v1363_v53, %v1362_v43  ;;  %v1351_v7 = vadd.f32 %v1350_v57, %v1273_v49  ;;  %v1559_v11 = vsel %vm375_vm1, %v1420_v58, %v1558_v3  ;;  %v1330_v12 = vadd.f32 %v1329_v59, %v1328_v46  ;;  %1982 = vmatpush.msra.mxu1 %v1888_v9  ;;  %v1305_v21 = vld [vmem:[#allocation3 + $0x7f8] sm:$0xff]  ;;  %v1279_v45 = vld [vmem:[#allocation3 + $0x4a8] sm:$0xff]  ;;  %v1869_v52 = vld [vmem:[#allocation5 + $0x850] sm:$0xff] }
  0xd3   :  { %v1399_v13 = vrot.slane %v1398_v60, 2  ;;  %v1433_v14 = vrot.slane %v1432_v61, 4  ;;  %v1560_v19 = vsel %vm377_vm2, %v1456_v2, %v1559_v11  ;;  %v1321_v22 = vld [vmem:[#allocation3 + $0xaf8] sm:$0xff]  ;;  %v1385_v24 = vadd.f32 %v1281_v54, %v1277_v50  ;;  %v1885_v53 = vld [vmem:[#allocation5 + $0x8d0] sm:$0xff]  ;;  %v1283_v58 = vld [vmem:[#allocation3 + $0x4c8] sm:$0xff]  ;;  %2023 = vmatpush.msra.mxu3 %v1919_v47 }
  0xd4   :  { %v1365_v20 = vrot.slane %v1364_v4, 1  ;;  %v1352_v23 = vrot.slane %v1351_v7, 4  ;;  %1624 = vmatmul.f32.vlgmr.msrb.gmra.mxu2 %v1560_v19  ;;  %v1421_v29 = vadd.f32 %v1297_v56, %v1293_v55  ;;  %v1457_v30 = vadd.f32 %v1313_v0, %v1309_v63  ;;  %v1870_v33 = vld [vmem:[#allocation5 + $0x858] sm:$0xff]  ;;  %1983 = vmatpush.msra.mxu1 %v1887_v25  ;;  %v1901_v59 = vld [vmem:[#allocation5 + $0x950] sm:$0xff]  ;;  %v1291_v63 = vld [vmem:[#allocation3 + $0x788] sm:$0xff] }
  0xd5   :  { %v1400_v27 = vadd.f32 %v1399_v13, %v1398_v60  ;;  %v1434_v28 = vadd.f32 %v1433_v14, %v1432_v61  ;;  %v1386_v36 = vadd.f32 %v1385_v24, %v1285_v62  ;;  %v1331_v39 = vadd.f32 %v1263_v16, %v1259_v1  ;;  %v1886_v40 = vld [vmem:[#allocation5 + $0x8d8] sm:$0xff]  ;;  %1964 = vmatpush.msra.mxu0 %v1870_v33  ;;  %v1295_v0 = vld [vmem:[#allocation3 + $0x7a8] sm:$0xff]  ;;  %v1917_v16 = vld [vmem:[#allocation5 + $0x9d0] sm:$0xff] }
  0xd6   :  { %v1366_v34 = vadd.f32 %v1365_v20, %v1364_v4  ;;  %v1353_v35 = vadd.f32 %v1352_v23, %v1351_v7  ;;  %v1422_v43 = vadd.f32 %v1421_v29, %v1301_v5  ;;  %v1458_v44 = vadd.f32 %v1457_v30, %v1317_v6  ;;  %v1902_v46 = vld [vmem:[#allocation5 + $0x958] sm:$0xff]  ;;  %1984 = vmatpush.msra.mxu1 %v1886_v40  ;;  %v1868_v3 = vld [vmem:[#allocation5 + $0x848] sm:$0xff]  ;;  %v1883_v24 = vld [vmem:[#allocation5 + $0x8c0] sm:$0xff] }
  0xd7   :  { %v1401_v41 = vrot.slane %v1400_v27, 1  ;;  %v1435_v42 = vrot.slane %v1434_v28, 2  ;;  %v1387_v50 = vadd.f32 %v1386_v36, %v1289_v15  ;;  %v1332_v51 = vadd.f32 %v1331_v39, %v1267_v31  ;;  %v1918_v60 = vld [vmem:[#allocation5 + $0x9d8] sm:$0xff]  ;;  %2004 = vmatpush.msra.mxu2 %v1902_v46  ;;  %1965 = vmatpush.msra.mxu0 %v1869_v52  ;;  %v1884_v9 = vld [vmem:[#allocation5 + $0x8c8] sm:$0xff]  ;;  %v1899_v30 = vld [vmem:[#allocation5 + $0x940] sm:$0xff] }
  0xd8   :  { %v1552_v48 = vsel %vm373_vm0, %v1366_v34, %v1330_v12  ;;  %v1354_v49 = vrot.slane %v1353_v35, 2  ;;  %v1423_v56 = vadd.f32 %v1422_v43, %v1305_v21  ;;  %v1459_v57 = vadd.f32 %v1458_v44, %v1321_v22  ;;  %1985 = vmatpush.msra.mxu1 %v1885_v53  ;;  %v1299_v13 = vld [vmem:[#allocation3 + $0x7c8] sm:$0xff]  ;;  %2024 = vmatpush.msra.mxu3 %v1918_v60  ;;  %v1898_v43 = vld [vmem:[#allocation5 + $0x938] sm:$0xff]  ;;  %v1915_v44 = vld [vmem:[#allocation5 + $0x9c0] sm:$0xff] }
  0xd9   :  { %v1402_v54 = vadd.f32 %v1401_v41, %v1400_v27  ;;  %v1436_v55 = vadd.f32 %v1435_v42, %v1434_v28  ;;  %v1388_v62 = vrot.slane %v1387_v50, 4  ;;  %v1333_v1 = vadd.f32 %v1332_v51, %v1271_v37  ;;  %2005 = vmatpush.msra.mxu2 %v1901_v59  ;;  %v1307_v21 = vld [vmem:[#allocation3 + $0xa88] sm:$0xff]  ;;  %1966 = vmatpush.msra.mxu0 %v1868_v3  ;;  %v1866_v37 = vld [vmem:[#allocation5 + $0x838] sm:$0xff]  ;;  %v1913_v3 = vld [vmem:[#allocation5 + $0x9b0] sm:$0xff] }
  0xda   :  { %v1355_v61 = vadd.f32 %v1354_v49, %v1353_v35  ;;  %v1367_v2 = vadd.f32 %v1279_v45, %v1275_v38  ;;  %v1424_v6 = vrot.slane %v1423_v56, 4  ;;  %v1460_v7 = vrot.slane %v1459_v57, 4  ;;  %v1311_v22 = vld [vmem:[#allocation3 + $0xaa8] sm:$0xff]  ;;  %1986 = vmatpush.msra.mxu1 %v1884_v9  ;;  %2025 = vmatpush.msra.mxu3 %v1917_v16  ;;  %v1882_v38 = vld [vmem:[#allocation5 + $0x8b8] sm:$0xff]  ;;  %v1865_v49 = vld [vmem:[#allocation5 + $0x830] sm:$0xff] }
  0xdb   :  { %v1437_v4 = vrot.slane %v1436_v55, 1  ;;  %v1553_v5 = vsel %vm375_vm1, %v1402_v54, %v1552_v48  ;;  %v1389_v12 = vadd.f32 %v1388_v62, %v1387_v50  ;;  %v1334_v14 = vrot.slane %v1333_v1, 4  ;;  %v1303_v27 = vld [vmem:[#allocation3 + $0x7e8] sm:$0xff]  ;;  %2006 = vmatpush.msra.mxu2 %v1900_v10  ;;  %1967 = vmatpush.msra.mxu0 %v1867_v17  ;;  %v1881_v50 = vld [vmem:[#allocation5 + $0x8b0] sm:$0xff]  ;;  %v1862_v16 = vld [vmem:[#allocation5 + $0x818] sm:$0xff] }
  0xdc   :  { %v1356_v11 = vrot.slane %v1355_v61, 1  ;;  %v1368_v15 = vadd.f32 %v1367_v2, %v1283_v58  ;;  %v1425_v19 = vadd.f32 %v1424_v6, %v1423_v56  ;;  %v1461_v20 = vadd.f32 %v1460_v7, %v1459_v57  ;;  %v1916_v31 = vld [vmem:[#allocation5 + $0x9c8] sm:$0xff]  ;;  %1987 = vmatpush.msra.mxu1 %v1883_v24  ;;  %v1914_v56 = vld [vmem:[#allocation5 + $0x9b8] sm:$0xff]  ;;  %v1863_v7 = vld [vmem:[#allocation5 + $0x820] sm:$0xff] }
  0xdd   :  { %v1438_v18 = vadd.f32 %v1437_v4, %v1436_v55  ;;  %v1403_v23 = vadd.f32 %v1295_v0, %v1291_v63  ;;  %v1390_v26 = vrot.slane %v1389_v12, 2  ;;  %v1335_v28 = vadd.f32 %v1334_v14, %v1333_v1  ;;  %v1315_v35 = vld [vmem:[#allocation3 + $0xac8] sm:$0xff]  ;;  %2007 = vmatpush.msra.mxu2 %v1899_v30  ;;  %2026 = vmatpush.msra.mxu3 %v1916_v31  ;;  %v1897_v55 = vld [vmem:[#allocation5 + $0x930] sm:$0xff]  ;;  %v1911_v24 = vld [vmem:[#allocation5 + $0x9a0] sm:$0xff] }
  0xde   :  { %v3121_v25 = vadd.f32 %v1356_v11, %v1355_v61  ;;  %v1369_v29 = vadd.f32 %v1368_v15, %v1287_v8  ;;  %v1426_v33 = vrot.slane %v1425_v19, 2  ;;  %v1462_v34 = vrot.slane %v1461_v20, 2  ;;  %v1319_v47 = vld [vmem:[#allocation3 + $0xae8] sm:$0xff]  ;;  %1968 = vmatpush.msra.mxu0 %v1866_v37  ;;  %1988 = vmatpush.msra.mxu1 %v1882_v38  ;;  %v1879_v8 = vld [vmem:[#allocation5 + $0x8a0] sm:$0xff]  ;;  %v1910_v31 = vld [vmem:[#allocation5 + $0x998] sm:$0xff] }
  0xdf   :  { %v1554_v32 = vsel %vm377_vm2, %v1438_v18, %v1553_v5  ;;  %v1404_v36 = vadd.f32 %v1403_v23, %v1299_v13  ;;  %v1391_v39 = vadd.f32 %v1390_v26, %v1389_v12  ;;  %v1336_v40 = vrot.slane %v1335_v28, 2  ;;  %2008 = vmatpush.msra.mxu2 %v1898_v43  ;;  %2027 = vmatpush.msra.mxu3 %v1915_v44  ;;  %v1864_v60 = vld [vmem:[#allocation5 + $0x828] sm:$0xff]  ;;  %v1895_v12 = vld [vmem:[#allocation5 + $0x920] sm:$0xff]  ;;  %v1909_v38 = vld [vmem:[#allocation5 + $0x990] sm:$0xff] }
  0xe0   :  { %1584 = vmatmul.f32.vlgmr.msrb.gmra.mxu0 %v1554_v32  ;;  %v1370_v41 = vrot.slane %v1369_v29, 4  ;;  %v1439_v42 = vadd.f32 %v1311_v22, %v1307_v21  ;;  %v1427_v45 = vadd.f32 %v1426_v33, %v1425_v19  ;;  %v1463_v46 = vadd.f32 %v1462_v34, %v1461_v20  ;;  %v1880_v61 = vld [vmem:[#allocation5 + $0x8a8] sm:$0xff]  ;;  %1989 = vmatpush.msra.mxu1 %v1881_v50  ;;  %v1878_v21 = vld [vmem:[#allocation5 + $0x898] sm:$0xff]  ;;  %v2265_v50 = vld [vmem:[#allocation5 + $0xa70] sm:$0xff] }
  0xe1   :  { %v1405_v48 = vadd.f32 %v1404_v36, %v1303_v27  ;;  %v1392_v51 = vrot.slane %v1391_v39, 1  ;;  %v1337_v52 = vadd.f32 %v1336_v40, %v1335_v28  ;;  %1969 = vmatpush.msra.mxu0 %v1865_v49  ;;  %v1896_v2 = vld [vmem:[#allocation5 + $0x928] sm:$0xff]  ;;  %2009 = vmatpush.msra.mxu2 %v1897_v55  ;;  %v1894_v22 = vld [vmem:[#allocation5 + $0x918] sm:$0xff]  ;;  %v1877_v28 = vld [vmem:[#allocation5 + $0x890] sm:$0xff] }
  0xe2   :  { %v1371_v53 = vadd.f32 %v1370_v41, %v1369_v29  ;;  %v1440_v54 = vadd.f32 %v1439_v42, %v1315_v35  ;;  %v1428_v57 = vrot.slane %v1427_v45, 1  ;;  %v1464_v58 = vrot.slane %v1463_v46, 1  ;;  %2028 = vmatpush.msra.mxu3 %v1914_v56  ;;  %1990 = vmatpush.msra.mxu1 %v1880_v61  ;;  %v1912_v15 = vld [vmem:[#allocation5 + $0x9a8] sm:$0xff]  ;;  %v1893_v29 = vld [vmem:[#allocation5 + $0x910] sm:$0xff]  ;;  %v1875_v41 = vld [vmem:[#allocation5 + $0x880] sm:$0xff] }
  0xe3   :  { %v1406_v59 = vrot.slane %v1405_v48, 4  ;;  %v1393_v62 = vadd.f32 %v1392_v51, %v1391_v39  ;;  %v1338_v63 = vrot.slane %v1337_v52, 1  ;;  %1970 = vmatpush.msra.mxu0 %v1864_v60  ;;  %2010 = vmatpush.msra.mxu2 %v1896_v2  ;;  %v1860_v32 = vld [vmem:[#allocation5 + $0x808] sm:$0xff]  ;;  %v1859_v39 = vld [vmem:[#allocation5 + $0x800] sm:$0xff]  ;;  %v2281_v51 = vld [vmem:[#allocation5 + $0xaf0] sm:$0xff] }
  0xe4   :  { %v1372_v0 = vrot.slane %v1371_v53, 2  ;;  %v1441_v1 = vadd.f32 %v1440_v54, %v1319_v47  ;;  %v1429_v4 = vadd.f32 %v1428_v57, %v1427_v45  ;;  %v1465_v5 = vadd.f32 %v1464_v58, %v1463_v46  ;;  %2029 = vmatpush.msra.mxu3 %v1913_v3  ;;  %1991 = vmatpush.msra.mxu1 %v1879_v8  ;;  %v1876_v35 = vld [vmem:[#allocation5 + $0x888] sm:$0xff]  ;;  %v1891_v42 = vld [vmem:[#allocation5 + $0x900] sm:$0xff]  ;;  %v2266_v45 = vld [vmem:[#allocation5 + $0xa78] sm:$0xff] }
  0xe5   :  { %v1407_v6 = vadd.f32 %v1406_v59, %v1405_v48  ;;  %v1561_v9 = vsel %vm373_vm0, %v1393_v62, %v3121_v25  ;;  %v1339_v18 = vadd.f32 %v1338_v63, %v1337_v52  ;;  %1971 = vmatpush.msra.mxu0 %v1863_v7  ;;  %2011 = vmatpush.msra.mxu2 %v1895_v12  ;;  %v1861_v25 = vld [vmem:[#allocation5 + $0x810] sm:$0xff]  ;;  %v1892_v36 = vld [vmem:[#allocation5 + $0x908] sm:$0xff]  ;;  %v2282_v47 = vld [vmem:[#allocation5 + $0xaf8] sm:$0xff] }
  0xe6   :  { %v1373_v10 = vadd.f32 %v1372_v0, %v1371_v53  ;;  %v1442_v11 = vrot.slane %v1441_v1, 4  ;;  %v1562_v13 = vsel %vm375_vm1, %v1429_v4, %v1561_v9  ;;  %2030 = vmatpush.msra.mxu3 %v1912_v15  ;;  %1992 = vmatpush.msra.mxu1 %v1878_v21  ;;  %v1908_v44 = vld [vmem:[#allocation5 + $0x988] sm:$0xff]  ;;  %v2298_v48 = vld [vmem:[#allocation5 + $0xb78] sm:$0xff]  ;;  %v1907_v49 = vld [vmem:[#allocation5 + $0x980] sm:$0xff] }
  0xe7   :  { %v1408_v14 = vrot.slane %v1407_v6, 2  ;;  %v1563_v17 = vsel %vm377_vm2, %v1465_v5, %v1562_v13  ;;  %1972 = vmatpush.msra.mxu0 %v1862_v16  ;;  %2012 = vmatpush.msra.mxu2 %v1894_v22  ;;  %v2297_v53 = vld [vmem:[#allocation5 + $0xb70] sm:$0xff]  ;;  %v2314_v54 = vld [vmem:[#allocation5 + $0xbf8] sm:$0xff]  ;;  %v2264_v55 = vld [vmem:[#allocation5 + $0xa68] sm:$0xff] }
  0xe8   :  { %v1374_v19 = vrot.slane %v1373_v10, 1  ;;  %v1443_v20 = vadd.f32 %v1442_v11, %v1441_v1  ;;  %1644 = vmatmul.f32.vlgmr.msrb.gmra.mxu3 %v1563_v17  ;;  %1993 = vmatpush.msra.mxu1 %v1877_v28  ;;  %v2280_v56 = vld [vmem:[#allocation5 + $0xae8] sm:$0xff]  ;;  %v2313_v58 = vld [vmem:[#allocation5 + $0xbf0] sm:$0xff]  ;;  %v2263_v59 = vld [vmem:[#allocation5 + $0xa60] sm:$0xff] }
  0xe9   :  { %v1409_v23 = vadd.f32 %v1408_v14, %v1407_v6  ;;  %2031 = vmatpush.msra.mxu3 %v1911_v24  ;;  %1973 = vmatpush.msra.mxu0 %v1861_v25  ;;  %v2296_v57 = vld [vmem:[#allocation5 + $0xb68] sm:$0xff]  ;;  %v2295_v60 = vld [vmem:[#allocation5 + $0xb60] sm:$0xff]  ;;  %v1652_v61 = vld [vmem:[#allocation3 + $0x210] sm:$0xff] }
  0xea   :  { %v1375_v26 = vadd.f32 %v1374_v19, %v1373_v10  ;;  %v1444_v27 = vrot.slane %v1443_v20, 2  ;;  %2013 = vmatpush.msra.mxu2 %v1893_v29  ;;  %1994 = vmatpush.msra.mxu1 %v1876_v35  ;;  %v2279_v62 = vld [vmem:[#allocation5 + $0xae0] sm:$0xff]  ;;  %v2312_v63 = vld [vmem:[#allocation5 + $0xbe8] sm:$0xff]  ;;  %v1656_v0 = vld [vmem:[#allocation3 + $0x230] sm:$0xff] }
  0xeb   :  { %v1410_v30 = vrot.slane %v1409_v23, 1  ;;  %2032 = vmatpush.msra.mxu3 %v1910_v31  ;;  %1974 = vmatpush.msra.mxu0 %v1860_v32  ;;  %v1660_v1 = vld [vmem:[#allocation3 + $0x250] sm:$0xff]  ;;  %v2262_v2 = vld [vmem:[#allocation5 + $0xa58] sm:$0xff]  ;;  %v1732_v7 = vadd.f32 %v1656_v0, %v1652_v61  ;;  %v2311_v9 = vld [vmem:[#allocation5 + $0xbe0] sm:$0xff] }
  0xec   :  { %v1445_v33 = vadd.f32 %v1444_v27, %v1443_v20  ;;  %v1555_v34 = vsel %vm373_vm0, %v1375_v26, %v1339_v18  ;;  %2014 = vmatpush.msra.mxu2 %v1892_v36  ;;  %1995 = vmatpush.msra.mxu1 %v1875_v41  ;;  %v2294_v3 = vld [vmem:[#allocation5 + $0xb58] sm:$0xff]  ;;  %v1668_v4 = vld [vmem:[#allocation3 + $0x510] sm:$0xff]  ;;  %v2260_v27 = vld [vmem:[#allocation5 + $0xa48] sm:$0xff] }
  0xed   :  { %v1411_v37 = vadd.f32 %v1410_v30, %v1409_v23  ;;  %2033 = vmatpush.msra.mxu3 %v1909_v38  ;;  %1975 = vmatpush.msra.mxu0 %v1859_v39  ;;  %v1672_v5 = vld [vmem:[#allocation3 + $0x530] sm:$0xff]  ;;  %v2278_v8 = vld [vmem:[#allocation5 + $0xad8] sm:$0xff]  ;;  %v1733_v19 = vadd.f32 %v1732_v7, %v1660_v1  ;;  %v2292_v28 = vld [vmem:[#allocation5 + $0xb48] sm:$0xff] }
  0xee   :  { %v1446_v40 = vrot.slane %v1445_v33, 1  ;;  %2015 = vmatpush.msra.mxu2 %v1891_v42  ;;  %v1676_v6 = vld [vmem:[#allocation3 + $0x550] sm:$0xff]  ;;  %v1768_v13 = vadd.f32 %v1672_v5, %v1668_v4  ;;  %v2310_v26 = vld [vmem:[#allocation5 + $0xbd8] sm:$0xff]  ;;  %v2276_v32 = vld [vmem:[#allocation5 + $0xac8] sm:$0xff] }
  0xef   :  { %v1556_v43 = vsel %vm375_vm1, %v1411_v37, %v1555_v34  ;;  %2034 = vmatpush.msra.mxu3 %v1908_v44  ;;  %2352 = vmatpush.msrb.mxu0 %v2266_v45  ;;  %v1664_v10 = vld [vmem:[#allocation3 + $0x270] sm:$0xff]  ;;  %v1650_v36 = vld [vmem:[#allocation3 + $0x200] sm:$0xff]  ;;  %v2290_v1 = vld [vmem:[#allocation5 + $0xb38] sm:$0xff] }
  0xf0   :  { %v1447_v46 = vadd.f32 %v1446_v40, %v1445_v33  ;;  %2392 = vmatpush.msrb.mxu2 %v2298_v48  ;;  %v1684_v11 = vld [vmem:[#allocation3 + $0x810] sm:$0xff]  ;;  %v1769_v25 = vadd.f32 %v1768_v13, %v1676_v6  ;;  %v1734_v29 = vadd.f32 %v1733_v19, %v1664_v10  ;;  %v1654_v37 = vld [vmem:[#allocation3 + $0x220] sm:$0xff] }
  0xf1   :  { %2035 = vmatpush.msra.mxu3 %v1907_v49  ;;  %2353 = vmatpush.msrb.mxu0 %v2265_v50  ;;  %v1688_v12 = vld [vmem:[#allocation3 + $0x830] sm:$0xff]  ;;  %v2259_v38 = vld [vmem:[#allocation5 + $0xa40] sm:$0xff]  ;;  %v1714_v45 = vadd.f32 %v1654_v37, %v1650_v36  ;;  %v2304_v37 = vld [vmem:[#allocation5 + $0xba8] sm:$0xff] }
  0xf2   :  { %v1557_v52 = vsel %vm377_vm2, %v1447_v46, %v1556_v43  ;;  %2393 = vmatpush.msrb.mxu2 %v2297_v53  ;;  %v2261_v14 = vld [vmem:[#allocation5 + $0xa50] sm:$0xff]  ;;  %v1804_v20 = vadd.f32 %v1688_v12, %v1684_v11  ;;  %v2291_v39 = vld [vmem:[#allocation5 + $0xb40] sm:$0xff]  ;;  %v1735_v40 = vrot.slane %v1734_v29, 4 }
  0xf3   :  { %1604 = vmatmul.f32.vlgmr.msrb.gmra.mxu1 %v1557_v52  ;;  %2412 = vmatpush.msrb.mxu3 %v2314_v54  ;;  %v2293_v15 = vld [vmem:[#allocation5 + $0xb50] sm:$0xff]  ;;  %v1658_v43 = vld [vmem:[#allocation3 + $0x240] sm:$0xff] }
  0xf4   :  { %2372 = vmatpush.msrb.mxu1 %v2282_v47  ;;  %2354 = vmatpush.msrb.mxu0 %v2264_v55  ;;  %v1680_v16 = vld [vmem:[#allocation3 + $0x570] sm:$0xff]  ;;  %v1666_v44 = vld [vmem:[#allocation3 + $0x500] sm:$0xff]  ;;  %v2308_v47 = vld [vmem:[#allocation5 + $0xbc8] sm:$0xff]  ;;  %v1736_v52 = vadd.f32 %v1735_v40, %v1734_v29 }
  0xf5   :  { %2394 = vmatpush.msrb.mxu2 %v2296_v57  ;;  %2413 = vmatpush.msrb.mxu3 %v2313_v58  ;;  %v1692_v17 = vld [vmem:[#allocation3 + $0x850] sm:$0xff]  ;;  %v1770_v35 = vadd.f32 %v1769_v25, %v1680_v16  ;;  %v2275_v46 = vld [vmem:[#allocation5 + $0xac0] sm:$0xff]  ;;  %v1715_v58 = vadd.f32 %v1714_v45, %v1658_v43 }
  0xf6   :  { %2373 = vmatpush.msrb.mxu1 %v2281_v51  ;;  %v1700_v18 = vld [vmem:[#allocation3 + $0xb10] sm:$0xff]  ;;  %2355 = vmatpush.msrb.mxu0 %v2263_v59  ;;  %v1805_v30 = vadd.f32 %v1804_v20, %v1692_v17  ;;  %v1662_v49 = vld [vmem:[#allocation3 + $0x260] sm:$0xff]  ;;  %v2258_v59 = vld [vmem:[#allocation5 + $0xa38] sm:$0xff] }
  0xf7   :  { %2395 = vmatpush.msrb.mxu2 %v2295_v60  ;;  %v2277_v21 = vld [vmem:[#allocation5 + $0xad0] sm:$0xff]  ;;  %2414 = vmatpush.msrb.mxu3 %v2312_v63  ;;  %v1771_v48 = vrot.slane %v1770_v35, 4  ;;  %v1670_v50 = vld [vmem:[#allocation3 + $0x520] sm:$0xff]  ;;  %v1716_v7 = vadd.f32 %v1715_v58, %v1662_v49  ;;  %v1657_v49 = vld [vmem:[#allocation3 + $0x238] sm:$0xff] }
  0xf8   :  { %2374 = vmatpush.msrb.mxu1 %v2280_v56  ;;  %v1696_v22 = vld [vmem:[#allocation3 + $0x870] sm:$0xff]  ;;  %2356 = vmatpush.msrb.mxu0 %v2262_v2  ;;  %v1674_v51 = vld [vmem:[#allocation3 + $0x540] sm:$0xff]  ;;  %v1750_v63 = vadd.f32 %v1670_v50, %v1666_v44  ;;  %v1737_v2 = vrot.slane %v1736_v52, 2 }
  0xf9   :  { %v1704_v23 = vld [vmem:[#allocation3 + $0xb30] sm:$0xff]  ;;  %2396 = vmatpush.msrb.mxu2 %v2294_v3  ;;  %2415 = vmatpush.msrb.mxu3 %v2311_v9  ;;  %v1806_v41 = vadd.f32 %v1805_v30, %v1696_v22  ;;  %v1682_v55 = vld [vmem:[#allocation3 + $0x800] sm:$0xff]  ;;  %v1772_v60 = vadd.f32 %v1771_v48, %v1770_v35  ;;  %v2306_v22 = vld [vmem:[#allocation5 + $0xbb8] sm:$0xff] }
  0xfa   :  { %v1708_v24 = vld [vmem:[#allocation3 + $0xb50] sm:$0xff]  ;;  %2375 = vmatpush.msrb.mxu1 %v2279_v62  ;;  %v1840_v31 = vadd.f32 %v1704_v23, %v1700_v18  ;;  %2357 = vmatpush.msrb.mxu0 %v2261_v14  ;;  %v1686_v56 = vld [vmem:[#allocation3 + $0x820] sm:$0xff]  ;;  %v1751_v12 = vadd.f32 %v1750_v63, %v1674_v51  ;;  %v1738_v17 = vadd.f32 %v1737_v2, %v1736_v52  ;;  %v2256_v23 = vld [vmem:[#allocation5 + $0xa28] sm:$0xff] }
  0xfb   :  { %v2309_v33 = vld [vmem:[#allocation5 + $0xbd0] sm:$0xff]  ;;  %2397 = vmatpush.msrb.mxu2 %v2293_v15  ;;  %2416 = vmatpush.msrb.mxu3 %v2310_v26  ;;  %v1807_v53 = vrot.slane %v1806_v41, 4  ;;  %v1690_v57 = vld [vmem:[#allocation3 + $0x840] sm:$0xff]  ;;  %v1786_v0 = vadd.f32 %v1686_v56, %v1682_v55  ;;  %v1773_v11 = vrot.slane %v1772_v60, 2  ;;  %v1653_v48 = vld [vmem:[#allocation3 + $0x218] sm:$0xff] }
  0xfc   :  { %v1712_v34 = vld [vmem:[#allocation3 + $0xb70] sm:$0xff]  ;;  %2376 = vmatpush.msrb.mxu1 %v2278_v8  ;;  %v1841_v42 = vadd.f32 %v1840_v31, %v1708_v24  ;;  %2358 = vmatpush.msrb.mxu0 %v2260_v27  ;;  %v1698_v61 = vld [vmem:[#allocation3 + $0xb00] sm:$0xff]  ;;  %v2274_v8 = vld [vmem:[#allocation5 + $0xab8] sm:$0xff]  ;;  %v1739_v31 = vrot.slane %v1738_v17, 1 }
  0xfd   :  { %2398 = vmatpush.msrb.mxu2 %v2292_v28  ;;  %v1702_v62 = vld [vmem:[#allocation3 + $0xb20] sm:$0xff]  ;;  %2417 = vmatpush.msrb.mxu3 %v2309_v33  ;;  %v1808_v3 = vadd.f32 %v1807_v53, %v1806_v41  ;;  %v2257_v10 = vld [vmem:[#allocation5 + $0xa30] sm:$0xff]  ;;  %v1787_v13 = vadd.f32 %v1786_v0, %v1690_v57  ;;  %v2272_v24 = vld [vmem:[#allocation5 + $0xaa8] sm:$0xff]  ;;  %v1774_v25 = vadd.f32 %v1773_v11, %v1772_v60 }
  0xfe   :  { %2377 = vmatpush.msrb.mxu1 %v2277_v21  ;;  %v1842_v54 = vadd.f32 %v1841_v42, %v1712_v34  ;;  %v1678_v5 = vld [vmem:[#allocation3 + $0x560] sm:$0xff]  ;;  %2359 = vmatpush.msrb.mxu0 %v2259_v38  ;;  %v1822_v14 = vadd.f32 %v1702_v62, %v1698_v61  ;;  %v2273_v15 = vld [vmem:[#allocation5 + $0xab0] sm:$0xff]  ;;  %v1717_v21 = vrot.slane %v1716_v7, 4  ;;  %v2288_v28 = vld [vmem:[#allocation5 + $0xb28] sm:$0xff]  ;;  %v1740_v43 = vadd.f32 %v1739_v31, %v1738_v17 }
  0xff   :  { %v1694_v6 = vld [vmem:[#allocation3 + $0x860] sm:$0xff]  ;;  %2399 = vmatpush.msrb.mxu2 %v2291_v39  ;;  %2418 = vmatpush.msrb.mxu3 %v2308_v47  ;;  %v2289_v16 = vld [vmem:[#allocation5 + $0xb30] sm:$0xff]  ;;  %v1809_v18 = vrot.slane %v1808_v3, 2  ;;  %v1752_v26 = vadd.f32 %v1751_v12, %v1678_v5  ;;  %v1775_v38 = vrot.slane %v1774_v25, 1  ;;  %v2270_v51 = vld [vmem:[#allocation5 + $0xa98] sm:$0xff]  ;;  %v1741_v5 = vadd.f32 %v1657_v49, %v1653_v48 }
 0x100   :  { %2378 = vmatpush.msrb.mxu1 %v2276_v32  ;;  %v1843_v4 = vrot.slane %v1842_v54, 4  ;;  %v2307_v9 = vld [vmem:[#allocation5 + $0xbc0] sm:$0xff]  ;;  %2360 = vmatpush.msrb.mxu0 %v2258_v59  ;;  %v1788_v27 = vadd.f32 %v1787_v13, %v1694_v6  ;;  %v2305_v29 = vld [vmem:[#allocation5 + $0xbb0] sm:$0xff]  ;;  %v1718_v34 = vadd.f32 %v1717_v21, %v1716_v7  ;;  %v2286_v52 = vld [vmem:[#allocation5 + $0xb18] sm:$0xff] }
 0x101   :  { %v1706_v20 = vld [vmem:[#allocation3 + $0xb40] sm:$0xff]  ;;  %2400 = vmatpush.msrb.mxu2 %v2290_v1  ;;  %2419 = vmatpush.msrb.mxu3 %v2307_v9  ;;  %v1810_v32 = vadd.f32 %v1809_v18, %v1808_v3  ;;  %v1753_v40 = vrot.slane %v1752_v26, 4  ;;  %v1776_v50 = vadd.f32 %v1775_v38, %v1774_v25  ;;  %v1661_v60 = vld [vmem:[#allocation3 + $0x258] sm:$0xff]  ;;  %v2253_v13 = vld [vmem:[#allocation5 + $0xa10] sm:$0xff] }
 0x102   :  { %2379 = vmatpush.msrb.mxu1 %v2275_v46  ;;  %v1844_v19 = vadd.f32 %v1843_v4, %v1842_v54  ;;  %v2255_v30 = vld [vmem:[#allocation5 + $0xa20] sm:$0xff]  ;;  %2361 = vmatpush.msrb.mxu0 %v2257_v10  ;;  %v1789_v41 = vrot.slane %v1788_v27, 4  ;;  %v1823_v42 = vadd.f32 %v1822_v14, %v1706_v20  ;;  %v2254_v46 = vld [vmem:[#allocation5 + $0xa18] sm:$0xff]  ;;  %v1719_v47 = vrot.slane %v1718_v34, 2  ;;  %v2285_v20 = vld [vmem:[#allocation5 + $0xb10] sm:$0xff] }
 0x103   :  { %2401 = vmatpush.msrb.mxu2 %v2289_v16  ;;  %v2271_v35 = vld [vmem:[#allocation5 + $0xaa0] sm:$0xff]  ;;  %2420 = vmatpush.msrb.mxu3 %v2306_v22  ;;  %v1811_v44 = vrot.slane %v1810_v32, 1  ;;  %v1754_v54 = vadd.f32 %v1753_v40, %v1752_v26  ;;  %v1665_v61 = vld [vmem:[#allocation3 + $0x278] sm:$0xff]  ;;  %v1950_v63 = vsel %vm373_vm0, %v1776_v50, %v1740_v43  ;;  %v1742_v18 = vadd.f32 %v1741_v5, %v1661_v60  ;;  %v1671_v43 = vld [vmem:[#allocation3 + $0x528] sm:$0xff] }
 0x104   :  { %2380 = vmatpush.msrb.mxu1 %v2274_v8  ;;  %v1845_v33 = vrot.slane %v1844_v19, 2  ;;  %v2287_v36 = vld [vmem:[#allocation5 + $0xb20] sm:$0xff]  ;;  %2362 = vmatpush.msrb.mxu0 %v2256_v23  ;;  %v1790_v55 = vadd.f32 %v1789_v41, %v1788_v27  ;;  %v1720_v58 = vadd.f32 %v1719_v47, %v1718_v34  ;;  %v1669_v62 = vld [vmem:[#allocation3 + $0x518] sm:$0xff]  ;;  %v1651_v27 = vld [vmem:[#allocation3 + $0x208] sm:$0xff]  ;;  %v409_v34 = vpop.f32.mrf.mxu0 }
 0x105   :  { %v1710_v39 = vld [vmem:[#allocation3 + $0xb60] sm:$0xff]  ;;  %2402 = vmatpush.msrb.mxu2 %v2288_v28  ;;  %2421 = vmatpush.msrb.mxu3 %v2305_v29  ;;  %v1812_v56 = vadd.f32 %v1811_v44, %v1810_v32  ;;  %v1755_v0 = vrot.slane %v1754_v54, 2  ;;  %v1673_v2 = vld [vmem:[#allocation3 + $0x538] sm:$0xff]  ;;  %v1743_v32 = vadd.f32 %v1742_v18, %v1665_v61  ;;  %v2284_v44 = vld [vmem:[#allocation5 + $0xb08] sm:$0xff] }
 0x106   :  { %2381 = vmatpush.msrb.mxu1 %v2273_v15  ;;  %v1846_v45 = vadd.f32 %v1845_v33, %v1844_v19  ;;  %v2303_v53 = vld [vmem:[#allocation5 + $0xba0] sm:$0xff]  ;;  %v1824_v59 = vadd.f32 %v1823_v42, %v1710_v39  ;;  %2363 = vmatpush.msrb.mxu0 %v2255_v30  ;;  %v1791_v1 = vrot.slane %v1790_v55, 2  ;;  %v1685_v3 = vld [vmem:[#allocation3 + $0x818] sm:$0xff]  ;;  %v1721_v8 = vrot.slane %v1720_v58, 1  ;;  %v2269_v19 = vld [vmem:[#allocation5 + $0xa90] sm:$0xff] }
 0x107   :  { %2403 = vmatpush.msrb.mxu2 %v2287_v36  ;;  %v1689_v4 = vld [vmem:[#allocation3 + $0x838] sm:$0xff]  ;;  %2422 = vmatpush.msrb.mxu3 %v2304_v37  ;;  %v1951_v7 = vsel %vm375_vm1, %v1812_v56, %v1950_v63  ;;  %v2920_v12 = vld [vmem:[#allocation7] ss:$0 sm:$0xff]  ;;  %v1756_v14 = vadd.f32 %v1755_v0, %v1754_v54  ;;  %v1777_v33 = vadd.f32 %v1673_v2, %v1669_v62  ;;  %v2252_v36 = vld [vmem:[#allocation5 + $0xa08] sm:$0xff]  ;;  %v1744_v47 = vrot.slane %v1743_v32, 4 }
 0x108   :  { %2382 = vmatpush.msrb.mxu1 %v2272_v24  ;;  %v1847_v57 = vrot.slane %v1846_v45, 1  ;;  %v1825_v9 = vrot.slane %v1824_v59, 4  ;;  %v1677_v10 = vld [vmem:[#allocation3 + $0x558] sm:$0xff]  ;;  %2364 = vmatpush.msrb.mxu0 %v2254_v46  ;;  %v1792_v15 = vadd.f32 %v1791_v1, %v1790_v55  ;;  %v1722_v22 = vadd.f32 %v1721_v8, %v1720_v58  ;;  %v2268_v37 = vld [vmem:[#allocation5 + $0xa88] sm:$0xff]  ;;  %v2301_v50 = vld [vmem:[#allocation5 + $0xb90] sm:$0xff] }
 0x109   :  { %v1701_v11 = vld [vmem:[#allocation3 + $0xb18] sm:$0xff]  ;;  %2404 = vmatpush.msrb.mxu2 %v2286_v52  ;;  %2423 = vmatpush.msrb.mxu3 %v2303_v53  ;;  %v1757_v28 = vrot.slane %v1756_v14, 1  ;;  %v1813_v39 = vadd.f32 %v1689_v4, %v1685_v3  ;;  %v3134_v41 = vadd.f32 %v2920_v12, %v409_v34  ;;  %v1667_v42 = vld [vmem:[#allocation3 + $0x508] sm:$0xff]  ;;  %v1778_v48 = vadd.f32 %v1777_v33, %v1677_v10  ;;  %v2283_v58 = vld [vmem:[#allocation5 + $0xb00] sm:$0xff] }
 0x10a   :  { %2383 = vmatpush.msrb.mxu1 %v2271_v35  ;;  %v1848_v6 = vadd.f32 %v1847_v57, %v1846_v45  ;;  %v1693_v16 = vld [vmem:[#allocation3 + $0x858] sm:$0xff]  ;;  %v1826_v23 = vadd.f32 %v1825_v9, %v1824_v59  ;;  %v1793_v29 = vrot.slane %v1792_v15, 1  ;;  %2365 = vmatpush.msrb.mxu0 %v2253_v13  ;;  %v1655_v35 = vld [vmem:[#allocation3 + $0x228] sm:$0xff]  ;;  %v2267_v57 = vld [vmem:[#allocation5 + $0xa80] sm:$0xff]  ;;  %v1745_v60 = vadd.f32 %v1744_v47, %v1743_v32 }
 0x10b   :  { %v1705_v17 = vld [vmem:[#allocation3 + $0xb38] sm:$0xff]  ;;  %2405 = vmatpush.msrb.mxu2 %v2285_v20  ;;  %v1758_v45 = vadd.f32 %v1757_v28, %v1756_v14  ;;  %v1659_v49 = vld [vmem:[#allocation3 + $0x248] sm:$0xff]  ;;  %v1814_v53 = vadd.f32 %v1813_v39, %v1693_v16  ;;  %v1723_v56 = vadd.f32 %v1655_v35, %v1651_v27  ;;  %v1759_v0 = vadd.f32 %v1671_v43, %v1667_v42 }
 0x10c   :  { %v1952_v21 = vsel %vm377_vm2, %v1848_v6, %v1951_v7  ;;  %2384 = vmatpush.msrb.mxu1 %v2270_v51  ;;  %v1681_v24 = vld [vmem:[#allocation3 + $0x578] sm:$0xff]  ;;  %v1827_v38 = vrot.slane %v1826_v23, 2  ;;  %v1849_v40 = vadd.f32 %v1705_v17, %v1701_v11  ;;  %v1794_v46 = vadd.f32 %v1793_v29, %v1792_v15  ;;  %2366 = vmatpush.msrb.mxu0 %v2252_v36  ;;  %v2251_v51 = vld [vmem:[#allocation5 + $0xa00] sm:$0xff]  ;;  %v1675_v55 = vld [vmem:[#allocation3 + $0x548] sm:$0xff] }
 0x10d   :  { %v1709_v25 = vld [vmem:[#allocation3 + $0xb58] sm:$0xff]  ;;  %2016 = vmatmul.f32.vlgmr.msra.gmra.mxu2 %v1952_v21  ;;  %v1944_v59 = vsel %vm373_vm0, %v1758_v45, %v1722_v22  ;;  %v1779_v61 = vadd.f32 %v1778_v48, %v1681_v24  ;;  %v1683_v62 = vld [vmem:[#allocation3 + $0x808] sm:$0xff]  ;;  %v1746_v8 = vrot.slane %v1745_v60, 2  ;;  %v1724_v11 = vadd.f32 %v1723_v56, %v1659_v49  ;;  %v2466_v24 = vld [vmem:[%s3759_s3 + $0xf0] sm:$0xff]  ;;  %v429_v49 = vpop.f32.mrf.mxu1 }
 0x10e   :  { %v2302_v26 = vld [vmem:[#allocation5 + $0xb98] sm:$0xff]  ;;  %2385 = vmatpush.msrb.mxu1 %v2269_v19  ;;  %v1828_v52 = vadd.f32 %v1827_v38, %v1826_v23  ;;  %v1850_v54 = vadd.f32 %v1849_v40, %v1709_v25  ;;  %v1687_v63 = vld [vmem:[#allocation3 + $0x828] sm:$0xff]  ;;  %2406 = vmatpush.msrb.mxu2 %v2284_v44  ;;  %v1945_v3 = vsel %vm375_vm1, %v1794_v46, %v1944_v59  ;;  %v2299_v29 = vld [vmem:[#allocation5 + $0xb80] sm:$0xff] }
 0x10f   :  { %v1697_v30 = vld [vmem:[#allocation3 + $0x878] sm:$0xff]  ;;  %2424 = vmatpush.msrb.mxu3 %v2302_v26  ;;  %v2300_v1 = vld [vmem:[#allocation5 + $0xb88] sm:$0xff]  ;;  %2367 = vmatpush.msrb.mxu0 %v2251_v51  ;;  %v1780_v9 = vrot.slane %v1779_v61, 4  ;;  %v1760_v12 = vadd.f32 %v1759_v0, %v1675_v55  ;;  %v1795_v17 = vadd.f32 %v1687_v63, %v1683_v62  ;;  %v1747_v18 = vadd.f32 %v1746_v8, %v1745_v60  ;;  %v2044_v59 = vld [vmem:[#allocation3 + $0x290] sm:$0xff] }
 0x110   :  { %v1713_v31 = vld [vmem:[#allocation3 + $0xb78] sm:$0xff]  ;;  %2386 = vmatpush.msrb.mxu1 %v2268_v37  ;;  %v1829_v2 = vrot.slane %v1828_v52, 1  ;;  %v1815_v4 = vadd.f32 %v1814_v53, %v1697_v30  ;;  %v1663_v6 = vld [vmem:[#allocation3 + $0x268] sm:$0xff]  ;;  %2407 = vmatpush.msrb.mxu2 %v2283_v58  ;;  %v430_v53 = vadd.f32 %v429_v49, %v3134_v41  ;;  %v449_v58 = vpop.f32.mrf.mxu2  ;;  %v2048_v60 = vld [vmem:[#allocation3 + $0x2b0] sm:$0xff] }
 0x111   :  { %v1851_v5 = vadd.f32 %v1850_v54, %v1713_v31  ;;  %v1679_v7 = vld [vmem:[#allocation3 + $0x568] sm:$0xff]  ;;  %2425 = vmatpush.msrb.mxu3 %v2301_v50  ;;  %v1781_v19 = vadd.f32 %v1780_v9, %v1779_v61  ;;  %v1725_v22 = vadd.f32 %v1724_v11, %v1663_v6  ;;  %v1748_v30 = vrot.slane %v1747_v18, 1  ;;  %v2056_v8 = vld [vmem:[#allocation3 + $0x2f0] sm:$0xff]  ;;  %v2066_v49 = vld [vmem:[#allocation3 + $0x5c0] sm:$0xff] }
 0x112   :  { %v1691_v10 = vld [vmem:[#allocation3 + $0x848] sm:$0xff]  ;;  %2387 = vmatpush.msrb.mxu1 %v2267_v57  ;;  %v1830_v13 = vadd.f32 %v1829_v2, %v1828_v52  ;;  %v1816_v14 = vrot.slane %v1815_v4, 4  ;;  %v1761_v23 = vadd.f32 %v1760_v12, %v1679_v7  ;;  %v450_v0 = vadd.f32 %v449_v58, %v430_v53  ;;  %v2064_v2 = vld [vmem:[#allocation3 + $0x5b0] sm:$0xff]  ;;  %v2078_v53 = vld [vmem:[#allocation3 + $0x8a0] sm:$0xff] }
 0x113   :  { %v1852_v15 = vrot.slane %v1851_v5, 4  ;;  %v1695_v16 = vld [vmem:[#allocation3 + $0x868] sm:$0xff]  ;;  %2426 = vmatpush.msrb.mxu3 %v2300_v1  ;;  %v1796_v28 = vadd.f32 %v1795_v17, %v1691_v10  ;;  %v1782_v31 = vrot.slane %v1781_v19, 2  ;;  %v1726_v33 = vrot.slane %v1725_v22, 4  ;;  %v2060_v1 = vld [vmem:[#allocation3 + $0x590] sm:$0xff] }
 0x114   :  { %v1699_v20 = vld [vmem:[#allocation3 + $0xb08] sm:$0xff]  ;;  %v1946_v25 = vsel %vm377_vm2, %v1830_v13, %v1945_v3  ;;  %v1817_v26 = vadd.f32 %v1816_v14, %v1815_v4  ;;  %v1762_v34 = vrot.slane %v1761_v23, 4  ;;  %v1749_v39 = vadd.f32 %v1748_v30, %v1747_v18  ;;  %v2052_v7 = vld [vmem:[#allocation3 + $0x2d0] sm:$0xff] }
 0x115   :  { %v1703_v21 = vld [vmem:[#allocation3 + $0xb28] sm:$0xff]  ;;  %v1853_v27 = vadd.f32 %v1852_v15, %v1851_v5  ;;  %1976 = vmatmul.f32.vlgmr.msra.gmra.mxu0 %v1946_v25  ;;  %2427 = vmatpush.msrb.mxu3 %v2299_v29  ;;  %v1797_v37 = vadd.f32 %v1796_v28, %v1695_v16  ;;  %v1783_v40 = vadd.f32 %v1782_v31, %v1781_v19  ;;  %v2068_v11 = vld [vmem:[#allocation3 + $0x5d0] sm:$0xff]  ;;  %v2042_v28 = vld [vmem:[#allocation3 + $0x280] sm:$0xff] }
 0x116   :  { %v1707_v32 = vld [vmem:[#allocation3 + $0xb48] sm:$0xff]  ;;  %v1818_v35 = vrot.slane %v1817_v26, 2  ;;  %v1831_v38 = vadd.f32 %v1703_v21, %v1699_v20  ;;  %2654 = vmatpush.msra.mxu0 %v2466_v24  ;;  %v1727_v43 = vadd.f32 %v1726_v33, %v1725_v22  ;;  %v1763_v44 = vadd.f32 %v1762_v34, %v1761_v23  ;;  %v2076_v12 = vld [vmem:[#allocation3 + $0x890] sm:$0xff]  ;;  %v469_v33 = vpop.f32.mrf.mxu3  ;;  %v2046_v34 = vld [vmem:[#allocation3 + $0x2a0] sm:$0xff] }
 0x117   :  { %v1854_v36 = vrot.slane %v1853_v27, 2  ;;  %v1711_v42 = vld [vmem:[#allocation3 + $0xb68] sm:$0xff]  ;;  %v1798_v47 = vrot.slane %v1797_v37, 4  ;;  %v1784_v50 = vrot.slane %v1783_v40, 1  ;;  %v2080_v13 = vld [vmem:[#allocation3 + $0x8b0] sm:$0xff]  ;;  %v2124_v14 = vadd.f32 %v2048_v60, %v2044_v59  ;;  %v2054_v60 = vld [vmem:[#allocation3 + $0x2e0] sm:$0xff] }
 0x118   :  { %v1819_v45 = vadd.f32 %v1818_v35, %v1817_v26  ;;  %v1832_v48 = vadd.f32 %v1831_v38, %v1707_v32  ;;  %v1728_v51 = vrot.slane %v1727_v43, 2  ;;  %v1764_v52 = vrot.slane %v1763_v44, 2  ;;  %v2072_v18 = vld [vmem:[#allocation3 + $0x5f0] sm:$0xff]  ;;  %v2058_v35 = vld [vmem:[#allocation3 + $0x580] sm:$0xff] }
 0x119   :  { %v1855_v46 = vadd.f32 %v1854_v36, %v1853_v27  ;;  %v1799_v56 = vadd.f32 %v1798_v47, %v1797_v37  ;;  %v1785_v61 = vadd.f32 %v1784_v50, %v1783_v40  ;;  %v2092_v19 = vld [vmem:[#allocation3 + $0xb90] sm:$0xff]  ;;  %v2160_v21 = vadd.f32 %v2064_v2, %v2060_v1  ;;  %v2062_v36 = vld [vmem:[#allocation3 + $0x5a0] sm:$0xff] }
 0x11a   :  { %v1820_v54 = vrot.slane %v1819_v45, 1  ;;  %v1833_v57 = vadd.f32 %v1832_v48, %v1711_v42  ;;  %v1729_v62 = vadd.f32 %v1728_v51, %v1727_v43  ;;  %v1765_v63 = vadd.f32 %v1764_v52, %v1763_v44  ;;  %v2096_v20 = vld [vmem:[#allocation3 + $0xbb0] sm:$0xff]  ;;  %v2050_v48 = vld [vmem:[#allocation3 + $0x2c0] sm:$0xff] }
 0x11b   :  { %v1856_v55 = vrot.slane %v1855_v46, 1  ;;  %v1800_v5 = vrot.slane %v1799_v56, 2  ;;  %v1953_v41 = vsel %vm373_vm0, %v1785_v61, %v1749_v39  ;;  %v2084_v25 = vld [vmem:[#allocation3 + $0x8d0] sm:$0xff]  ;;  %v2125_v27 = vadd.f32 %v2124_v14, %v2052_v7  ;;  %v2074_v52 = vld [vmem:[#allocation3 + $0x880] sm:$0xff] }
 0x11c   :  { %v1821_v3 = vadd.f32 %v1820_v54, %v1819_v45  ;;  %v1834_v6 = vrot.slane %v1833_v57, 4  ;;  %v1730_v9 = vrot.slane %v1729_v62, 1  ;;  %v1766_v10 = vrot.slane %v1765_v63, 1  ;;  %v2100_v26 = vld [vmem:[#allocation3 + $0xbd0] sm:$0xff]  ;;  %v2070_v61 = vld [vmem:[#allocation3 + $0x5e0] sm:$0xff] }
 0x11d   :  { %v1857_v4 = vadd.f32 %v1856_v55, %v1855_v46  ;;  %v1801_v16 = vadd.f32 %v1800_v5, %v1799_v56  ;;  %v2161_v31 = vadd.f32 %v2160_v21, %v2068_v11  ;;  %v2196_v32 = vadd.f32 %v2080_v13, %v2076_v12  ;;  %v2088_v38 = vld [vmem:[#allocation3 + $0x8f0] sm:$0xff]  ;;  %v2086_v7 = vld [vmem:[#allocation3 + $0x8e0] sm:$0xff] }
 0x11e   :  { %v1954_v15 = vsel %vm375_vm1, %v1821_v3, %v1953_v41  ;;  %v1835_v17 = vadd.f32 %v1834_v6, %v1833_v57  ;;  %v1731_v23 = vadd.f32 %v1730_v9, %v1729_v62  ;;  %v1767_v24 = vadd.f32 %v1766_v10, %v1765_v63  ;;  %v2104_v45 = vld [vmem:[#allocation3 + $0xbf0] sm:$0xff]  ;;  %v2090_v10 = vld [vmem:[#allocation3 + $0xb80] sm:$0xff] }
 0x11f   :  { %v1955_v22 = vsel %vm377_vm2, %v1857_v4, %v1954_v15  ;;  %v1802_v29 = vrot.slane %v1801_v16, 1  ;;  %v2126_v39 = vadd.f32 %v2125_v27, %v2056_v8  ;;  %v2232_v40 = vadd.f32 %v2096_v20, %v2092_v19  ;;  %v2498_v6 = vld [vmem:[%s3759_s3 + $0x1f0] sm:$0xff]  ;;  %v2094_v11 = vld [vmem:[#allocation3 + $0xba0] sm:$0xff] }
 0x120   :  { %2036 = vmatmul.f32.vlgmr.msra.gmra.mxu3 %v1955_v22  ;;  %v1836_v30 = vrot.slane %v1835_v17, 2  ;;  %v1947_v37 = vsel %vm373_vm0, %v1767_v24, %v1731_v23  ;;  %v470_v42 = vadd.f32 %v469_v33, %v450_v0  ;;  %v2162_v46 = vadd.f32 %v2161_v31, %v2072_v18  ;;  %v2082_v0 = vld [vmem:[#allocation3 + $0x8c0] sm:$0xff] }
 0x121   :  { %v1803_v43 = vadd.f32 %v1802_v29, %v1801_v16  ;;  %v2197_v47 = vadd.f32 %v2196_v32, %v2084_v25  ;;  %v2127_v50 = vrot.slane %v2126_v39, 4  ;;  %v2233_v51 = vadd.f32 %v2232_v40, %v2100_v26  ;;  %v2464_v14 = vld [vmem:[%s3759_s3 + $0xe0] sm:$0xff] }
 0x122   :  { %v1837_v44 = vadd.f32 %v1836_v30, %v1835_v17  ;;  %472 = vst [vmem:[#allocation2] sm:$0xf] %v470_v42  ;;  %v2106_v54 = vadd.f32 %v2046_v34, %v2042_v28  ;;  %v2142_v55 = vadd.f32 %v2062_v36, %v2058_v35  ;;  %v2163_v58 = vrot.slane %v2162_v46, 4  ;;  %2655 = vmatpush.msra.mxu0 %v2464_v14  ;;  %v2098_v21 = vld [vmem:[#allocation3 + $0xbc0] sm:$0xff]  ;;  %v2097_v14 = vld [vmem:[#allocation3 + $0xbb8] sm:$0xff] }
 0x123   :  { %v1948_v57 = vsel %vm375_vm1, %v1803_v43, %v1947_v37  ;;  %v2198_v59 = vadd.f32 %v2197_v47, %v2088_v38  ;;  %v2128_v62 = vadd.f32 %v2127_v50, %v2126_v39  ;;  %v2234_v63 = vadd.f32 %v2233_v51, %v2104_v45  ;;  %v2496_v24 = vld [vmem:[%s3759_s3 + $0x1e0] sm:$0xff]  ;;  %v2045_v38 = vld [vmem:[#allocation3 + $0x298] sm:$0xff] }
 0x124   :  { %v1838_v56 = vrot.slane %v1837_v44, 1  ;;  %v2107_v1 = vadd.f32 %v2106_v54, %v2050_v48  ;;  %v2143_v2 = vadd.f32 %v2142_v55, %v2066_v49  ;;  %v2164_v4 = vadd.f32 %v2163_v58, %v2162_v46  ;;  %v2102_v31 = vld [vmem:[#allocation3 + $0xbe0] sm:$0xff]  ;;  %v2049_v39 = vld [vmem:[#allocation3 + $0x2b8] sm:$0xff] }
 0x125   :  { %v2199_v5 = vrot.slane %v2198_v59, 4  ;;  %v2178_v8 = vadd.f32 %v2078_v53, %v2074_v52  ;;  %v2129_v41 = vrot.slane %v2128_v62, 2  ;;  %v2235_v9 = vrot.slane %v2234_v63, 4  ;;  %v2053_v45 = vld [vmem:[#allocation3 + $0x2d8] sm:$0xff] }
 0x126   :  { %v1839_v3 = vadd.f32 %v1838_v56, %v1837_v44  ;;  %v2108_v12 = vadd.f32 %v2107_v1, %v2054_v60  ;;  %v2144_v13 = vadd.f32 %v2143_v2, %v2070_v61  ;;  %v2165_v16 = vrot.slane %v2164_v4, 2  ;;  %v2057_v50 = vld [vmem:[#allocation3 + $0x2f8] sm:$0xff]  ;;  %v2462_v1 = vld [vmem:[%s3759_s3 + $0xd0] sm:$0xff] }
 0x127   :  { %v2200_v17 = vadd.f32 %v2199_v5, %v2198_v59  ;;  %v2179_v18 = vadd.f32 %v2178_v8, %v2082_v0  ;;  %v2130_v19 = vadd.f32 %v2129_v41, %v2128_v62  ;;  %v2236_v20 = vadd.f32 %v2235_v9, %v2234_v63  ;;  %v2061_v51 = vld [vmem:[#allocation3 + $0x598] sm:$0xff]  ;;  %v2494_v2 = vld [vmem:[%s3759_s3 + $0x1d0] sm:$0xff]  ;;  %v2921_v41 = vld [vmem:[#allocation7 + $0x1] ss:$0 sm:$0xff]  ;;  %2656 = vmatpush.msra.mxu0 %v2462_v1 }
 0x128   :  { %v1949_v15 = vsel %vm377_vm2, %v1839_v3, %v1948_v57  ;;  %v2109_v22 = vrot.slane %v2108_v12, 4  ;;  %v2145_v23 = vrot.slane %v2144_v13, 4  ;;  %v2166_v25 = vadd.f32 %v2165_v16, %v2164_v4  ;;  %v2065_v52 = vld [vmem:[#allocation3 + $0x5b8] sm:$0xff]  ;;  %v2460_v9 = vld [vmem:[%s3759_s3 + $0xc0] sm:$0xff]  ;;  %v2087_v1 = vld [vmem:[#allocation3 + $0x8e8] sm:$0xff] }
 0x129   :  { %1996 = vmatmul.f32.vlgmr.msra.gmra.mxu1 %v1949_v15  ;;  %v2201_v26 = vrot.slane %v2200_v17, 2  ;;  %v2180_v27 = vadd.f32 %v2179_v18, %v2086_v7  ;;  %v2214_v28 = vadd.f32 %v2094_v11, %v2090_v10  ;;  %v2131_v29 = vrot.slane %v2130_v19, 1  ;;  %v2069_v56 = vld [vmem:[#allocation3 + $0x5d8] sm:$0xff]  ;;  %v2492_v10 = vld [vmem:[%s3759_s3 + $0x1c0] sm:$0xff]  ;;  %v2458_v18 = vld [vmem:[%s3759_s3 + $0xb0] sm:$0xff]  ;;  %2657 = vmatpush.msra.mxu0 %v2460_v9 }
 0x12a   :  { %2674 = vmatpush.msra.mxu1 %v2498_v6  ;;  %v2237_v30 = vrot.slane %v2236_v20, 2  ;;  %v2110_v32 = vadd.f32 %v2109_v22, %v2108_v12  ;;  %v2146_v33 = vadd.f32 %v2145_v23, %v2144_v13  ;;  %v2167_v34 = vrot.slane %v2166_v25, 1  ;;  %v2077_v57 = vld [vmem:[#allocation3 + $0x898] sm:$0xff] }
 0x12b   :  { %v2202_v35 = vadd.f32 %v2201_v26, %v2200_v17  ;;  %v2181_v36 = vrot.slane %v2180_v27, 4  ;;  %v2215_v37 = vadd.f32 %v2214_v28, %v2098_v21  ;;  %v2132_v40 = vadd.f32 %v2131_v29, %v2130_v19  ;;  %v2081_v58 = vld [vmem:[#allocation3 + $0x8b8] sm:$0xff]  ;;  %v801_v17 = vpop.f32.mrf.mxu0  ;;  %v2490_v26 = vld [vmem:[%s3759_s3 + $0x1b0] sm:$0xff]  ;;  %2658 = vmatpush.msra.mxu0 %v2458_v18 }
 0x12c   :  { %2675 = vmatpush.msra.mxu1 %v2496_v24  ;;  %v2238_v42 = vadd.f32 %v2237_v30, %v2236_v20  ;;  %v2111_v43 = vrot.slane %v2110_v32, 2  ;;  %v2147_v44 = vrot.slane %v2146_v33, 2  ;;  %v2168_v46 = vadd.f32 %v2167_v34, %v2166_v25  ;;  %v2093_v0 = vld [vmem:[#allocation3 + $0xb98] sm:$0xff]  ;;  %v2043_v24 = vld [vmem:[#allocation3 + $0x288] sm:$0xff]  ;;  %v2450_v18 = vld [vmem:[%s3759_s3 + $0x70] sm:$0xff] }
 0x12d   :  { %v2203_v47 = vrot.slane %v2202_v35, 1  ;;  %v2182_v48 = vadd.f32 %v2181_v36, %v2180_v27  ;;  %v2216_v49 = vadd.f32 %v2215_v37, %v2102_v31  ;;  %v2133_v59 = vadd.f32 %v2049_v39, %v2045_v38  ;;  %v2073_v6 = vld [vmem:[#allocation3 + $0x5f8] sm:$0xff]  ;;  %v2047_v25 = vld [vmem:[#allocation3 + $0x2a8] sm:$0xff] }
 0x12e   :  { %v2239_v53 = vrot.slane %v2238_v42, 1  ;;  %v2112_v54 = vadd.f32 %v2111_v43, %v2110_v32  ;;  %v2148_v55 = vadd.f32 %v2147_v44, %v2146_v33  ;;  %v2342_v61 = vsel %vm373_vm0, %v2168_v46, %v2132_v40  ;;  %v2085_v7 = vld [vmem:[#allocation3 + $0x8d8] sm:$0xff]  ;;  %2676 = vmatpush.msra.mxu1 %v2494_v2  ;;  %v2059_v31 = vld [vmem:[#allocation3 + $0x588] sm:$0xff]  ;;  %v2456_v33 = vld [vmem:[%s3759_s3 + $0xa0] sm:$0xff] }
 0x12f   :  { %v2204_v60 = vadd.f32 %v2203_v47, %v2202_v35  ;;  %v2183_v62 = vrot.slane %v2182_v48, 2  ;;  %v2217_v63 = vrot.slane %v2216_v49, 4  ;;  %v2134_v8 = vadd.f32 %v2133_v59, %v2053_v45  ;;  %v2101_v15 = vld [vmem:[#allocation3 + $0xbd8] sm:$0xff]  ;;  %v2063_v32 = vld [vmem:[#allocation3 + $0x5a8] sm:$0xff]  ;;  %v2488_v40 = vld [vmem:[%s3759_s3 + $0x1a0] sm:$0xff]  ;;  %2659 = vmatpush.msra.mxu0 %v2456_v33 }
 0x130   :  { %v2240_v3 = vadd.f32 %v2239_v53, %v2238_v42  ;;  %v2113_v4 = vrot.slane %v2112_v54, 1  ;;  %v2149_v5 = vrot.slane %v2148_v55, 1  ;;  %v2169_v16 = vadd.f32 %v2065_v52, %v2061_v51  ;;  %v2089_v22 = vld [vmem:[#allocation3 + $0x8f8] sm:$0xff]  ;;  %2677 = vmatpush.msra.mxu1 %v2492_v10  ;;  %v2051_v39 = vld [vmem:[#allocation3 + $0x2c8] sm:$0xff]  ;;  %v2562_v10 = vld [vmem:[%s3759_s3 + $0x3f0] sm:$0xff] }
 0x131   :  { %v2343_v11 = vsel %vm375_vm1, %v2204_v60, %v2342_v61  ;;  %v2184_v12 = vadd.f32 %v2183_v62, %v2182_v48  ;;  %v2218_v13 = vadd.f32 %v2217_v63, %v2216_v49  ;;  %v2135_v23 = vadd.f32 %v2134_v8, %v2057_v50  ;;  %v2105_v35 = vld [vmem:[#allocation3 + $0xbf8] sm:$0xff]  ;;  %v2055_v46 = vld [vmem:[#allocation3 + $0x2e8] sm:$0xff]  ;;  %v2454_v48 = vld [vmem:[%s3759_s3 + $0x90] sm:$0xff]  ;;  %2714 = vmatpush.msra.mxu3 %v2562_v10 }
 0x132   :  { %v2344_v19 = vsel %vm377_vm2, %v2240_v3, %v2343_v11  ;;  %v2114_v20 = vadd.f32 %v2113_v4, %v2112_v54  ;;  %v2150_v21 = vadd.f32 %v2149_v5, %v2148_v55  ;;  %v2170_v29 = vadd.f32 %v2169_v16, %v2069_v56  ;;  %v2067_v47 = vld [vmem:[#allocation3 + $0x5c8] sm:$0xff]  ;;  %2678 = vmatpush.msra.mxu1 %v2490_v26  ;;  %v2486_v55 = vld [vmem:[%s3759_s3 + $0x190] sm:$0xff]  ;;  %v2452_v62 = vld [vmem:[%s3759_s3 + $0x80] sm:$0xff] }
 0x133   :  { %2408 = vmatmul.f32.vlgmr.msrb.gmra.mxu2 %v2344_v19  ;;  %v2185_v27 = vrot.slane %v2184_v12, 1  ;;  %v2219_v28 = vrot.slane %v2218_v13, 2  ;;  %v2205_v30 = vadd.f32 %v2081_v58, %v2077_v57  ;;  %v2136_v36 = vrot.slane %v2135_v23, 4  ;;  %v2075_v51 = vld [vmem:[#allocation3 + $0x888] sm:$0xff]  ;;  %2660 = vmatpush.msra.mxu0 %v2454_v48  ;;  %v2484_v5 = vld [vmem:[%s3759_s3 + $0x180] sm:$0xff]  ;;  %v2482_v19 = vld [vmem:[%s3759_s3 + $0x170] sm:$0xff] }
 0x134   :  { %v2336_v34 = vsel %vm373_vm0, %v2150_v21, %v2114_v20  ;;  %v2241_v37 = vadd.f32 %v2097_v14, %v2093_v0  ;;  %v3183_v38 = vadd.f32 %v2921_v41, %v801_v17  ;;  %v2171_v44 = vadd.f32 %v2170_v29, %v2073_v6  ;;  %v2079_v52 = vld [vmem:[#allocation3 + $0x8a8] sm:$0xff]  ;;  %2679 = vmatpush.msra.mxu1 %v2488_v40  ;;  %v2530_v6 = vld [vmem:[%s3759_s3 + $0x2f0] sm:$0xff]  ;;  %v2528_v11 = vld [vmem:[%s3759_s3 + $0x2e0] sm:$0xff] }
 0x135   :  { %v2186_v42 = vadd.f32 %v2185_v27, %v2184_v12  ;;  %v2220_v43 = vadd.f32 %v2219_v28, %v2218_v13  ;;  %v2206_v45 = vadd.f32 %v2205_v30, %v2085_v7  ;;  %v2137_v49 = vadd.f32 %v2136_v36, %v2135_v23  ;;  %v2071_v60 = vld [vmem:[#allocation3 + $0x5e8] sm:$0xff]  ;;  %2694 = vmatpush.msra.mxu2 %v2530_v6  ;;  %v2560_v12 = vld [vmem:[%s3759_s3 + $0x3e0] sm:$0xff]  ;;  %v2478_v48 = vld [vmem:[%s3759_s3 + $0x150] sm:$0xff] }
 0x136   :  { %v2242_v50 = vadd.f32 %v2241_v37, %v2101_v15  ;;  %v2115_v53 = vadd.f32 %v2047_v25, %v2043_v24  ;;  %v2151_v54 = vadd.f32 %v2063_v32, %v2059_v31  ;;  %v2172_v58 = vrot.slane %v2171_v44, 4  ;;  %v2083_v61 = vld [vmem:[#allocation3 + $0x8c8] sm:$0xff]  ;;  %2680 = vmatpush.msra.mxu1 %v2486_v55  ;;  %2661 = vmatpush.msra.mxu0 %v2452_v62  ;;  %v2526_v24 = vld [vmem:[%s3759_s3 + $0x2d0] sm:$0xff]  ;;  %v2448_v31 = vld [vmem:[%s3759_s3 + $0x60] sm:$0xff]  ;;  %v821_v37 = vpop.f32.mrf.mxu1 }
 0x137   :  { %v2221_v56 = vrot.slane %v2220_v43, 1  ;;  %v2337_v57 = vsel %vm375_vm1, %v2186_v42, %v2336_v34  ;;  %v2207_v59 = vadd.f32 %v2206_v45, %v2089_v22  ;;  %v2138_v63 = vrot.slane %v2137_v49, 2  ;;  %v2091_v2 = vld [vmem:[#allocation3 + $0xb88] sm:$0xff]  ;;  %2695 = vmatpush.msra.mxu2 %v2528_v11  ;;  %v2558_v25 = vld [vmem:[%s3759_s3 + $0x3d0] sm:$0xff]  ;;  %v2480_v32 = vld [vmem:[%s3759_s3 + $0x160] sm:$0xff]  ;;  %2715 = vmatpush.msra.mxu3 %v2560_v12 }
 0x138   :  { %v2243_v0 = vadd.f32 %v2242_v50, %v2105_v35  ;;  %v2116_v3 = vadd.f32 %v2115_v53, %v2051_v39  ;;  %v2152_v4 = vadd.f32 %v2151_v54, %v2067_v47  ;;  %v2173_v8 = vadd.f32 %v2172_v58, %v2171_v44  ;;  %v2095_v15 = vld [vmem:[#allocation3 + $0xba8] sm:$0xff]  ;;  %2681 = vmatpush.msra.mxu1 %v2484_v5  ;;  %v2524_v39 = vld [vmem:[%s3759_s3 + $0x2c0] sm:$0xff]  ;;  %v2446_v47 = vld [vmem:[%s3759_s3 + $0x50] sm:$0xff]  ;;  %v841_v53 = vpop.f32.mrf.mxu2 }
 0x139   :  { %v2222_v7 = vadd.f32 %v2221_v56, %v2220_v43  ;;  %v2208_v41 = vrot.slane %v2207_v59, 4  ;;  %v2187_v9 = vadd.f32 %v2079_v52, %v2075_v51  ;;  %v2139_v13 = vadd.f32 %v2138_v63, %v2137_v49  ;;  %v2099_v28 = vld [vmem:[#allocation3 + $0xbc8] sm:$0xff]  ;;  %2662 = vmatpush.msra.mxu0 %v2450_v18  ;;  %v2556_v40 = vld [vmem:[%s3759_s3 + $0x3c0] sm:$0xff]  ;;  %2696 = vmatpush.msra.mxu2 %v2526_v24  ;;  %v2522_v54 = vld [vmem:[%s3759_s3 + $0x2b0] sm:$0xff] }
 0x13a   :  { %v2244_v14 = vrot.slane %v2243_v0, 4  ;;  %v2117_v16 = vadd.f32 %v2116_v3, %v2055_v46  ;;  %v2153_v17 = vadd.f32 %v2152_v4, %v2071_v60  ;;  %v2174_v21 = vrot.slane %v2173_v8, 2  ;;  %2682 = vmatpush.msra.mxu1 %v2482_v19  ;;  %v2103_v44 = vld [vmem:[#allocation3 + $0xbe8] sm:$0xff]  ;;  %2716 = vmatpush.msra.mxu3 %v2558_v25  ;;  %v2554_v55 = vld [vmem:[%s3759_s3 + $0x3b0] sm:$0xff]  ;;  %v2444_v60 = vld [vmem:[%s3759_s3 + $0x40] sm:$0xff] }
 0x13b   :  { %v2338_v20 = vsel %vm377_vm2, %v2222_v7, %v2337_v57  ;;  %v2209_v22 = vadd.f32 %v2208_v41, %v2207_v59  ;;  %v2188_v23 = vadd.f32 %v2187_v9, %v2083_v61  ;;  %v2140_v26 = vrot.slane %v2139_v13, 1  ;;  %2663 = vmatpush.msra.mxu0 %v2448_v31  ;;  %v2476_v61 = vld [vmem:[%s3759_s3 + $0x140] sm:$0xff]  ;;  %2697 = vmatpush.msra.mxu2 %v2524_v39  ;;  %v2474_v41 = vld [vmem:[%s3759_s3 + $0x130] sm:$0xff]  ;;  %v1193_v31 = vpop.f32.mrf.mxu0 }
 0x13c   :  { %2368 = vmatmul.f32.vlgmr.msrb.gmra.mxu0 %v2338_v20  ;;  %v2245_v27 = vadd.f32 %v2244_v14, %v2243_v0  ;;  %v2118_v29 = vrot.slane %v2117_v16, 4  ;;  %v2154_v30 = vrot.slane %v2153_v17, 4  ;;  %v2175_v33 = vadd.f32 %v2174_v21, %v2173_v8  ;;  %2683 = vmatpush.msra.mxu1 %v2480_v32  ;;  %v2552_v3 = vld [vmem:[%s3759_s3 + $0x3a0] sm:$0xff]  ;;  %v2442_v8 = vld [vmem:[%s3759_s3 + $0x30] sm:$0xff] }
 0x13d   :  { %v2210_v34 = vrot.slane %v2209_v22, 2  ;;  %v2189_v35 = vadd.f32 %v2188_v23, %v2087_v1  ;;  %v2223_v36 = vadd.f32 %v2095_v15, %v2091_v2  ;;  %v2141_v42 = vadd.f32 %v2140_v26, %v2139_v13  ;;  %2717 = vmatpush.msra.mxu3 %v2556_v40  ;;  %v861_v2 = vpop.f32.mrf.mxu3  ;;  %2664 = vmatpush.msra.mxu0 %v2446_v47  ;;  %v2518_v13 = vld [vmem:[%s3759_s3 + $0x290] sm:$0xff]  ;;  %v2922_v15 = vld [vmem:[#allocation7 + $0x2] ss:$0 sm:$0xff] }
 0x13e   :  { %v2246_v43 = vrot.slane %v2245_v27, 2  ;;  %v2119_v45 = vadd.f32 %v2118_v29, %v2117_v16  ;;  %v2155_v46 = vadd.f32 %v2154_v30, %v2153_v17  ;;  %v2176_v49 = vrot.slane %v2175_v33, 1  ;;  %2684 = vmatpush.msra.mxu1 %v2478_v48  ;;  %2698 = vmatpush.msra.mxu2 %v2522_v54  ;;  %v2550_v14 = vld [vmem:[%s3759_s3 + $0x390] sm:$0xff]  ;;  %v2440_v20 = vld [vmem:[%s3759_s3 + $0x20] sm:$0xff] }
 0x13f   :  { %v2211_v50 = vadd.f32 %v2210_v34, %v2209_v22  ;;  %v2190_v51 = vrot.slane %v2189_v35, 4  ;;  %v2224_v52 = vadd.f32 %v2223_v36, %v2099_v28  ;;  %v822_v59 = vadd.f32 %v821_v37, %v3183_v38  ;;  %v2520_v38 = vld [vmem:[%s3759_s3 + $0x2a0] sm:$0xff]  ;;  %2718 = vmatpush.msra.mxu3 %v2554_v55  ;;  %2665 = vmatpush.msra.mxu0 %v2444_v60  ;;  %v2438_v29 = vld [vmem:[%s3759_s3 + $0x10] sm:$0xff] }
 0x140   :  { %v2247_v56 = vadd.f32 %v2246_v43, %v2245_v27  ;;  %v2120_v57 = vrot.slane %v2119_v45, 2  ;;  %v2156_v58 = vrot.slane %v2155_v46, 2  ;;  %v2177_v62 = vadd.f32 %v2176_v49, %v2175_v33  ;;  %2685 = vmatpush.msra.mxu1 %v2476_v61  ;;  %2699 = vmatpush.msra.mxu2 %v2520_v38  ;;  %v2472_v24 = vld [vmem:[%s3759_s3 + $0x120] sm:$0xff]  ;;  %v2470_v34 = vld [vmem:[%s3759_s3 + $0x110] sm:$0xff]  ;;  %v1233_v49 = vpop.f32.mrf.mxu2 }
 0x141   :  { %v2212_v63 = vrot.slane %v2211_v50, 1  ;;  %v2191_v0 = vadd.f32 %v2190_v51, %v2189_v35  ;;  %v2225_v1 = vadd.f32 %v2224_v52, %v2103_v44  ;;  %v842_v7 = vadd.f32 %v841_v53, %v822_v59  ;;  %2719 = vmatpush.msra.mxu3 %v2552_v3  ;;  %2666 = vmatpush.msra.mxu0 %v2442_v8  ;;  %v2516_v25 = vld [vmem:[%s3759_s3 + $0x280] sm:$0xff]  ;;  %v2514_v35 = vld [vmem:[%s3759_s3 + $0x270] sm:$0xff]  ;;  %v2499_v8 = vld [vmem:[%s3759_s3 + $0x1f8] sm:$0xff] }
 0x142   :  { %v2248_v4 = vrot.slane %v2247_v56, 1  ;;  %v2121_v5 = vadd.f32 %v2120_v57, %v2119_v45  ;;  %v2157_v6 = vadd.f32 %v2156_v58, %v2155_v46  ;;  %v2345_v10 = vsel %vm373_vm0, %v2177_v62, %v2141_v42  ;;  %2686 = vmatpush.msra.mxu1 %v2474_v41  ;;  %2700 = vmatpush.msra.mxu2 %v2518_v13  ;;  %v2548_v30 = vld [vmem:[%s3759_s3 + $0x380] sm:$0xff]  ;;  %v2546_v40 = vld [vmem:[%s3759_s3 + $0x370] sm:$0xff]  ;;  %v2465_v41 = vld [vmem:[%s3759_s3 + $0xe8] sm:$0xff] }
 0x143   :  { %v2213_v9 = vadd.f32 %v2212_v63, %v2211_v50  ;;  %v2192_v11 = vrot.slane %v2191_v0, 2  ;;  %v2226_v12 = vrot.slane %v2225_v1, 4  ;;  %v862_v19 = vadd.f32 %v861_v2, %v842_v7  ;;  %2720 = vmatpush.msra.mxu3 %v2550_v14  ;;  %2667 = vmatpush.msra.mxu0 %v2440_v20  ;;  %v2436_v39 = vld [vmem:[%s3759_s3] sm:$0xff]  ;;  %v2510_v51 = vld [vmem:[%s3759_s3 + $0x250] sm:$0xff]  ;;  %v2493_v13 = vld [vmem:[%s3759_s3 + $0x1c8] sm:$0xff] }
 0x144   :  { %v2249_v16 = vadd.f32 %v2248_v4, %v2247_v56  ;;  %v2122_v17 = vrot.slane %v2121_v5, 1  ;;  %v2158_v18 = vrot.slane %v2157_v6, 1  ;;  %v1194_v36 = vadd.f32 %v2922_v15, %v1193_v31  ;;  %2687 = vmatpush.msra.mxu1 %v2472_v24  ;;  %2701 = vmatpush.msra.mxu2 %v2516_v25  ;;  %v2468_v45 = vld [vmem:[%s3759_s3 + $0x100] sm:$0xff]  ;;  %v2542_v54 = vld [vmem:[%s3759_s3 + $0x350] sm:$0xff]  ;;  %v2459_v14 = vld [vmem:[%s3759_s3 + $0xb8] sm:$0xff] }
 0x145   :  { %v2346_v21 = vsel %vm375_vm1, %v2213_v9, %v2345_v10  ;;  %v2193_v22 = vadd.f32 %v2192_v11, %v2191_v0  ;;  %v2227_v23 = vadd.f32 %v2226_v12, %v2225_v1  ;;  %864 = vst [vmem:[#allocation2 + $0x4] sm:$0xf] %v862_v19  ;;  %2668 = vmatpush.msra.mxu0 %v2438_v29  ;;  %v2512_v46 = vld [vmem:[%s3759_s3 + $0x260] sm:$0xff]  ;;  %v2506_v62 = vld [vmem:[%s3759_s3 + $0x230] sm:$0xff]  ;;  %v2497_v9 = vld [vmem:[%s3759_s3 + $0x1e8] sm:$0xff] }
 0x146   :  { %v2347_v26 = vsel %vm377_vm2, %v2249_v16, %v2346_v21  ;;  %v2123_v27 = vadd.f32 %v2122_v17, %v2121_v5  ;;  %v2159_v28 = vadd.f32 %v2158_v18, %v2157_v6  ;;  %2721 = vmatpush.msra.mxu3 %v2548_v30  ;;  %2688 = vmatpush.msra.mxu1 %v2470_v34  ;;  %v2544_v48 = vld [vmem:[%s3759_s3 + $0x360] sm:$0xff]  ;;  %v1253_v55 = vpop.f32.mrf.mxu3  ;;  %v2538_v63 = vld [vmem:[%s3759_s3 + $0x330] sm:$0xff]  ;;  %v2467_v6 = vld [vmem:[%s3759_s3 + $0xf8] sm:$0xff] }
 0x147   :  { %2428 = vmatmul.f32.vlgmr.msrb.gmra.mxu3 %v2347_v26  ;;  %v2194_v32 = vrot.slane %v2193_v22, 1  ;;  %v2228_v33 = vrot.slane %v2227_v23, 2  ;;  %2702 = vmatpush.msra.mxu2 %v2514_v35  ;;  %v2508_v58 = vld [vmem:[%s3759_s3 + $0x240] sm:$0xff]  ;;  %v2502_v2 = vld [vmem:[%s3759_s3 + $0x210] sm:$0xff]  ;;  %v2463_v10 = vld [vmem:[%s3759_s3 + $0xd8] sm:$0xff] }
 0x148   :  { %v2339_v37 = vsel %vm373_vm0, %v2159_v28, %v2123_v27  ;;  %2669 = vmatpush.msra.mxu0 %v2436_v39  ;;  %2722 = vmatpush.msra.mxu3 %v2546_v40  ;;  %v2540_v60 = vld [vmem:[%s3759_s3 + $0x340] sm:$0xff]  ;;  %v2534_v38 = vld [vmem:[%s3759_s3 + $0x310] sm:$0xff]  ;;  %v2495_v11 = vld [vmem:[%s3759_s3 + $0x1d8] sm:$0xff] }
 0x149   :  { %v2195_v43 = vadd.f32 %v2194_v32, %v2193_v22  ;;  %v2229_v44 = vadd.f32 %v2228_v33, %v2227_v23  ;;  %2689 = vmatpush.msra.mxu1 %v2468_v45  ;;  %2703 = vmatpush.msra.mxu2 %v2512_v46  ;;  %v2504_v0 = vld [vmem:[%s3759_s3 + $0x220] sm:$0xff]  ;;  %v2461_v12 = vld [vmem:[%s3759_s3 + $0xc8] sm:$0xff]  ;;  %v2491_v15 = vld [vmem:[%s3759_s3 + $0x1b8] sm:$0xff] }
 0x14a   :  { %v1213_v42 = vpop.f32.mrf.mxu1  ;;  %2723 = vmatpush.msra.mxu3 %v2544_v48  ;;  %v2536_v1 = vld [vmem:[%s3759_s3 + $0x320] sm:$0xff]  ;;  %v2457_v16 = vld [vmem:[%s3759_s3 + $0xa8] sm:$0xff]  ;;  %v2455_v18 = vld [vmem:[%s3759_s3 + $0x98] sm:$0xff] }
 0x14b   :  { %v1214_v47 = vadd.f32 %v1213_v42, %v1194_v36  ;;  %v2230_v50 = vrot.slane %v2229_v44, 1  ;;  %v2340_v53 = vsel %vm375_vm1, %v2195_v43, %v2339_v37  ;;  %2704 = vmatpush.msra.mxu2 %v2510_v51  ;;  %v2500_v4 = vld [vmem:[%s3759_s3 + $0x200] sm:$0xff]  ;;  %v2489_v17 = vld [vmem:[%s3759_s3 + $0x1a8] sm:$0xff]  ;;  %v2487_v19 = vld [vmem:[%s3759_s3 + $0x198] sm:$0xff] }
 0x14c   :  { %v2433_v57 = vld [vmem:[#allocation2] sm:$0xff]  ;;  %2724 = vmatpush.msra.mxu3 %v2542_v54  ;;  %v2532_v5 = vld [vmem:[%s3759_s3 + $0x300] sm:$0xff]  ;;  %v2451_v23 = vld [vmem:[%s3759_s3 + $0x78] sm:$0xff] }
 0x14d   :  { %v1234_v52 = vadd.f32 %v1233_v49, %v1214_v47  ;;  %v2231_v56 = vadd.f32 %v2230_v50, %v2229_v44  ;;  %2637 = vst [vmem:[#allocation1] ss:$2 sm:$0xff] %v2433_v57  ;;  %2705 = vmatpush.msra.mxu2 %v2508_v58  ;;  %v2453_v20 = vld [vmem:[%s3759_s3 + $0x88] sm:$0xff]  ;;  %v2923_v22 = vld [vmem:[#allocation7 + $0x3] ss:$0 sm:$0xff]  ;;  %v2594_v24 = vld [vmem:[%s3759_s3 + $0x4f0] sm:$0xff] }
 0x14e   :  { %2725 = vmatpush.msra.mxu3 %v2540_v60  ;;  %v2485_v21 = vld [vmem:[%s3759_s3 + $0x188] sm:$0xff]  ;;  %v2483_v26 = vld [vmem:[%s3759_s3 + $0x178] sm:$0xff]  ;;  %2734 = vmatpush.msrb.mxu0 %v2594_v24  ;;  %v2626_v27 = vld [vmem:[%s3759_s3 + $0x5f0] sm:$0xff] }
 0x14f   :  { %v1254_v59 = vadd.f32 %v1253_v55, %v1234_v52  ;;  %v2341_v61 = vsel %vm377_vm2, %v2231_v56, %v2340_v53  ;;  %2706 = vmatpush.msra.mxu2 %v2506_v62  ;;  %v2449_v28 = vld [vmem:[%s3759_s3 + $0x68] sm:$0xff]  ;;  %v2447_v31 = vld [vmem:[%s3759_s3 + $0x58] sm:$0xff]  ;;  %v2592_v34 = vld [vmem:[%s3759_s3 + $0x4e0] sm:$0xff] }
 0x150   :  { %2388 = vmatmul.f32.vlgmr.msrb.gmra.mxu1 %v2341_v61  ;;  %2726 = vmatpush.msra.mxu3 %v2538_v63  ;;  %v2481_v29 = vld [vmem:[%s3759_s3 + $0x168] sm:$0xff]  ;;  %v2479_v32 = vld [vmem:[%s3759_s3 + $0x158] sm:$0xff]  ;;  %v2624_v35 = vld [vmem:[%s3759_s3 + $0x5e0] sm:$0xff] }
 0x151   :  { %1256 = vst [vmem:[#allocation2 + $0x8] sm:$0xf] %v1254_v59  ;;  %2707 = vmatpush.msra.mxu2 %v2504_v0  ;;  %2754 = vmatpush.msrb.mxu1 %v2626_v27  ;;  %v2445_v33 = vld [vmem:[%s3759_s3 + $0x48] sm:$0xff]  ;;  %v2590_v36 = vld [vmem:[%s3759_s3 + $0x4d0] sm:$0xff]  ;;  %v2443_v44 = vld [vmem:[%s3759_s3 + $0x38] sm:$0xff] }
 0x152   :  { %2727 = vmatpush.msra.mxu3 %v2536_v1  ;;  %v2477_v40 = vld [vmem:[%s3759_s3 + $0x148] sm:$0xff]  ;;  %2735 = vmatpush.msrb.mxu0 %v2592_v34  ;;  %v2622_v42 = vld [vmem:[%s3759_s3 + $0x5d0] sm:$0xff]  ;;  %v2588_v45 = vld [vmem:[%s3759_s3 + $0x4c0] sm:$0xff] }
 0x153   :  { %2708 = vmatpush.msra.mxu2 %v2502_v2  ;;  %2755 = vmatpush.msrb.mxu1 %v2624_v35  ;;  %v2475_v47 = vld [vmem:[%s3759_s3 + $0x138] sm:$0xff]  ;;  %v2620_v48 = vld [vmem:[%s3759_s3 + $0x5c0] sm:$0xff]  ;;  %v2441_v50 = vld [vmem:[%s3759_s3 + $0x28] sm:$0xff] }
 0x154   :  { %v3347_v3 = vld.sshfl [vmem:[#allocation1] sm:$0xff pattern:$0x75316420]  ;;  %v3359_v7 = vld.sshfl [vmem:[#allocation1 + $0x8] sm:$0xff pattern:$0x75316420]  ;;  %2728 = vmatpush.msra.mxu3 %v2534_v38  ;;  %2736 = vmatpush.msrb.mxu0 %v2590_v36 }
 0x155   :  { %2670 = vmatmul.f32.vlgmr.msra.gmra.mxu0 %v3347_v3  ;;  %2709 = vmatpush.msra.mxu2 %v2500_v4  ;;  %v2586_v51 = vld [vmem:[%s3759_s3 + $0x4b0] sm:$0xff]  ;;  %v2473_v52 = vld [vmem:[%s3759_s3 + $0x128] sm:$0xff]  ;;  %v2439_v55 = vld [vmem:[%s3759_s3 + $0x18] sm:$0xff] }
 0x156   :  { %2729 = vmatpush.msra.mxu3 %v2532_v5  ;;  %2756 = vmatpush.msrb.mxu1 %v2622_v42  ;;  %v2618_v53 = vld [vmem:[%s3759_s3 + $0x5b0] sm:$0xff]  ;;  %v2584_v56 = vld [vmem:[%s3759_s3 + $0x4a0] sm:$0xff]  ;;  %v2471_v57 = vld [vmem:[%s3759_s3 + $0x118] sm:$0xff] }
 0x157   :  { %2774 = vmatpush.msrb.mxu2 %v2467_v6  ;;  %v1625_v39 = vpop.f32.mrf.mxu2  ;;  %2737 = vmatpush.msrb.mxu0 %v2588_v45  ;;  %v2616_v58 = vld [vmem:[%s3759_s3 + $0x5a0] sm:$0xff]  ;;  %v2437_v59 = vld [vmem:[%s3759_s3 + $0x8] sm:$0xff]  ;;  %v2582_v60 = vld [vmem:[%s3759_s3 + $0x490] sm:$0xff] }
 0x158   :  { %2690 = vmatmul.f32.vlgmr.msra.gmra.mxu1 %v3359_v7  ;;  %2794 = vmatpush.msrb.mxu3 %v2499_v8  ;;  %v2469_v61 = vld [vmem:[%s3759_s3 + $0x108] sm:$0xff]  ;;  %v2614_v62 = vld [vmem:[%s3759_s3 + $0x590] sm:$0xff]  ;;  %v2580_v63 = vld [vmem:[%s3759_s3 + $0x480] sm:$0xff] }
 0x159   :  { %2775 = vmatpush.msrb.mxu2 %v2465_v41  ;;  %2757 = vmatpush.msrb.mxu1 %v2620_v48  ;;  %v2612_v0 = vld [vmem:[%s3759_s3 + $0x580] sm:$0xff]  ;;  %v2578_v1 = vld [vmem:[%s3759_s3 + $0x470] sm:$0xff]  ;;  %v2531_v35 = vld [vmem:[%s3759_s3 + $0x2f8] sm:$0xff] }
 0x15a   :  { %2795 = vmatpush.msrb.mxu3 %v2497_v9  ;;  %2738 = vmatpush.msrb.mxu0 %v2586_v51  ;;  %v2610_v2 = vld [vmem:[%s3759_s3 + $0x570] sm:$0xff]  ;;  %v2576_v38 = vld [vmem:[%s3759_s3 + $0x460] sm:$0xff]  ;;  %v2563_v36 = vld [vmem:[%s3759_s3 + $0x3f8] sm:$0xff] }
 0x15b   :  { %2776 = vmatpush.msrb.mxu2 %v2463_v10  ;;  %2758 = vmatpush.msrb.mxu1 %v2618_v53  ;;  %v2608_v5 = vld [vmem:[%s3759_s3 + $0x560] sm:$0xff]  ;;  %v2574_v6 = vld [vmem:[%s3759_s3 + $0x450] sm:$0xff]  ;;  %v2561_v42 = vld [vmem:[%s3759_s3 + $0x3e8] sm:$0xff] }
 0x15c   :  { %2796 = vmatpush.msrb.mxu3 %v2495_v11  ;;  %2739 = vmatpush.msrb.mxu0 %v2584_v56  ;;  %v2606_v8 = vld [vmem:[%s3759_s3 + $0x550] sm:$0xff]  ;;  %v2572_v41 = vld [vmem:[%s3759_s3 + $0x440] sm:$0xff]  ;;  %v2527_v45 = vld [vmem:[%s3759_s3 + $0x2d8] sm:$0xff] }
 0x15d   :  { %2777 = vmatpush.msrb.mxu2 %v2461_v12  ;;  %v1585_v25 = vpop.f32.mrf.mxu0  ;;  %2759 = vmatpush.msrb.mxu1 %v2616_v58  ;;  %v2604_v9 = vld [vmem:[%s3759_s3 + $0x540] sm:$0xff]  ;;  %v2595_v12 = vld [vmem:[%s3759_s3 + $0x4f8] sm:$0xff]  ;;  %v2581_v51 = vld [vmem:[%s3759_s3 + $0x488] sm:$0xff] }
 0x15e   :  { %2797 = vmatpush.msrb.mxu3 %v2493_v13  ;;  %v1586_v30 = vadd.f32 %v2923_v22, %v1585_v25  ;;  %2740 = vmatpush.msrb.mxu0 %v2582_v60  ;;  %v2627_v13 = vld [vmem:[%s3759_s3 + $0x5f8] sm:$0xff]  ;;  %v2566_v22 = vld [vmem:[%s3759_s3 + $0x410] sm:$0xff]  ;;  %v2564_v24 = vld [vmem:[%s3759_s3 + $0x400] sm:$0xff] }
 0x15f   :  { %2778 = vmatpush.msrb.mxu2 %v2459_v14  ;;  %2760 = vmatpush.msrb.mxu1 %v2614_v62  ;;  %v2570_v14 = vld [vmem:[%s3759_s3 + $0x430] sm:$0xff]  ;;  %v2596_v25 = vld [vmem:[%s3759_s3 + $0x500] sm:$0xff]  ;;  %v2615_v48 = vld [vmem:[%s3759_s3 + $0x598] sm:$0xff] }
 0x160   :  { %2798 = vmatpush.msrb.mxu3 %v2491_v15  ;;  %2741 = vmatpush.msrb.mxu0 %v2580_v63  ;;  %v2602_v15 = vld [vmem:[%s3759_s3 + $0x530] sm:$0xff]  ;;  %v2523_v53 = vld [vmem:[%s3759_s3 + $0x2b8] sm:$0xff]  ;;  %v2553_v58 = vld [vmem:[%s3759_s3 + $0x3a8] sm:$0xff] }
 0x161   :  { %2779 = vmatpush.msrb.mxu2 %v2457_v16  ;;  %2761 = vmatpush.msrb.mxu1 %v2612_v0  ;;  %v2593_v16 = vld [vmem:[%s3759_s3 + $0x4e8] sm:$0xff]  ;;  %v2611_v56 = vld [vmem:[%s3759_s3 + $0x578] sm:$0xff] }
 0x162   :  { %2799 = vmatpush.msrb.mxu3 %v2489_v17  ;;  %2742 = vmatpush.msrb.mxu0 %v2578_v1  ;;  %v2625_v17 = vld [vmem:[%s3759_s3 + $0x5e8] sm:$0xff]  ;;  %v2551_v62 = vld [vmem:[%s3759_s3 + $0x398] sm:$0xff] }
 0x163   :  { %2780 = vmatpush.msrb.mxu2 %v2455_v18  ;;  %2762 = vmatpush.msrb.mxu1 %v2610_v2  ;;  %v2568_v18 = vld [vmem:[%s3759_s3 + $0x420] sm:$0xff]  ;;  %v2609_v60 = vld [vmem:[%s3759_s3 + $0x568] sm:$0xff]  ;;  %v2575_v63 = vld [vmem:[%s3759_s3 + $0x458] sm:$0xff] }
 0x164   :  { %2800 = vmatpush.msrb.mxu3 %v2487_v19  ;;  %2743 = vmatpush.msrb.mxu0 %v2576_v38  ;;  %v2600_v19 = vld [vmem:[%s3759_s3 + $0x520] sm:$0xff]  ;;  %v2607_v0 = vld [vmem:[%s3759_s3 + $0x558] sm:$0xff]  ;;  %v2517_v1 = vld [vmem:[%s3759_s3 + $0x288] sm:$0xff] }
 0x165   :  { %2781 = vmatpush.msrb.mxu2 %v2453_v20  ;;  %2763 = vmatpush.msrb.mxu1 %v2608_v5  ;;  %v2591_v20 = vld [vmem:[%s3759_s3 + $0x4d8] sm:$0xff]  ;;  %v2549_v2 = vld [vmem:[%s3759_s3 + $0x388] sm:$0xff] }
 0x166   :  { %2801 = vmatpush.msrb.mxu3 %v2485_v21  ;;  %2744 = vmatpush.msrb.mxu0 %v2574_v6  ;;  %v2623_v21 = vld [vmem:[%s3759_s3 + $0x5d8] sm:$0xff]  ;;  %v2573_v38 = vld [vmem:[%s3759_s3 + $0x448] sm:$0xff] }
 0x167   :  { %2782 = vmatpush.msrb.mxu2 %v2451_v23  ;;  %2764 = vmatpush.msrb.mxu1 %v2606_v8  ;;  %v2621_v23 = vld [vmem:[%s3759_s3 + $0x5c8] sm:$0xff]  ;;  %v2515_v5 = vld [vmem:[%s3759_s3 + $0x278] sm:$0xff] }
 0x168   :  { %2802 = vmatpush.msrb.mxu3 %v2483_v26  ;;  %2745 = vmatpush.msrb.mxu0 %v2572_v41  ;;  %v2924_v26 = vld [vmem:[#allocation7 + $0x4] ss:$0 sm:$0xff]  ;;  %v2547_v6 = vld [vmem:[%s3759_s3 + $0x378] sm:$0xff] }
 0x169   :  { %2783 = vmatpush.msrb.mxu2 %v2449_v28  ;;  %2765 = vmatpush.msrb.mxu1 %v2604_v9  ;;  %v2571_v8 = vld [vmem:[%s3759_s3 + $0x438] sm:$0xff]  ;;  %v2513_v9 = vld [vmem:[%s3759_s3 + $0x268] sm:$0xff] }
 0x16a   :  { %2803 = vmatpush.msrb.mxu3 %v2481_v29  ;;  %2746 = vmatpush.msrb.mxu0 %v2570_v14  ;;  %v2603_v41 = vld [vmem:[%s3759_s3 + $0x538] sm:$0xff]  ;;  %v2601_v14 = vld [vmem:[%s3759_s3 + $0x528] sm:$0xff] }
 0x16b   :  { %2784 = vmatpush.msrb.mxu2 %v2447_v31  ;;  %v1645_v46 = vpop.f32.mrf.mxu3  ;;  %2766 = vmatpush.msrb.mxu1 %v2602_v15  ;;  %v2511_v15 = vld [vmem:[%s3759_s3 + $0x258] sm:$0xff] }
 0x16c   :  { %2804 = vmatpush.msrb.mxu3 %v2479_v32  ;;  %2747 = vmatpush.msrb.mxu0 %v2568_v18  ;;  %v2599_v18 = vld [vmem:[%s3759_s3 + $0x518] sm:$0xff] }
 0x16d   :  { %2785 = vmatpush.msrb.mxu2 %v2445_v33  ;;  %2767 = vmatpush.msrb.mxu1 %v2600_v19  ;;  %v2509_v19 = vld [vmem:[%s3759_s3 + $0x248] sm:$0xff] }
 0x16e   :  { %2805 = vmatpush.msrb.mxu3 %v2477_v40  ;;  %2748 = vmatpush.msrb.mxu0 %v2566_v22  ;;  %v2529_v40 = vld [vmem:[%s3759_s3 + $0x2e8] sm:$0xff] }
 0x16f   :  { %2786 = vmatpush.msrb.mxu2 %v2443_v44  ;;  %v2617_v44 = vld [vmem:[%s3759_s3 + $0x5a8] sm:$0xff] }
 0x170   :  { %v1605_v37 = vpop.f32.mrf.mxu1  ;;  %2806 = vmatpush.msrb.mxu3 %v2475_v47  ;;  %2749 = vmatpush.msrb.mxu0 %v2564_v24  ;;  %v2583_v47 = vld [vmem:[%s3759_s3 + $0x498] sm:$0xff]  ;;  %v2597_v22 = vld [vmem:[%s3759_s3 + $0x508] sm:$0xff]  ;;  %v2925_v24 = vld [vmem:[#allocation7 + $0x5] ss:$0 sm:$0xff] }
 0x171   :  { %v1606_v43 = vadd.f32 %v1605_v37, %v1586_v30  ;;  %2787 = vmatpush.msrb.mxu2 %v2441_v50  ;;  %v2587_v37 = vld [vmem:[%s3759_s3 + $0x4b8] sm:$0xff]  ;;  %v2557_v50 = vld [vmem:[%s3759_s3 + $0x3c8] sm:$0xff] }
 0x172   :  { %2807 = vmatpush.msrb.mxu3 %v2473_v52  ;;  %2814 = vmatpush.msra.mxu0 %v2531_v35  ;;  %v2613_v52 = vld [vmem:[%s3759_s3 + $0x588] sm:$0xff] }
 0x173   :  { %v1626_v49 = vadd.f32 %v1625_v39, %v1606_v43  ;;  %2788 = vmatpush.msrb.mxu2 %v2439_v55  ;;  %v2619_v39 = vld [vmem:[%s3759_s3 + $0x5b8] sm:$0xff]  ;;  %v2585_v43 = vld [vmem:[%s3759_s3 + $0x4a8] sm:$0xff] }
 0x174   :  { %2808 = vmatpush.msrb.mxu3 %v2471_v57  ;;  %2815 = vmatpush.msra.mxu0 %v2529_v40  ;;  %v2579_v55 = vld [vmem:[%s3759_s3 + $0x478] sm:$0xff]  ;;  %v2521_v57 = vld [vmem:[%s3759_s3 + $0x2a8] sm:$0xff] }
 0x175   :  { %v1646_v54 = vadd.f32 %v1645_v46, %v1626_v49  ;;  %2789 = vmatpush.msrb.mxu2 %v2437_v59  ;;  %v2559_v46 = vld [vmem:[%s3759_s3 + $0x3d8] sm:$0xff]  ;;  %v2525_v49 = vld [vmem:[%s3759_s3 + $0x2c8] sm:$0xff] }
 0x176   :  { %2809 = vmatpush.msrb.mxu3 %v2469_v61  ;;  %2816 = vmatpush.msra.mxu0 %v2527_v45  ;;  %v2577_v59 = vld [vmem:[%s3759_s3 + $0x468] sm:$0xff]  ;;  %v2519_v61 = vld [vmem:[%s3759_s3 + $0x298] sm:$0xff] }
 0x177   :  { %1648 = vst [vmem:[#allocation2 + $0xc] sm:$0xf] %v1646_v54  ;;  %v2555_v54 = vld [vmem:[%s3759_s3 + $0x3b8] sm:$0xff] }
 0x178   :  { %2817 = vmatpush.msra.mxu0 %v2525_v49 }
 0x17a   :  { %2818 = vmatpush.msra.mxu0 %v2523_v53 }
 0x17c   :  { %2819 = vmatpush.msra.mxu0 %v2521_v57 }
 0x17e   :  { %v2434_v4 = vld [vmem:[#allocation2 + $0x8] sm:$0xff]  ;;  %2820 = vmatpush.msra.mxu0 %v2519_v61 }
 0x17f   :  { %2639 = vst [vmem:[#allocation1 + $0x10] ss:$2 sm:$0xff] %v2434_v4  ;;  %v2605_v4 = vld [vmem:[%s3759_s3 + $0x548] sm:$0xff] }
 0x180   :  { %2821 = vmatpush.msra.mxu0 %v2517_v1 }
 0x182   :  { %2822 = vmatpush.msra.mxu0 %v2515_v5 }
 0x184   :  { %2823 = vmatpush.msra.mxu0 %v2513_v9 }
 0x186   :  { %v3527_v10 = vld.sshfl [vmem:[#allocation1 + $0x10] sm:$0xff pattern:$0x75316420]  ;;  %v3529_v11 = vld.sshfl [vmem:[#allocation1 + $0x18] sm:$0xff pattern:$0x75316420]  ;;  %2824 = vmatpush.msra.mxu0 %v2511_v15 }
 0x187   :  { %2710 = vmatmul.f32.vlgmr.msra.gmra.mxu2 %v3527_v10  ;;  %2730 = vmatmul.f32.vlgmr.msra.gmra.mxu3 %v3529_v11 }
 0x188   :  { %2854 = vmatpush.msra.mxu2 %v2595_v12  ;;  %2874 = vmatpush.msra.mxu3 %v2627_v13  ;;  %v2545_v12 = vld [vmem:[%s3759_s3 + $0x368] sm:$0xff] }
 0x189   :  { %v2569_v13 = vld [vmem:[%s3759_s3 + $0x428] sm:$0xff]  ;;  %2825 = vmatpush.msra.mxu0 %v2509_v19 }
 0x18a   :  { %2855 = vmatpush.msra.mxu2 %v2593_v16  ;;  %2875 = vmatpush.msra.mxu3 %v2625_v17  ;;  %v2543_v16 = vld [vmem:[%s3759_s3 + $0x358] sm:$0xff] }
 0x18b   :  { %v2567_v17 = vld [vmem:[%s3759_s3 + $0x418] sm:$0xff] }
 0x18c   :  { %2856 = vmatpush.msra.mxu2 %v2591_v20  ;;  %2876 = vmatpush.msra.mxu3 %v2623_v21  ;;  %v2541_v20 = vld [vmem:[%s3759_s3 + $0x348] sm:$0xff] }
 0x18d   :  { %v2565_v21 = vld [vmem:[%s3759_s3 + $0x408] sm:$0xff] }
 0x18e   :  { %2877 = vmatpush.msra.mxu3 %v2621_v23  ;;  %v2505_v23 = vld [vmem:[%s3759_s3 + $0x228] sm:$0xff] }
 0x18f   :  { %2790 = vmatmul.f32.vlgmr.msrb.gmra.mxu2 %v3347_v3  ;;  %2810 = vmatmul.f32.vlgmr.msrb.gmra.mxu3 %v3359_v7  ;;  %v2598_v3 = vld [vmem:[%s3759_s3 + $0x510] sm:$0xff]  ;;  %v2589_v7 = vld [vmem:[%s3759_s3 + $0x4c8] sm:$0xff] }
 0x190   :  { %2768 = vmatpush.msrb.mxu1 %v2598_v3  ;;  %2857 = vmatpush.msra.mxu2 %v2589_v7  ;;  %v2017_v30 = vpop.f32.mrf.mxu2  ;;  %v2507_v3 = vld [vmem:[%s3759_s3 + $0x238] sm:$0xff] }
 0x191   :  { %2878 = vmatpush.msra.mxu3 %v2619_v39  ;;  %v2539_v7 = vld [vmem:[%s3759_s3 + $0x338] sm:$0xff]  ;;  %2826 = vmatpush.msra.mxu0 %v2507_v3 }
 0x192   :  { %2769 = vmatpush.msrb.mxu1 %v2596_v25  ;;  %v1977_v27 = vpop.f32.mrf.mxu0  ;;  %2858 = vmatpush.msra.mxu2 %v2587_v37  ;;  %v2537_v25 = vld [vmem:[%s3759_s3 + $0x328] sm:$0xff] }
 0x193   :  { %v1978_v28 = vadd.f32 %v2924_v26, %v1977_v27  ;;  %2879 = vmatpush.msra.mxu3 %v2617_v44  ;;  %v2503_v27 = vld [vmem:[%s3759_s3 + $0x218] sm:$0xff]  ;;  %2827 = vmatpush.msra.mxu0 %v2505_v23 }
 0x194   :  { %2834 = vmatpush.msra.mxu1 %v2563_v36  ;;  %2859 = vmatpush.msra.mxu2 %v2585_v43 }
 0x195   :  { %2880 = vmatpush.msra.mxu3 %v2615_v48  ;;  %2828 = vmatpush.msra.mxu0 %v2503_v27 }
 0x196   :  { %2835 = vmatpush.msra.mxu1 %v2561_v42  ;;  %2860 = vmatpush.msra.mxu2 %v2583_v47 }
 0x197   :  { %2881 = vmatpush.msra.mxu3 %v2613_v52 }
 0x198   :  { %2836 = vmatpush.msra.mxu1 %v2559_v46  ;;  %2861 = vmatpush.msra.mxu2 %v2581_v51  ;;  %v2628_v46 = vld [vmem:[#allocation8] sm:$0x3] }
 0x199   :  { %2882 = vmatpush.msra.mxu3 %v2611_v56  ;;  %v2630_v48 = vperm.slane %v2628_v46, 0  ;;  %v2631_v49 = vperm.slane %v2628_v46, 1 }
 0x19a   :  { %2837 = vmatpush.msra.mxu1 %v2557_v50  ;;  %2862 = vmatpush.msra.mxu2 %v2579_v55 }
 0x19b   :  { %2883 = vmatpush.msra.mxu3 %v2609_v60 }
 0x19c   :  { %2838 = vmatpush.msra.mxu1 %v2555_v54  ;;  %2863 = vmatpush.msra.mxu2 %v2577_v59 }
 0x19d   :  { %2884 = vmatpush.msra.mxu3 %v2607_v0 }
 0x19e   :  { %2839 = vmatpush.msra.mxu1 %v2553_v58  ;;  %2864 = vmatpush.msra.mxu2 %v2575_v63 }
 0x19f   :  { %2885 = vmatpush.msra.mxu3 %v2605_v4 }
 0x1a0   :  { %2840 = vmatpush.msra.mxu1 %v2551_v62  ;;  %2865 = vmatpush.msra.mxu2 %v2573_v38 }
 0x1a1   :  { %2886 = vmatpush.msra.mxu3 %v2603_v41 }
 0x1a2   :  { %2841 = vmatpush.msra.mxu1 %v2549_v2  ;;  %2866 = vmatpush.msra.mxu2 %v2571_v8 }
 0x1a3   :  { %v2037_v32 = vpop.f32.mrf.mxu3  ;;  %2887 = vmatpush.msra.mxu3 %v2601_v14 }
 0x1a4   :  { %2842 = vmatpush.msra.mxu1 %v2547_v6  ;;  %2867 = vmatpush.msra.mxu2 %v2569_v13 }
 0x1a5   :  { %2888 = vmatpush.msra.mxu3 %v2599_v18 }
 0x1a6   :  { %v1997_v29 = vpop.f32.mrf.mxu1  ;;  %2843 = vmatpush.msra.mxu1 %v2545_v12  ;;  %2868 = vmatpush.msra.mxu2 %v2567_v17 }
 0x1a7   :  { %v1998_v31 = vadd.f32 %v1997_v29, %v1978_v28  ;;  %2889 = vmatpush.msra.mxu3 %v2597_v22  ;;  %v2535_v28 = vld [vmem:[%s3759_s3 + $0x318] sm:$0xff]  ;;  %v2501_v29 = vld [vmem:[%s3759_s3 + $0x208] sm:$0xff] }
 0x1a8   :  { %2844 = vmatpush.msra.mxu1 %v2543_v16  ;;  %2869 = vmatpush.msra.mxu2 %v2565_v21 }
 0x1a9   :  { %v2018_v33 = vadd.f32 %v2017_v30, %v1998_v31  ;;  %v2533_v30 = vld [vmem:[%s3759_s3 + $0x308] sm:$0xff]  ;;  %2829 = vmatpush.msra.mxu0 %v2501_v29 }
 0x1aa   :  { %2845 = vmatpush.msra.mxu1 %v2541_v20 }
 0x1ab   :  { %v2038_v34 = vadd.f32 %v2037_v32, %v2018_v33 }
 0x1ac   :  { %2846 = vmatpush.msra.mxu1 %v2539_v7 }
 0x1ad   :  { %2040 = vst [vmem:[#allocation2 + $0x10] sm:$0xf] %v2038_v34 }
 0x1ae   :  { %2847 = vmatpush.msra.mxu1 %v2537_v25 }
 0x1b0   :  { %2848 = vmatpush.msra.mxu1 %v2535_v28 }
 0x1b2   :  { %2849 = vmatpush.msra.mxu1 %v2533_v30 }
 0x1b6   :  { %v2409_v33 = vpop.f32.mrf.mxu2 }
 0x1b9   :  { %v2369_v26 = vpop.f32.mrf.mxu0 }
 0x1ba   :  { %v2370_v31 = vadd.f32 %v2925_v24, %v2369_v26 }
 0x1ca   :  { %v2429_v35 = vpop.f32.mrf.mxu3 }
 0x1cd   :  { %v2389_v32 = vpop.f32.mrf.mxu1 }
 0x1ce   :  { %v2390_v34 = vadd.f32 %v2389_v32, %v2370_v31 }
 0x1d0   :  { %v2410_v36 = vadd.f32 %v2409_v33, %v2390_v34 }
 0x1d2   :  { %v2430_v37 = vadd.f32 %v2429_v35, %v2410_v36  ;;  %v2671_v44 = vpop.f32.mrf.mxu0 }
 0x1d3   :  { %v2672_v53 = vadd.f32 %v2671_v44, %v2630_v48 }
 0x1d4   :  { %2432 = vst [vmem:[#allocation2 + $0x14] sm:$0xf] %v2430_v37 }
 0x1d5   :  { %v2691_v45 = vpop.f32.mrf.mxu1 }
 0x1d6   :  { %v2692_v55 = vadd.f32 %v2691_v45, %v2672_v53 }
 0x1db   :  { %v2435_v39 = vld [vmem:[#allocation2 + $0x10] sm:$0xff] }
 0x1dc   :  { %2641 = vst [vmem:[#allocation1 + $0x20] ss:$2 sm:$0xff] %v2435_v39 }
 0x1e3   :  { %v2646_v40 = vld.sshfl [vmem:[#allocation1 + $0x20] sm:$0xff pattern:$0x75316420]  ;;  %v2647_v42 = vld.sshfl [vmem:[#allocation1 + $0x28] sm:$0xff pattern:$0x75316420] }
 0x1e4   :  { %2750 = vmatmul.f32.vlgmr.msrb.gmra.mxu0 %v2646_v40  ;;  %2770 = vmatmul.f32.vlgmr.msrb.gmra.mxu1 %v2647_v42 }
 0x1e5   :  { %2870 = vmatmul.f32.vlgmr.msra.gmra.mxu2 %v2646_v40  ;;  %2890 = vmatmul.f32.vlgmr.msra.gmra.mxu3 %v2647_v42 }
 0x1ec   :  { %2830 = vmatmul.f32.vlgmr.msra.gmra.mxu0 %v3527_v10  ;;  %2850 = vmatmul.f32.vlgmr.msra.gmra.mxu1 %v3529_v11 }
 0x20a   :  { %v2711_v43 = vpop.f32.mrf.mxu2  ;;  %v2731_v47 = vpop.f32.mrf.mxu3 }
 0x20b   :  { %v2712_v57 = vadd.f32 %v2711_v43, %v2692_v55 }
 0x20d   :  { %v2732_v11 = vadd.f32 %v2731_v47, %v2712_v57 }
 0x212   :  { %v2791_v50 = vpop.f32.mrf.mxu2  ;;  %v2811_v56 = vpop.f32.mrf.mxu3 }
 0x213   :  { %v2792_v54 = vadd.f32 %v2791_v50, %v2631_v49 }
 0x215   :  { %v2812_v58 = vadd.f32 %v2811_v56, %v2792_v54 }
 0x261   :  { %v2751_v51 = vpop.f32.mrf.mxu0  ;;  %v2771_v52 = vpop.f32.mrf.mxu1 }
 0x262   :  { %v2752_v63 = vadd.f32 %v2751_v51, %v2732_v11 }
 0x264   :  { %v2772_v38 = vadd.f32 %v2771_v52, %v2752_v63 }
 0x268   :  { %v2871_v62 = vpop.f32.mrf.mxu2  ;;  %v2891_v1 = vpop.f32.mrf.mxu3 }
 0x269   :  { %v2831_v59 = vpop.f32.mrf.mxu0  ;;  %v2851_v60 = vpop.f32.mrf.mxu1 }
 0x26a   :  { %v2832_v10 = vadd.f32 %v2831_v59, %v2812_v58 }
 0x26c   :  { %v2852_v61 = vadd.f32 %v2851_v60, %v2832_v10 }
 0x26e   :  { %v2872_v0 = vadd.f32 %v2871_v62, %v2852_v61 }
 0x270   :  { %v2892_v2 = vadd.f32 %v2891_v1, %v2872_v0 }
 0x272   :  { %v2896_v4 = vrot.slane %v2892_v2, 4 }
 0x274   :  { %v2898_v5 = vsel %vm2897_vm3, %v2772_v38, %v2896_v4 }
 0x275   :  { %2902 = vst.msk [vmem:[%s3761_s5] sm:$0xff] %vm2901_vm5, %v2898_v5 }
 0x276   :  { %2907 = vsyncpa [#allocation4], 1 }
 0x277   :  { %2908 = vsyncpa [#allocation6], 1 }
 0x278   :  { %2909 = vsyncpa [#allocation9], 1 }

</bundles_post_ra>
